<compile_context>
chip_gen: v6e
topology: v6e:2x2x1
jax: 0.10.0
libtpu: 0.0.40
codegen_flags: <defaults>
</compile_context>

<pallas_src>
import functools

import jax
import jax.numpy as jnp
from jax.experimental import pallas as pl
from jax.experimental.pallas import tpu as pltpu

WEIGHT_DTYPE = jnp.bfloat16  # bf16 weights/activations into the MXU, f32 accumulation


def _round_up(x, m):
    return (x + m - 1) // m * m


def _mlp_kernel(x_ref, w1_ref, b1_ref, w2_ref, b2_ref, w3_ref, b3_ref, o_ref):
    """Fused 3-layer MLP over one batch tile.

    Weights/biases are resident across grid steps (constant index_map); the
    activations flow as bf16 into the MXU with f32 accumulation.
    """
    x = x_ref[...]                                               # (TB, 784) bf16

    # Layer 1: Linear + ReLU (dropout == identity in eval mode)
    h1 = jnp.dot(x, w1_ref[...], preferred_element_type=jnp.float32)
    h1 = jnp.maximum(h1 + b1_ref[...], 0.0)                      # (TB, H1p) f32

    # Layer 2: Linear + ReLU (dropout == identity in eval mode)
    h2 = jnp.dot(h1.astype(WEIGHT_DTYPE), w2_ref[...],
                 preferred_element_type=jnp.float32)
    h2 = jnp.maximum(h2 + b2_ref[...], 0.0)                      # (TB, H2p) f32

    # Layer 3: Linear (no activation)
    out = jnp.dot(h2.astype(WEIGHT_DTYPE), w3_ref[...],
                  preferred_element_type=jnp.float32)
    o_ref[...] = (out + b3_ref[...]).astype(o_ref.dtype)         # (TB, DOp)


def prepare_params(w1, b1, w2, b2, w3, b3):
    """One-time parameter preparation (call once at init, NOT per forward).

    - pads hidden/output feature dims up to multiples of 128 (lane alignment),
    - casts weights to bf16 (halves HBM traffic; bf16-native MXU),
    - keeps biases in f32, zero-padded (zero padding is inert through
      matmul + bias + ReLU).
    Weights are stored (in_features, out_features) so the kernel does x @ W + b.
    """
    D0, H1 = w1.shape
    H2 = w2.shape[1]
    DO = w3.shape[1]
    H1p, H2p, DOp = _round_up(H1, 128), _round_up(H2, 128), _round_up(DO, 128)

    w1p = jnp.zeros((D0, H1p), WEIGHT_DTYPE).at[:, :H1].set(w1.astype(WEIGHT_DTYPE))
    b1p = jnp.zeros((1, H1p), jnp.float32).at[0, :H1].set(b1)
    w2p = jnp.zeros((H1p, H2p), WEIGHT_DTYPE).at[:H1, :H2].set(w2.astype(WEIGHT_DTYPE))
    b2p = jnp.zeros((1, H2p), jnp.float32).at[0, :H2].set(b2)
    w3p = jnp.zeros((H2p, DOp), WEIGHT_DTYPE).at[:H2, :DO].set(w3.astype(WEIGHT_DTYPE))
    b3p = jnp.zeros((1, DOp), jnp.float32).at[0, :DO].set(b3)
    return (w1p, b1p, w2p, b2p, w3p, b3p), DO


@functools.partial(jax.jit, static_argnames=("num_out", "tb"))
def linear_net_forward(x, padded_params, num_out, tb=256):
    """x: (B, 784) float. padded_params from prepare_params().
    Returns (B, num_out) f32 — the eval-mode forward of the PyTorch module."""
    w1p, b1p, w2p, b2p, w3p, b3p = padded_params
    B, D0 = x.shape
    H1p = w1p.shape[1]
    H2p = w2p.shape[1]
    DOp = w3p.shape[1]

    # Batch tiling: small batches collapse to a single grid step; large batches
    # are pipelined in TB-row tiles while the weights stay resident in VMEM.
    TB = min(tb, _round_up(B, 8))
    Bp = _round_up(B, TB)

    # Only the batch dim is padded; the 784 feature dim is left as-is
    # (block_shape == full array dim waives the 128-divisibility rule).
    xp = jnp.zeros((Bp, D0), WEIGHT_DTYPE).at[:B, :].set(x.astype(WEIGHT_DTYPE))

    grid = (Bp // TB,)
    resident = lambda shape: pl.BlockSpec(shape, lambda i: (0, 0))

    out_p = pl.pallas_call(
        _mlp_kernel,
        out_shape=jax.ShapeDtypeStruct((Bp, DOp), jnp.float32),
        grid=grid,
        in_specs=[
            pl.BlockSpec((TB, D0), lambda i: (i, 0)),   # x: batch-tiled
            resident((D0, H1p)),                        # w1 (resident)
            resident((1, H1p)),                         # b1
            resident((H1p, H2p)),                       # w2
            resident((1, H2p)),                         # b2
            resident((H2p, DOp)),                       # w3
            resident((1, DOp)),                         # b3
        ],
        out_specs=pl.BlockSpec((TB, DOp), lambda i: (i, 0)),
        compiler_params=pltpu.CompilerParams(
            dimension_semantics=("parallel",),          # megacore / v7x dual-TC
            vmem_limit_bytes=48 << 20,                  # headroom on v7x's 64 MiB
        ),
    )(xp, w1p, b1p, w2p, b2p, w3p, b3p)

    return out_p[:B, :num_out]


def init_params(key):
    """Deterministic init mimicking nn.Linear default (uniform +-1/sqrt(fan_in)).
    Weights are returned transposed to (in, out) for the x @ W convention."""
    dims = [(784, 1200), (1200, 1200), (1200, 10)]
    params = []
    for i, (fan_in, fan_out) in enumerate(dims):
        kw, kb = jax.random.split(jax.random.fold_in(key, i))
        bound = 1.0 / (fan_in ** 0.5)
        w = jax.random.uniform(kw, (fan_in, fan_out), jnp.float32, -bound, bound)
        b = jax.random.uniform(kb, (fan_out,), jnp.float32, -bound, bound)
        params += [w, b]
    return params


if __name__ == "__main__":
    key = jax.random.PRNGKey(0)
    kx, kp = jax.random.split(key)

    B = 4
    x = jax.random.normal(kx, (B, 784), jnp.float32)
    w1, b1, w2, b2, w3, b3 = init_params(kp)

    # One-time weight prep (padding + bf16 cast), reused across forward calls.
    padded_params, num_out = prepare_params(w1, b1, w2, b2, w3, b3)

    out = linear_net_forward(x, padded_params, num_out)
    out = jax.block_until_ready(out)

    # Pure-JAX reference using the same bf16 weight/activation quantization and
    # f32 accumulation (eval-mode dropout == identity).
    def ref_fwd(xf):
        h = jnp.dot(xf.astype(jnp.bfloat16), w1.astype(jnp.bfloat16),
                    preferred_element_type=jnp.float32) + b1
        h = jnp.maximum(h, 0.0)
        h = jnp.dot(h.astype(jnp.bfloat16), w2.astype(jnp.bfloat16),
                    preferred_element_type=jnp.float32) + b2
        h = jnp.maximum(h, 0.0)
        return jnp.dot(h.astype(jnp.bfloat16), w3.astype(jnp.bfloat16),
                       preferred_element_type=jnp.float32) + b3

    ref = ref_fwd(x)

    assert out.shape == (B, 10), out.shape
    max_err = float(jnp.abs(out - ref).max())
    assert jnp.allclose(out, ref, atol=2e-2, rtol=2e-2), max_err

    print("KERNEL_OK")
</pallas_src>

<mosaic_0001>
module attributes {stable_mosaic.version = 11 : i64} {
  func.func @_mlp_kernel(%arg0: i32, %arg1: memref<8x784xbf16, #tpu.memory_space<vmem>>, %arg2: memref<784x1280xbf16, #tpu.memory_space<vmem>>, %arg3: memref<1x1280xf32, #tpu.memory_space<vmem>>, %arg4: memref<1280x1280xbf16, #tpu.memory_space<vmem>>, %arg5: memref<1x1280xf32, #tpu.memory_space<vmem>>, %arg6: memref<1280x128xbf16, #tpu.memory_space<vmem>>, %arg7: memref<1x128xf32, #tpu.memory_space<vmem>>, %arg8: memref<8x128xf32, #tpu.memory_space<vmem>>) attributes {dimension_semantics = [#tpu.dimension_semantics<parallel>], iteration_bounds = array<i64: 1>, scalar_prefetch = 0 : i64, scratch_operands = 0 : i64, tpu.core_type = #tpu.core_type<tc>, window_params = [{transform_indices = @transform_0, window_bounds = array<i64: 8, 784>}, {pipeline_mode = #tpu.pipeline_mode<synchronous>, transform_indices = @transform_1, window_bounds = array<i64: 784, 1280>}, {pipeline_mode = #tpu.pipeline_mode<synchronous>, transform_indices = @transform_2, window_bounds = array<i64: 1, 1280>}, {pipeline_mode = #tpu.pipeline_mode<synchronous>, transform_indices = @transform_3, window_bounds = array<i64: 1280, 1280>}, {pipeline_mode = #tpu.pipeline_mode<synchronous>, transform_indices = @transform_4, window_bounds = array<i64: 1, 1280>}, {pipeline_mode = #tpu.pipeline_mode<synchronous>, transform_indices = @transform_5, window_bounds = array<i64: 1280, 128>}, {pipeline_mode = #tpu.pipeline_mode<synchronous>, transform_indices = @transform_6, window_bounds = array<i64: 1, 128>}, {transform_indices = @transform_7, window_bounds = array<i64: 8, 128>}]} {
    %c0 = arith.constant 0 : index
    %c0_0 = arith.constant 0 : index
    %0 = vector.load %arg1[%c0, %c0_0] : memref<8x784xbf16, #tpu.memory_space<vmem>>, vector<8x784xbf16>
    %c0_1 = arith.constant 0 : index
    %c0_2 = arith.constant 0 : index
    %1 = vector.load %arg2[%c0_1, %c0_2] : memref<784x1280xbf16, #tpu.memory_space<vmem>>, vector<784x1280xbf16>
    %cst = arith.constant dense<0.000000e+00> : vector<8x1280xf32>
    %2 = tpu.matmul %0, %1, %cst {dimension_numbers = #tpu.dot_dimension_numbers<[1], [0], [0], [1], [0, 0, 1, 1], [], []>} : vector<8x784xbf16>, vector<784x1280xbf16>, vector<8x1280xf32> -> vector<8x1280xf32>
    %c0_3 = arith.constant 0 : index
    %c0_4 = arith.constant 0 : index
    %3 = vector.load %arg3[%c0_3, %c0_4] : memref<1x1280xf32, #tpu.memory_space<vmem>>, vector<1x1280xf32>
    %4 = vector.broadcast %3 : vector<1x1280xf32> to vector<8x1280xf32>
    %5 = arith.addf %2, %4 : vector<8x1280xf32>
    %cst_5 = arith.constant 0.000000e+00 : f32
    %6 = vector.broadcast %cst_5 : f32 to vector<8x1280xf32>
    %7 = arith.maximumf %5, %6 : vector<8x1280xf32>
    %8 = arith.truncf %7 : vector<8x1280xf32> to vector<8x1280xbf16>
    %c0_6 = arith.constant 0 : index
    %c0_7 = arith.constant 0 : index
    %9 = vector.load %arg4[%c0_6, %c0_7] : memref<1280x1280xbf16, #tpu.memory_space<vmem>>, vector<1280x1280xbf16>
    %cst_8 = arith.constant dense<0.000000e+00> : vector<8x1280xf32>
    %10 = tpu.matmul %8, %9, %cst_8 {dimension_numbers = #tpu.dot_dimension_numbers<[1], [0], [0], [1], [0, 0, 1, 1], [], []>} : vector<8x1280xbf16>, vector<1280x1280xbf16>, vector<8x1280xf32> -> vector<8x1280xf32>
    %c0_9 = arith.constant 0 : index
    %c0_10 = arith.constant 0 : index
    %11 = vector.load %arg5[%c0_9, %c0_10] : memref<1x1280xf32, #tpu.memory_space<vmem>>, vector<1x1280xf32>
    %12 = vector.broadcast %11 : vector<1x1280xf32> to vector<8x1280xf32>
    %13 = arith.addf %10, %12 : vector<8x1280xf32>
    %cst_11 = arith.constant 0.000000e+00 : f32
    %14 = vector.broadcast %cst_11 : f32 to vector<8x1280xf32>
    %15 = arith.maximumf %13, %14 : vector<8x1280xf32>
    %16 = arith.truncf %15 : vector<8x1280xf32> to vector<8x1280xbf16>
    %c0_12 = arith.constant 0 : index
    %c0_13 = arith.constant 0 : index
    %17 = vector.load %arg6[%c0_12, %c0_13] : memref<1280x128xbf16, #tpu.memory_space<vmem>>, vector<1280x128xbf16>
    %cst_14 = arith.constant dense<0.000000e+00> : vector<8x128xf32>
    %18 = tpu.matmul %16, %17, %cst_14 {dimension_numbers = #tpu.dot_dimension_numbers<[1], [0], [0], [1], [0, 0, 1, 1], [], []>} : vector<8x1280xbf16>, vector<1280x128xbf16>, vector<8x128xf32> -> vector<8x128xf32>
    %c0_15 = arith.constant 0 : index
    %c0_16 = arith.constant 0 : index
    %19 = vector.load %arg7[%c0_15, %c0_16] : memref<1x128xf32, #tpu.memory_space<vmem>>, vector<1x128xf32>
    %20 = vector.broadcast %19 : vector<1x128xf32> to vector<8x128xf32>
    %21 = arith.addf %18, %20 : vector<8x128xf32>
    %c0_17 = arith.constant 0 : index
    %c0_18 = arith.constant 0 : index
    %22 = vector.load %arg8[%c0_17, %c0_18] : memref<8x128xf32, #tpu.memory_space<vmem>>, vector<8x128xf32>
    tpu.vector_store %arg8[%c0_17, %c0_18], %21 {strides = array<i32>} : memref<8x128xf32, #tpu.memory_space<vmem>>, vector<8x128xf32>,
    return
  }
  func.func @transform_0(%arg0: i32) -> (i32, i32) {
    %c0_i32 = arith.constant 0 : i32
    %c0_i32_0 = arith.constant 0 : i32
    return %arg0, %c0_i32 : i32, i32
  }
  func.func @transform_1(%arg0: i32) -> (i32, i32) {
    %c0_i32 = arith.constant 0 : i32
    %c0_i32_0 = arith.constant 0 : i32
    %c0_i32_1 = arith.constant 0 : i32
    return %c0_i32, %c0_i32_0 : i32, i32
  }
  func.func @transform_2(%arg0: i32) -> (i32, i32) {
    %c0_i32 = arith.constant 0 : i32
    %c0_i32_0 = arith.constant 0 : i32
    %c0_i32_1 = arith.constant 0 : i32
    return %c0_i32, %c0_i32_0 : i32, i32
  }
  func.func @transform_3(%arg0: i32) -> (i32, i32) {
    %c0_i32 = arith.constant 0 : i32
    %c0_i32_0 = arith.constant 0 : i32
    %c0_i32_1 = arith.constant 0 : i32
    return %c0_i32, %c0_i32_0 : i32, i32
  }
  func.func @transform_4(%arg0: i32) -> (i32, i32) {
    %c0_i32 = arith.constant 0 : i32
    %c0_i32_0 = arith.constant 0 : i32
    %c0_i32_1 = arith.constant 0 : i32
    return %c0_i32, %c0_i32_0 : i32, i32
  }
  func.func @transform_5(%arg0: i32) -> (i32, i32) {
    %c0_i32 = arith.constant 0 : i32
    %c0_i32_0 = arith.constant 0 : i32
    %c0_i32_1 = arith.constant 0 : i32
    return %c0_i32, %c0_i32_0 : i32, i32
  }
  func.func @transform_6(%arg0: i32) -> (i32, i32) {
    %c0_i32 = arith.constant 0 : i32
    %c0_i32_0 = arith.constant 0 : i32
    %c0_i32_1 = arith.constant 0 : i32
    return %c0_i32, %c0_i32_0 : i32, i32
  }
  func.func @transform_7(%arg0: i32) -> (i32, i32) {
    %c0_i32 = arith.constant 0 : i32
    %c0_i32_0 = arith.constant 0 : i32
    return %arg0, %c0_i32 : i32, i32
  }
}

</mosaic_0001>

<bundles_post_ra>
// kernel: linear_net_forward.1
= control target key start
LH: loop header
LB: loop body
LE: loop exit
PB: predicated region body
PF: predicated region fallthrough
CT: control target
= control target key end

     0   :  { %12 = vsyncpa [#allocation3], 0  ;;  %s14827_s0 = inlined_call_operand.vmem [shape: bf16[8,784], index: 0, kind: input, shape index: {}]   ;;  %s14828_s1 = inlined_call_operand.hbm [shape: bf16[784,1280], index: 1, kind: input, shape index: {}]   ;;  %s14829_s2 = inlined_call_operand.hbm [shape: f32[1,1280], index: 2, kind: input, shape index: {}]   ;;  %s14830_s3 = inlined_call_operand.hbm [shape: bf16[1280,1280], index: 3, kind: input, shape index: {}]   ;;  %s14831_s4 = inlined_call_operand.hbm [shape: f32[1,1280], index: 4, kind: input, shape index: {}]   ;;  %s14832_s5 = inlined_call_operand.hbm [shape: bf16[1280,128], index: 5, kind: input, shape index: {}]   ;;  %s14833_s6 = inlined_call_operand.hbm [shape: f32[1,128], index: 6, kind: input, shape index: {}]   ;;  %s14834_s7 = inlined_call_operand.vmem [shape: f32[8,128], index: 7, kind: output, shape index: {}]  }
   0x1   :  { %13 = vsyncpa [#allocation5], 0 }
   0x2   :  { %14 = vsyncpa [#allocation8], 0 }
   0x3   :  { %15 = vsyncpa [#allocation11], 0  ;;  %s14383_s24 = smov [#allocation4]   ;;  %s14384_s26 = smov [#allocation7]  }
   0x4   :  { %s36_s25 = sshll.u32 %s14383_s24, 4  ;;  %s58_s27 = sshll.u32 %s14384_s26, 4  ;;  %s37_s25 = int_to_ptr.vmem [resolvable:$true] %s36_s25  ;;  %s59_s27 = int_to_ptr.vmem [resolvable:$true] %s58_s27 }
   0x5   :  { %s14263_s28 = scalar_lea.vmem %s37_s25, 160  ;;  %p14268_p1 = scmp.lt.s32.totalorder %s37_s25, %s37_s25 }
   0x6   :  { %p14264_p0 = scmp.ne.s32.totalorder %s37_s25, %s14263_s28  ;;  %p14269_p2 = scmp.lt.s32.totalorder %s14263_s28, %s14263_s28 }
   0x8   :  { %p14270_p3 = por %p14269_p2, %p14268_p1 }
   0xa   :  { %p14271_p4 = pnand %p14270_p3, %p14264_p0 }
   0xc   :  { %14274 = shalt.err (!%p14271_p4)
}
   0xd   :  { %39 = dma.hbm_to_vmem [thread:$0]  %s14829_s2, 160, %s37_s25, [#allocation5]  }
   0xe   :  { %s14283_s8 = scalar_lea.vmem %s59_s27, 160  ;;  %p14288_p6 = scmp.lt.s32.totalorder %s59_s27, %s59_s27 }
   0xf   :  { %p14284_p5 = scmp.ne.s32.totalorder %s59_s27, %s14283_s8  ;;  %p14289_p7 = scmp.lt.s32.totalorder %s14283_s8, %s14283_s8 }
  0x11   :  { %p14290_p8 = por %p14289_p7, %p14288_p6 }
  0x13   :  { %p14291_p9 = pnand %p14290_p8, %p14284_p5 }
  0x15   :  { %14294 = shalt.err (!%p14291_p9)
}
  0x16   :  { %61 = dma.hbm_to_vmem [thread:$0]  %s14831_s4, 160, %s59_s27, [#allocation8]  }
  0x17   :  { %s14385_s11 = smov [#allocation2]  }
  0x18   :  { %s23_s12 = sshll.u32 %s14385_s11, 4  ;;  %s24_s12 = int_to_ptr.vmem [resolvable:$true] %s23_s12 }
  0x19   :  { %s14303_s13 = scalar_lea.vmem %s24_s12, 62720  ;;  %p14308_p11 = scmp.lt.s32.totalorder %s24_s12, %s24_s12 }
  0x1a   :  { %p14304_p10 = scmp.ne.s32.totalorder %s24_s12, %s14303_s13  ;;  %p14309_p12 = scmp.lt.s32.totalorder %s14303_s13, %s14303_s13 }
  0x1c   :  { %p14310_p13 = por %p14309_p12, %p14308_p11 }
  0x1e   :  { %p14311_p0 = pnand %p14310_p13, %p14304_p10 }
  0x20   :  { %14314 = shalt.err (!%p14311_p0)
}
  0x21   :  { %s14386_s2 = smov 640   ;;  %s14387_s14 = smov 40  }
  0x22   :  { %29 = dma.hbm_to_vmem [thread:$0]  %s14828_s1, 62720, %s24_s12, [#allocation3], %s14386_s2, %s14386_s2, %s14387_s14  }
  0x23   :  { %s14388_s17 = smov [#allocation6]   ;;  %s14389_s4 = smov [#allocation9]  }
  0x24   :  { %s45_s18 = sshll.u32 %s14388_s17, 4  ;;  %s67_s19 = sshll.u32 %s14389_s4, 4  ;;  %s46_s18 = int_to_ptr.vmem [resolvable:$true] %s45_s18  ;;  %s68_s19 = int_to_ptr.vmem [resolvable:$true] %s67_s19 }
  0x25   :  { %s14323_s20 = scalar_lea.vmem %s46_s18, 102400  ;;  %p14328_p2 = scmp.lt.s32.totalorder %s46_s18, %s46_s18 }
  0x26   :  { %p14324_p1 = scmp.ne.s32.totalorder %s46_s18, %s14323_s20  ;;  %p14329_p3 = scmp.lt.s32.totalorder %s14323_s20, %s14323_s20 }
  0x28   :  { %p14330_p4 = por %p14329_p3, %p14328_p2 }
  0x2a   :  { %p14331_p5 = pnand %p14330_p4, %p14324_p1 }
  0x2c   :  { %14334 = shalt.err (!%p14331_p5)
}
  0x2d   :  { %51 = dma.hbm_to_vmem [thread:$0]  %s14830_s3, 102400, %s46_s18, [#allocation5], %s14386_s2, %s14386_s2, %s14387_s14  }
  0x2e   :  { %s14343_s23 = scalar_lea.vmem %s68_s19, 10240  ;;  %p14348_p7 = scmp.lt.s32.totalorder %s68_s19, %s68_s19 }
  0x2f   :  { %p14344_p6 = scmp.ne.s32.totalorder %s68_s19, %s14343_s23  ;;  %p14349_p8 = scmp.lt.s32.totalorder %s14343_s23, %s14343_s23 }
  0x31   :  { %p14350_p9 = por %p14349_p8, %p14348_p7 }
  0x33   :  { %p14351_p10 = pnand %p14350_p9, %p14344_p6 }
  0x35   :  { %14354 = shalt.err (!%p14351_p10)
}
  0x36   :  { %s14390_s1 = smov 64   ;;  %s14391_s24 = smov 4  }
  0x37   :  { %73 = dma.hbm_to_vmem [thread:$0]  %s14832_s5, 10240, %s68_s19, [#allocation8], %s14390_s1, %s14390_s1, %s14391_s24  }
  0x38   :  { %s14392_s27 = smov [#allocation10]  }
  0x39   :  { %s80_s28 = sshll.u32 %s14392_s27, 4  ;;  %s81_s28 = int_to_ptr.vmem [resolvable:$true] %s80_s28 }
  0x3a   :  { %s14363_s29 = scalar_lea.vmem %s81_s28, 16  ;;  %s14367_s3 = scalar_lea.vmem %s81_s28, 32 }
  0x3b   :  { %p14364_p11 = scmp.ne.s32.totalorder %s81_s28, %s14363_s29  ;;  %p14368_p12 = scmp.lt.s32.totalorder %s81_s28, %s81_s28 }
  0x3c   :  { %p14369_p13 = scmp.lt.s32.totalorder %s14367_s3, %s14363_s29 }
  0x3e   :  { %p14370_p0 = por %p14369_p13, %p14368_p12 }
  0x40   :  { %p14371_p1 = pnand %p14370_p0, %p14364_p11 }
  0x42   :  { %14374 = shalt.err (!%p14371_p1)
}
  0x43   :  { %83 = dma.hbm_to_vmem [thread:$0]  %s14833_s6, 16, %s81_s28, [#allocation11]  }
  0x44   :  { %14375 = dma.done.wait [#allocation3], 62720  }
  0x45   :  { %14376 = vsyncadd [#allocation3], 4294904576 }
  0x46   :  { %14377 = dma.done.wait [#allocation5], 102560  }
  0x47   :  { %14378 = vsyncadd [#allocation5], 4294864736 }
  0x48   :  { %14379 = dma.done.wait [#allocation8], 10400  }
  0x49   :  { %14380 = vsyncadd [#allocation8], 4294956896 }
  0x4a   :  { %14381 = dma.done.wait [#allocation11], 16  }
  0x4b   :  { %14382 = vsyncadd [#allocation11], 4294967280  ;;  %v12228_v0 = vld [vmem:[#allocation2 + $0x234] ss:$40 sps:$4 sm:$0xff]   ;;  %v12232_v2 = vld [vmem:[#allocation2 + $0x230] ss:$40 sps:$4 sm:$0xff]  }
  0x4c   :  { %v12230_v1 = vld [vmem:[#allocation2 + $0x734] ss:$40 sps:$4 sm:$0xff]   ;;  %3129 = vmatprep.subr.bf16.mxu0 %v12228_v0  ;;  %v12233_v3 = vld [vmem:[#allocation2 + $0x730] ss:$40 sps:$4 sm:$0xff]   ;;  %v12234_v4 = vld [vmem:[#allocation2 + $0x1e4] ss:$40 sps:$4 sm:$0xff]  }
  0x4d   :  { %3170 = vmatprep.subr.bf16.mxu1 %v12230_v1  ;;  %3130 = vmatpush1.bf16.msra.mxu0 %v12232_v2  ;;  %v12236_v5 = vld [vmem:[#allocation2 + $0x6e4] ss:$40 sps:$4 sm:$0xff]   ;;  %v12238_v6 = vld [vmem:[#allocation2 + $0x1e0] ss:$40 sps:$4 sm:$0xff]   ;;  %v12240_v8 = vld [vmem:[#allocation2 + $0x194] ss:$40 sps:$4 sm:$0xff]  }
  0x4e   :  { %3171 = vmatpush1.bf16.msra.mxu1 %v12233_v3  ;;  %3131 = vmatprep.subr.bf16.mxu0 %v12234_v4  ;;  %v12239_v7 = vld [vmem:[#allocation2 + $0x6e0] ss:$40 sps:$4 sm:$0xff]   ;;  %v12242_v9 = vld [vmem:[#allocation2 + $0x694] ss:$40 sps:$4 sm:$0xff]   ;;  %v12244_v10 = vld [vmem:[#allocation2 + $0x190] ss:$40 sps:$4 sm:$0xff]  }
  0x4f   :  { %3172 = vmatprep.subr.bf16.mxu1 %v12236_v5  ;;  %v12245_v11 = vld [vmem:[#allocation2 + $0x690] ss:$40 sps:$4 sm:$0xff]   ;;  %v12246_v12 = vld [vmem:[#allocation2 + $0x144] ss:$40 sps:$4 sm:$0xff]   ;;  %v12250_v14 = vld [vmem:[#allocation2 + $0x140] ss:$40 sps:$4 sm:$0xff]  }
  0x50   :  { %v12248_v13 = vld [vmem:[#allocation2 + $0x644] ss:$40 sps:$4 sm:$0xff]   ;;  %v12251_v15 = vld [vmem:[#allocation2 + $0x640] ss:$40 sps:$4 sm:$0xff]   ;;  %v12252_v16 = vld [vmem:[#allocation2 + $0xf4] ss:$40 sps:$4 sm:$0xff]  }
  0x51   :  { %3132 = vmatpush1.bf16.msra.mxu0 %v12238_v6  ;;  %v12254_v17 = vld [vmem:[#allocation2 + $0x5f4] ss:$40 sps:$4 sm:$0xff]   ;;  %v12256_v18 = vld [vmem:[#allocation2 + $0xf0] ss:$40 sps:$4 sm:$0xff]   ;;  %v12258_v20 = vld [vmem:[#allocation2 + $0xa4] ss:$40 sps:$4 sm:$0xff]  }
  0x52   :  { %3173 = vmatpush1.bf16.msra.mxu1 %v12239_v7  ;;  %3133 = vmatprep.subr.bf16.mxu0 %v12240_v8  ;;  %v12257_v19 = vld [vmem:[#allocation2 + $0x5f0] ss:$40 sps:$4 sm:$0xff]   ;;  %v12260_v21 = vld [vmem:[#allocation2 + $0x5a4] ss:$40 sps:$4 sm:$0xff]   ;;  %v12262_v22 = vld [vmem:[#allocation2 + $0xa0] ss:$40 sps:$4 sm:$0xff]  }
  0x53   :  { %3174 = vmatprep.subr.bf16.mxu1 %v12242_v9  ;;  %v12263_v23 = vld [vmem:[#allocation2 + $0x5a0] ss:$40 sps:$4 sm:$0xff]   ;;  %v12264_v24 = vld [vmem:[#allocation2 + $0x54] ss:$40 sps:$4 sm:$0xff]   ;;  %v12268_v26 = vld [vmem:[#allocation2 + $0x50] ss:$40 sps:$4 sm:$0xff]  }
  0x54   :  { %v12266_v25 = vld [vmem:[#allocation2 + $0x554] ss:$40 sps:$4 sm:$0xff]   ;;  %v12269_v27 = vld [vmem:[#allocation2 + $0x550] ss:$40 sps:$4 sm:$0xff]   ;;  %v12270_v28 = vld [vmem:[#allocation2 + $0x4] ss:$40 sps:$4 sm:$0xff]  }
  0x55   :  { %3134 = vmatpush1.bf16.msra.mxu0 %v12244_v10  ;;  %v12272_v29 = vld [vmem:[#allocation2 + $0x504] ss:$40 sps:$4 sm:$0xff]   ;;  %v12274_v30 = vld [vmem:[#allocation2] ss:$40 sps:$4 sm:$0xff]   ;;  %v12276_v32 = vld [vmem:[#allocation2 + $0x4b4] ss:$40 sps:$4 sm:$0xff]  }
  0x56   :  { %3175 = vmatpush1.bf16.msra.mxu1 %v12245_v11  ;;  %3135 = vmatprep.subr.bf16.mxu0 %v12246_v12  ;;  %v12275_v31 = vld [vmem:[#allocation2 + $0x500] ss:$40 sps:$4 sm:$0xff]   ;;  %v12278_v33 = vld [vmem:[#allocation2 + $0x9b4] ss:$40 sps:$4 sm:$0xff]   ;;  %v12280_v34 = vld [vmem:[#allocation2 + $0x4b0] ss:$40 sps:$4 sm:$0xff]  }
  0x57   :  { %3176 = vmatprep.subr.bf16.mxu1 %v12248_v13  ;;  %v12281_v35 = vld [vmem:[#allocation2 + $0x9b0] ss:$40 sps:$4 sm:$0xff]   ;;  %v12282_v36 = vld [vmem:[#allocation2 + $0x464] ss:$40 sps:$4 sm:$0xff]   ;;  %v12286_v38 = vld [vmem:[#allocation2 + $0x460] ss:$40 sps:$4 sm:$0xff]  }
  0x58   :  { %v12284_v37 = vld [vmem:[#allocation2 + $0x964] ss:$40 sps:$4 sm:$0xff]   ;;  %v12287_v39 = vld [vmem:[#allocation2 + $0x960] ss:$40 sps:$4 sm:$0xff]   ;;  %v12288_v40 = vld [vmem:[#allocation2 + $0x414] ss:$40 sps:$4 sm:$0xff]  }
  0x59   :  { %3136 = vmatpush1.bf16.msra.mxu0 %v12250_v14  ;;  %v12290_v41 = vld [vmem:[#allocation2 + $0x914] ss:$40 sps:$4 sm:$0xff]   ;;  %v12292_v42 = vld [vmem:[#allocation2 + $0x410] ss:$40 sps:$4 sm:$0xff]   ;;  %v12294_v44 = vld [vmem:[#allocation2 + $0x3c4] ss:$40 sps:$4 sm:$0xff]  }
  0x5a   :  { %3177 = vmatpush1.bf16.msra.mxu1 %v12251_v15  ;;  %3137 = vmatprep.subr.bf16.mxu0 %v12252_v16  ;;  %v12293_v43 = vld [vmem:[#allocation2 + $0x910] ss:$40 sps:$4 sm:$0xff]   ;;  %v12296_v45 = vld [vmem:[#allocation2 + $0x8c4] ss:$40 sps:$4 sm:$0xff]   ;;  %v12298_v49 = vld [vmem:[#allocation2 + $0x3c0] ss:$40 sps:$4 sm:$0xff]  }
  0x5b   :  { %3178 = vmatprep.subr.bf16.mxu1 %v12254_v17  ;;  %v103_v46 = vld [vmem:[%s14827_s0] sm:$0xff]  ;;  %v104_v48 = vld [vmem:[%s14827_s0 + $0x8] sm:$0xff]  ;;  %v12300_v52 = vld [vmem:[#allocation2 + $0x374] ss:$40 sps:$4 sm:$0xff]   ;;  %v14393_v13 = vmov 0   ;;  %vm3125_vm0 = vcmask 130048  }
  0x5c   :  { %v14455_v47 = vcombine.high %v103_v46, %v103_v46  ;;  %v12299_v50 = vld [vmem:[#allocation2 + $0x8c0] ss:$40 sps:$4 sm:$0xff]   ;;  %v14460_v51 = vcombine.high %v104_v48, %v104_v48  ;;  %v12302_v53 = vld [vmem:[#allocation2 + $0x874] ss:$40 sps:$4 sm:$0xff]   ;;  %v12304_v54 = vld [vmem:[#allocation2 + $0x370] ss:$40 sps:$4 sm:$0xff]   ;;  %v14464_v6 = vcombine.low %v103_v46, %v103_v46  ;;  %v14466_v7 = vcombine.low %v104_v48, %v104_v48 }
  0x5d   :  { %3138 = vmatpush1.bf16.msra.mxu0 %v12256_v18  ;;  %v12305_v55 = vld [vmem:[#allocation2 + $0x870] ss:$40 sps:$4 sm:$0xff]   ;;  %v12306_v56 = vld [vmem:[#allocation2 + $0x324] ss:$40 sps:$4 sm:$0xff]   ;;  %v12310_v58 = vld [vmem:[#allocation2 + $0x320] ss:$40 sps:$4 sm:$0xff]  }
  0x5e   :  { %3179 = vmatpush1.bf16.msra.mxu1 %v12257_v19  ;;  %3139 = vmatprep.subr.bf16.mxu0 %v12258_v20  ;;  %v12308_v57 = vld [vmem:[#allocation2 + $0x824] ss:$40 sps:$4 sm:$0xff]   ;;  %v12311_v59 = vld [vmem:[#allocation2 + $0x820] ss:$40 sps:$4 sm:$0xff]   ;;  %v12312_v60 = vld [vmem:[#allocation2 + $0x2d4] ss:$40 sps:$4 sm:$0xff]  }
  0x5f   :  { %3180 = vmatprep.subr.bf16.mxu1 %v12260_v21  ;;  %3161 = vmatprep.mubr.bf16.mxu0 %v14455_v47  ;;  %v12314_v61 = vld [vmem:[#allocation2 + $0x7d4] ss:$40 sps:$4 sm:$0xff]   ;;  %v12316_v62 = vld [vmem:[#allocation2 + $0x2d0] ss:$40 sps:$4 sm:$0xff]   ;;  %v12318_v0 = vld [vmem:[#allocation2 + $0x284] ss:$40 sps:$4 sm:$0xff]  }
  0x60   :  { %3202 = vmatprep.mubr.bf16.mxu1 %v14460_v51  ;;  %v12317_v63 = vld [vmem:[#allocation2 + $0x7d0] ss:$40 sps:$4 sm:$0xff]   ;;  %v12320_v1 = vld [vmem:[#allocation2 + $0x784] ss:$40 sps:$4 sm:$0xff]   ;;  %v12322_v2 = vld [vmem:[#allocation2 + $0x280] ss:$40 sps:$4 sm:$0xff]  }
  0x61   :  { %3140 = vmatpush1.bf16.msra.mxu0 %v12262_v22  ;;  %v12323_v3 = vld [vmem:[#allocation2 + $0x780] ss:$40 sps:$4 sm:$0xff]   ;;  %v12330_v4 = vld [vmem:[#allocation2 + $0xc34] ss:$40 sps:$4 sm:$0xff]   ;;  %v12333_v5 = vld [vmem:[#allocation2 + $0xf04] ss:$40 sps:$4 sm:$0xff]  }
  0x62   :  { %3181 = vmatpush1.bf16.msra.mxu1 %v12263_v23  ;;  %3141 = vmatprep.subr.bf16.mxu0 %v12264_v24  ;;  %v12328_v8 = vld [vmem:[#allocation2 + $0xc30] ss:$40 sps:$4 sm:$0xff]   ;;  %v12331_v9 = vld [vmem:[#allocation2 + $0xf00] ss:$40 sps:$4 sm:$0xff]   ;;  %v12336_v10 = vld [vmem:[#allocation2 + $0xbe4] ss:$40 sps:$4 sm:$0xff]  }
  0x63   :  { %3182 = vmatprep.subr.bf16.mxu1 %v12266_v25  ;;  %v12339_v11 = vld [vmem:[#allocation2 + $0x23c] ss:$40 sps:$4 sm:$0xff]   ;;  %v12334_v12 = vld [vmem:[#allocation2 + $0xbe0] ss:$40 sps:$4 sm:$0xff]   ;;  %v12340_v16 = vld [vmem:[#allocation2 + $0xb90] ss:$40 sps:$4 sm:$0xff]  }
  0x64   :  { %v12342_v14 = vld [vmem:[#allocation2 + $0xb94] ss:$40 sps:$4 sm:$0xff]   ;;  %v12337_v15 = vld [vmem:[#allocation2 + $0x238] ss:$40 sps:$4 sm:$0xff]   ;;  %v12349_v19 = vld [vmem:[#allocation2 + $0xb44] ss:$40 sps:$4 sm:$0xff]  }
  0x65   :  { %3142 = vmatpush1.bf16.msra.mxu0 %v12268_v26  ;;  %v14474_v17 = vld [vmem:[%s14827_s0 + $0x18] ss:$0 sps:$4 sm:$0xff]   ;;  %v12346_v18 = vld [vmem:[#allocation2 + $0x1ec] ss:$40 sps:$4 sm:$0xff]   ;;  %v12344_v20 = vld [vmem:[#allocation2 + $0x1e8] ss:$40 sps:$4 sm:$0xff]  }
  0x66   :  { %3183 = vmatpush1.bf16.msra.mxu1 %v12269_v27  ;;  %3143 = vmatprep.subr.bf16.mxu0 %v12270_v28  ;;  %v12347_v21 = vld [vmem:[#allocation2 + $0xb40] ss:$40 sps:$4 sm:$0xff]   ;;  %v12352_v22 = vld [vmem:[#allocation2 + $0x19c] ss:$40 sps:$4 sm:$0xff]   ;;  %v12353_v25 = vld [vmem:[#allocation2 + $0xaf0] ss:$40 sps:$4 sm:$0xff]  }
  0x67   :  { %3184 = vmatprep.subr.bf16.mxu1 %v12272_v29  ;;  %v12355_v23 = vld [vmem:[#allocation2 + $0xaf4] ss:$40 sps:$4 sm:$0xff]   ;;  %v12350_v24 = vld [vmem:[#allocation2 + $0x198] ss:$40 sps:$4 sm:$0xff]   ;;  %v12361_v27 = vld [vmem:[#allocation2 + $0xaa4] ss:$40 sps:$4 sm:$0xff]  }
  0x68   :  { %v12358_v26 = vld [vmem:[#allocation2 + $0x14c] ss:$40 sps:$4 sm:$0xff]   ;;  %v12356_v28 = vld [vmem:[#allocation2 + $0x148] ss:$40 sps:$4 sm:$0xff]  }
  0x69   :  { %3144 = vmatpush1.bf16.msra.mxu0 %v12274_v30  ;;  %v12359_v29 = vld [vmem:[#allocation2 + $0xaa0] ss:$40 sps:$4 sm:$0xff]   ;;  %v12364_v30 = vld [vmem:[#allocation2 + $0xfc] ss:$40 sps:$4 sm:$0xff]  }
  0x6a   :  { %3185 = vmatpush1.bf16.msra.mxu1 %v12275_v31  ;;  %3145 = vmatprep.subr.bf16.mxu0 %v12276_v32  ;;  %v12367_v31 = vld [vmem:[#allocation2 + $0xa54] ss:$40 sps:$4 sm:$0xff]   ;;  %v12380_v46 = vld [vmem:[#allocation2 + $0x8] ss:$40 sps:$4 sm:$0xff]  }
  0x6b   :  { %3186 = vmatprep.subr.bf16.mxu1 %v12278_v33  ;;  %v14482_v32 = vld [vmem:[%s14827_s0 + $0x10] sm:$0xff]  ;;  %v12383_v48 = vld [vmem:[#allocation2 + $0xe60] ss:$40 sps:$4 sm:$0xff]  }
  0x6c   :  { %v14486_v33 = vcombine.high %v14482_v32, %v14482_v32 }
  0x6d   :  { %3146 = vmatpush2.bf16.msra.mxu0 %v12280_v34  ;;  %v12362_v34 = vld [vmem:[#allocation2 + $0xf8] ss:$40 sps:$4 sm:$0xff]  }
  0x6e   :  { %3187 = vmatpush2.bf16.msra.mxu1 %v12281_v35  ;;  %3147 = vmatprep.subr.bf16.mxu0 %v12282_v36  ;;  %v12365_v35 = vld [vmem:[#allocation2 + $0xa50] ss:$40 sps:$4 sm:$0xff]   ;;  %v12370_v36 = vld [vmem:[#allocation2 + $0xac] ss:$40 sps:$4 sm:$0xff]  }
  0x6f   :  { %3188 = vmatprep.subr.bf16.mxu1 %v12284_v37  ;;  %v12373_v37 = vld [vmem:[#allocation2 + $0xa04] ss:$40 sps:$4 sm:$0xff]  }
  0x71   :  { %3148 = vmatpush2.bf16.msra.mxu0 %v12286_v38  ;;  %v12368_v38 = vld [vmem:[#allocation2 + $0xa8] ss:$40 sps:$4 sm:$0xff]  }
  0x72   :  { %3189 = vmatpush2.bf16.msra.mxu1 %v12287_v39  ;;  %3149 = vmatprep.subr.bf16.mxu0 %v12288_v40  ;;  %v12371_v39 = vld [vmem:[#allocation2 + $0xa00] ss:$40 sps:$4 sm:$0xff]   ;;  %v12376_v40 = vld [vmem:[#allocation2 + $0x5c] ss:$40 sps:$4 sm:$0xff]  }
  0x73   :  { %3190 = vmatprep.subr.bf16.mxu1 %v12290_v41  ;;  %v12379_v41 = vld [vmem:[#allocation2 + $0xeb4] ss:$40 sps:$4 sm:$0xff]  }
  0x75   :  { %3150 = vmatpush2.bf16.msra.mxu0 %v12292_v42  ;;  %v12374_v42 = vld [vmem:[#allocation2 + $0x58] ss:$40 sps:$4 sm:$0xff]  }
  0x76   :  { %3191 = vmatpush2.bf16.msra.mxu1 %v12293_v43  ;;  %3151 = vmatprep.subr.bf16.mxu0 %v12294_v44  ;;  %v12377_v43 = vld [vmem:[#allocation2 + $0xeb0] ss:$40 sps:$4 sm:$0xff]   ;;  %v12382_v44 = vld [vmem:[#allocation2 + $0xc] ss:$40 sps:$4 sm:$0xff]  }
  0x77   :  { %3192 = vmatprep.subr.bf16.mxu1 %v12296_v45  ;;  %v12385_v45 = vld [vmem:[#allocation2 + $0xe64] ss:$40 sps:$4 sm:$0xff]  }
  0x79   :  { %3152 = vmatpush2.bf16.msra.mxu0 %v12298_v49  ;;  %v12388_v49 = vld [vmem:[#allocation2 + $0x4bc] ss:$40 sps:$4 sm:$0xff]  }
  0x7a   :  { %3193 = vmatpush2.bf16.msra.mxu1 %v12299_v50  ;;  %3153 = vmatprep.subr.bf16.mxu0 %v12300_v52  ;;  %v12391_v50 = vld [vmem:[#allocation2 + $0xe14] ss:$40 sps:$4 sm:$0xff]   ;;  %v12386_v52 = vld [vmem:[#allocation2 + $0x4b8] ss:$40 sps:$4 sm:$0xff]  }
  0x7b   :  { %3194 = vmatprep.subr.bf16.mxu1 %v12302_v53  ;;  %v12389_v53 = vld [vmem:[#allocation2 + $0xe10] ss:$40 sps:$4 sm:$0xff]  }
  0x7d   :  { %3154 = vmatpush2.bf16.msra.mxu0 %v12304_v54  ;;  %v12394_v54 = vld [vmem:[#allocation2 + $0x46c] ss:$40 sps:$4 sm:$0xff]  }
  0x7e   :  { %3195 = vmatpush2.bf16.msra.mxu1 %v12305_v55  ;;  %3155 = vmatprep.subr.bf16.mxu0 %v12306_v56  ;;  %v12397_v55 = vld [vmem:[#allocation2 + $0xdc4] ss:$40 sps:$4 sm:$0xff]   ;;  %v12392_v56 = vld [vmem:[#allocation2 + $0x468] ss:$40 sps:$4 sm:$0xff]  }
  0x7f   :  { %3196 = vmatprep.subr.bf16.mxu1 %v12308_v57  ;;  %v12395_v57 = vld [vmem:[#allocation2 + $0xdc0] ss:$40 sps:$4 sm:$0xff]  }
  0x81   :  { %3156 = vmatpush2.bf16.msra.mxu0 %v12310_v58  ;;  %v12400_v58 = vld [vmem:[#allocation2 + $0x41c] ss:$40 sps:$4 sm:$0xff]  }
  0x82   :  { %3197 = vmatpush2.bf16.msra.mxu1 %v12311_v59  ;;  %3157 = vmatprep.subr.bf16.mxu0 %v12312_v60  ;;  %v12403_v59 = vld [vmem:[#allocation2 + $0xd74] ss:$40 sps:$4 sm:$0xff]   ;;  %v12398_v60 = vld [vmem:[#allocation2 + $0x418] ss:$40 sps:$4 sm:$0xff]  }
  0x83   :  { %3198 = vmatprep.subr.bf16.mxu1 %v12314_v61  ;;  %v12401_v61 = vld [vmem:[#allocation2 + $0xd70] ss:$40 sps:$4 sm:$0xff]  }
  0x85   :  { %3158 = vmatpush2.bf16.msra.mxu0 %v12316_v62  ;;  %v12406_v62 = vld [vmem:[#allocation2 + $0x3cc] ss:$40 sps:$4 sm:$0xff]  }
  0x86   :  { %3199 = vmatpush2.bf16.msra.mxu1 %v12317_v63  ;;  %3159 = vmatprep.subr.bf16.mxu0 %v12318_v0  ;;  %v12409_v63 = vld [vmem:[#allocation2 + $0xd24] ss:$40 sps:$4 sm:$0xff]   ;;  %v12404_v0 = vld [vmem:[#allocation2 + $0x3c8] ss:$40 sps:$4 sm:$0xff]  }
  0x87   :  { %3200 = vmatprep.subr.bf16.mxu1 %v12320_v1  ;;  %v12407_v1 = vld [vmem:[#allocation2 + $0xd20] ss:$40 sps:$4 sm:$0xff]  }
  0x89   :  { %3160 = vmatpush2.bf16.msra.mxu0 %v12322_v2  ;;  %v12412_v2 = vld [vmem:[#allocation2 + $0x37c] ss:$40 sps:$4 sm:$0xff]  }
  0x8a   :  { %3201 = vmatpush2.bf16.msra.mxu1 %v12323_v3  ;;  %3211 = vmatprep.subr.bf16.mxu0 %v12330_v4  ;;  %v12415_v3 = vld [vmem:[#allocation2 + $0xcd4] ss:$40 sps:$4 sm:$0xff]   ;;  %v12410_v4 = vld [vmem:[#allocation2 + $0x378] ss:$40 sps:$4 sm:$0xff]  }
  0x8b   :  { %3266 = vmatprep.subr.bf16.mxu1 %v12333_v5  ;;  %v12413_v5 = vld [vmem:[#allocation2 + $0xcd0] ss:$40 sps:$4 sm:$0xff]  }
  0x8c   :  { %3162 = vmatmul.mubr.bf16.vlgmr.msra.gmra.mxu0 %v14464_v6 }
  0x8d   :  { %3203 = vmatmul.mubr.bf16.vlgmr.msra.gmra.mxu1 %v14466_v7  ;;  %3212 = vmatpush1.bf16.msra.mxu0 %v12328_v8  ;;  %v12418_v8 = vld [vmem:[#allocation2 + $0x32c] ss:$40 sps:$4 sm:$0xff]  }
  0x8e   :  { %3267 = vmatpush1.bf16.msra.mxu1 %v12331_v9  ;;  %3213 = vmatprep.subr.bf16.mxu0 %v12336_v10  ;;  %v12421_v9 = vld [vmem:[#allocation2 + $0xc84] ss:$40 sps:$4 sm:$0xff]   ;;  %v12416_v10 = vld [vmem:[#allocation2 + $0x328] ss:$40 sps:$4 sm:$0xff]  }
  0x8f   :  { %3284 = vmatprep.mubr.bf16.mxu1 %v14393_v13  ;;  %3293 = vmatprep.subr.bf16.mxu1 %v12339_v11  ;;  %v12419_v11 = vld [vmem:[#allocation2 + $0xc80] ss:$40 sps:$4 sm:$0xff]  }
  0x90   :  { %3243 = vmatprep.mubr.bf16.mxu0 %v14486_v33 }
  0x91   :  { %3214 = vmatpush1.bf16.msra.mxu0 %v12334_v12  ;;  %v12425_v12 = vld [vmem:[#allocation2 + $0x2dc] ss:$40 sps:$4 sm:$0xff]  }
  0x92   :  { %3215 = vmatprep.subr.bf16.mxu0 %v12342_v14  ;;  %v12429_v14 = vld [vmem:[#allocation2 + $0x73c] ss:$40 sps:$4 sm:$0xff]  }
  0x95   :  { %11221 = vmatmul.mubr.msk.bf16.vlgmr.msra.gmra.mxu1 %vm3125_vm0, %v14474_v17  ;;  %3216 = vmatpush1.bf16.msra.mxu0 %v12340_v16  ;;  %v14491_v16 = vcombine.low %v14482_v32, %v14482_v32  ;;  %v12453_v32 = vld [vmem:[#allocation2 + $0x5fc] ss:$40 sps:$4 sm:$0xff]  }
  0x96   :  { %3294 = vmatpush1.bf16.msra.mxu1 %v12337_v15  ;;  %3217 = vmatprep.subr.bf16.mxu0 %v12349_v19  ;;  %v12423_v15 = vld [vmem:[#allocation2 + $0x2d8] ss:$40 sps:$4 sm:$0xff]   ;;  %v12432_v19 = vld [vmem:[#allocation2 + $0x28c] ss:$40 sps:$4 sm:$0xff]  }
  0x97   :  { %3295 = vmatprep.subr.bf16.mxu1 %v12346_v18  ;;  %3325 = vmatprep.mubr.bf16.mxu1 %v14455_v47  ;;  %v12427_v18 = vld [vmem:[#allocation2 + $0x738] ss:$40 sps:$4 sm:$0xff]  }
  0x99   :  { %3218 = vmatpush1.bf16.msra.mxu0 %v12347_v21  ;;  %v12430_v21 = vld [vmem:[#allocation2 + $0x288] ss:$40 sps:$4 sm:$0xff]  }
  0x9a   :  { %3296 = vmatpush1.bf16.msra.mxu1 %v12344_v20  ;;  %3219 = vmatprep.subr.bf16.mxu0 %v12355_v23  ;;  %v12435_v20 = vld [vmem:[#allocation2 + $0x6ec] ss:$40 sps:$4 sm:$0xff]   ;;  %v12438_v23 = vld [vmem:[#allocation2 + $0xc3c] ss:$40 sps:$4 sm:$0xff]  }
  0x9b   :  { %3297 = vmatprep.subr.bf16.mxu1 %v12352_v22  ;;  %v12433_v22 = vld [vmem:[#allocation2 + $0x6e8] ss:$40 sps:$4 sm:$0xff]  }
  0x9d   :  { %3220 = vmatpush1.bf16.msra.mxu0 %v12353_v25  ;;  %v12436_v25 = vld [vmem:[#allocation2 + $0xc38] ss:$40 sps:$4 sm:$0xff]  }
  0x9e   :  { %3298 = vmatpush1.bf16.msra.mxu1 %v12350_v24  ;;  %3221 = vmatprep.subr.bf16.mxu0 %v12361_v27  ;;  %v12441_v24 = vld [vmem:[#allocation2 + $0x69c] ss:$40 sps:$4 sm:$0xff]   ;;  %v12444_v27 = vld [vmem:[#allocation2 + $0xbec] ss:$40 sps:$4 sm:$0xff]  }
  0x9f   :  { %3299 = vmatprep.subr.bf16.mxu1 %v12358_v26  ;;  %v12439_v26 = vld [vmem:[#allocation2 + $0x698] ss:$40 sps:$4 sm:$0xff]  }
  0xa1   :  { %3222 = vmatpush1.bf16.msra.mxu0 %v12359_v29  ;;  %v12442_v29 = vld [vmem:[#allocation2 + $0xbe8] ss:$40 sps:$4 sm:$0xff]  }
  0xa2   :  { %3300 = vmatpush1.bf16.msra.mxu1 %v12356_v28  ;;  %3223 = vmatprep.subr.bf16.mxu0 %v12367_v31  ;;  %v12447_v28 = vld [vmem:[#allocation2 + $0x64c] ss:$40 sps:$4 sm:$0xff]   ;;  %v12450_v31 = vld [vmem:[#allocation2 + $0xb9c] ss:$40 sps:$4 sm:$0xff]  }
  0xa3   :  { %3301 = vmatprep.subr.bf16.mxu1 %v12364_v30  ;;  %v12445_v30 = vld [vmem:[#allocation2 + $0x648] ss:$40 sps:$4 sm:$0xff]  }
  0xa5   :  { %3224 = vmatpush1.bf16.msra.mxu0 %v12365_v35  ;;  %v12451_v35 = vld [vmem:[#allocation2 + $0x5f8] ss:$40 sps:$4 sm:$0xff]  }
  0xa6   :  { %3302 = vmatpush1.bf16.msra.mxu1 %v12362_v34  ;;  %3225 = vmatprep.subr.bf16.mxu0 %v12373_v37  ;;  %v12448_v34 = vld [vmem:[#allocation2 + $0xb98] ss:$40 sps:$4 sm:$0xff]   ;;  %v12459_v37 = vld [vmem:[#allocation2 + $0x5ac] ss:$40 sps:$4 sm:$0xff]  }
  0xa7   :  { %3303 = vmatprep.subr.bf16.mxu1 %v12370_v36  ;;  %v12456_v36 = vld [vmem:[#allocation2 + $0xb4c] ss:$40 sps:$4 sm:$0xff]  }
  0xa9   :  { %3226 = vmatpush1.bf16.msra.mxu0 %v12371_v39  ;;  %v12457_v39 = vld [vmem:[#allocation2 + $0x5a8] ss:$40 sps:$4 sm:$0xff]  }
  0xaa   :  { %3304 = vmatpush1.bf16.msra.mxu1 %v12368_v38  ;;  %3227 = vmatprep.subr.bf16.mxu0 %v12379_v41  ;;  %v12454_v38 = vld [vmem:[#allocation2 + $0xb48] ss:$40 sps:$4 sm:$0xff]   ;;  %v12465_v41 = vld [vmem:[#allocation2 + $0x55c] ss:$40 sps:$4 sm:$0xff]  }
  0xab   :  { %3305 = vmatprep.subr.bf16.mxu1 %v12376_v40  ;;  %v12462_v40 = vld [vmem:[#allocation2 + $0xafc] ss:$40 sps:$4 sm:$0xff]  }
  0xad   :  { %3228 = vmatpush2.bf16.msra.mxu0 %v12377_v43  ;;  %v12463_v43 = vld [vmem:[#allocation2 + $0x558] ss:$40 sps:$4 sm:$0xff]  }
  0xae   :  { %3306 = vmatpush1.bf16.msra.mxu1 %v12374_v42  ;;  %3229 = vmatprep.subr.bf16.mxu0 %v12385_v45  ;;  %v12460_v42 = vld [vmem:[#allocation2 + $0xaf8] ss:$40 sps:$4 sm:$0xff]   ;;  %v12471_v45 = vld [vmem:[#allocation2 + $0x50c] ss:$40 sps:$4 sm:$0xff]  }
  0xaf   :  { %3307 = vmatprep.subr.bf16.mxu1 %v12382_v44  ;;  %v12468_v44 = vld [vmem:[#allocation2 + $0xaac] ss:$40 sps:$4 sm:$0xff]  }
  0xb1   :  { %3230 = vmatpush2.bf16.msra.mxu0 %v12383_v48  ;;  %v12469_v48 = vld [vmem:[#allocation2 + $0x508] ss:$40 sps:$4 sm:$0xff]  }
  0xb2   :  { %3308 = vmatpush1.bf16.msra.mxu1 %v12380_v46  ;;  %3231 = vmatprep.subr.bf16.mxu0 %v12391_v50  ;;  %v12466_v46 = vld [vmem:[#allocation2 + $0xaa8] ss:$40 sps:$4 sm:$0xff]   ;;  %v12477_v50 = vld [vmem:[#allocation2 + $0x9bc] ss:$40 sps:$4 sm:$0xff]  }
  0xb3   :  { %3309 = vmatprep.subr.bf16.mxu1 %v12388_v49  ;;  %v12474_v49 = vld [vmem:[#allocation2 + $0xa5c] ss:$40 sps:$4 sm:$0xff]  }
  0xb5   :  { %3232 = vmatpush2.bf16.msra.mxu0 %v12389_v53  ;;  %v12475_v53 = vld [vmem:[#allocation2 + $0x9b8] ss:$40 sps:$4 sm:$0xff]  }
  0xb6   :  { %3310 = vmatpush2.bf16.msra.mxu1 %v12386_v52  ;;  %3233 = vmatprep.subr.bf16.mxu0 %v12397_v55  ;;  %v12472_v52 = vld [vmem:[#allocation2 + $0xa58] ss:$40 sps:$4 sm:$0xff]   ;;  %v12483_v55 = vld [vmem:[#allocation2 + $0x96c] ss:$40 sps:$4 sm:$0xff]  }
  0xb7   :  { %3311 = vmatprep.subr.bf16.mxu1 %v12394_v54  ;;  %v12480_v54 = vld [vmem:[#allocation2 + $0xa0c] ss:$40 sps:$4 sm:$0xff]  }
  0xb9   :  { %3234 = vmatpush2.bf16.msra.mxu0 %v12395_v57  ;;  %v12481_v57 = vld [vmem:[#allocation2 + $0x968] ss:$40 sps:$4 sm:$0xff]  }
  0xba   :  { %3312 = vmatpush2.bf16.msra.mxu1 %v12392_v56  ;;  %3235 = vmatprep.subr.bf16.mxu0 %v12403_v59  ;;  %v12478_v56 = vld [vmem:[#allocation2 + $0xa08] ss:$40 sps:$4 sm:$0xff]   ;;  %v12489_v59 = vld [vmem:[#allocation2 + $0x91c] ss:$40 sps:$4 sm:$0xff]  }
  0xbb   :  { %3313 = vmatprep.subr.bf16.mxu1 %v12400_v58  ;;  %v12486_v58 = vld [vmem:[#allocation2 + $0xebc] ss:$40 sps:$4 sm:$0xff]  }
  0xbd   :  { %3236 = vmatpush2.bf16.msra.mxu0 %v12401_v61  ;;  %v12487_v61 = vld [vmem:[#allocation2 + $0x918] ss:$40 sps:$4 sm:$0xff]  }
  0xbe   :  { %3314 = vmatpush2.bf16.msra.mxu1 %v12398_v60  ;;  %3237 = vmatprep.subr.bf16.mxu0 %v12409_v63  ;;  %v12484_v60 = vld [vmem:[#allocation2 + $0xeb8] ss:$40 sps:$4 sm:$0xff]   ;;  %v12495_v63 = vld [vmem:[#allocation2 + $0x8cc] ss:$40 sps:$4 sm:$0xff]  }
  0xbf   :  { %3315 = vmatprep.subr.bf16.mxu1 %v12406_v62  ;;  %v12492_v62 = vld [vmem:[#allocation2 + $0xe6c] ss:$40 sps:$4 sm:$0xff]  }
  0xc1   :  { %3238 = vmatpush2.bf16.msra.mxu0 %v12407_v1  ;;  %v12493_v1 = vld [vmem:[#allocation2 + $0x8c8] ss:$40 sps:$4 sm:$0xff]  }
  0xc2   :  { %3316 = vmatpush2.bf16.msra.mxu1 %v12404_v0  ;;  %3239 = vmatprep.subr.bf16.mxu0 %v12415_v3  ;;  %v12490_v0 = vld [vmem:[#allocation2 + $0xe68] ss:$40 sps:$4 sm:$0xff]   ;;  %v12501_v3 = vld [vmem:[#allocation2 + $0x87c] ss:$40 sps:$4 sm:$0xff]  }
  0xc3   :  { %3317 = vmatprep.subr.bf16.mxu1 %v12412_v2  ;;  %v12498_v2 = vld [vmem:[#allocation2 + $0xe1c] ss:$40 sps:$4 sm:$0xff]  }
  0xc5   :  { %3240 = vmatpush2.bf16.msra.mxu0 %v12413_v5  ;;  %v12499_v5 = vld [vmem:[#allocation2 + $0x878] ss:$40 sps:$4 sm:$0xff]  }
  0xc6   :  { %3318 = vmatpush2.bf16.msra.mxu1 %v12410_v4  ;;  %3241 = vmatprep.subr.bf16.mxu0 %v12421_v9  ;;  %v12496_v4 = vld [vmem:[#allocation2 + $0xe18] ss:$40 sps:$4 sm:$0xff]   ;;  %v12507_v9 = vld [vmem:[#allocation2 + $0x82c] ss:$40 sps:$4 sm:$0xff]  }
  0xc7   :  { %3319 = vmatprep.subr.bf16.mxu1 %v12418_v8  ;;  %v12504_v8 = vld [vmem:[#allocation2 + $0xdcc] ss:$40 sps:$4 sm:$0xff]  }
  0xc9   :  { %3242 = vmatpush2.bf16.msra.mxu0 %v12419_v11  ;;  %v12505_v11 = vld [vmem:[#allocation2 + $0x828] ss:$40 sps:$4 sm:$0xff]  }
  0xca   :  { %3320 = vmatpush2.bf16.msra.mxu1 %v12416_v10  ;;  %3334 = vmatprep.subr.bf16.mxu0 %v12429_v14  ;;  %v12502_v10 = vld [vmem:[#allocation2 + $0xdc8] ss:$40 sps:$4 sm:$0xff]   ;;  %v12513_v14 = vld [vmem:[#allocation2 + $0x7dc] ss:$40 sps:$4 sm:$0xff]  }
  0xcb   :  { %3321 = vmatprep.subr.bf16.mxu1 %v12425_v12  ;;  %v12510_v12 = vld [vmem:[#allocation2 + $0xd7c] ss:$40 sps:$4 sm:$0xff]  }
  0xcc   :  { %3244 = vmatmul.mubr.bf16.vlgmr.msra.gmra.mxu0 %v14491_v16 }
  0xcd   :  { %3335 = vmatpush1.bf16.msra.mxu0 %v12427_v18  ;;  %3366 = vmatprep.mubr.bf16.mxu0 %v14460_v51  ;;  %v12511_v18 = vld [vmem:[#allocation2 + $0x7d8] ss:$40 sps:$4 sm:$0xff]  }
  0xce   :  { %3322 = vmatpush2.bf16.msra.mxu1 %v12423_v15  ;;  %3336 = vmatprep.subr.bf16.mxu0 %v12435_v20  ;;  %v12508_v15 = vld [vmem:[#allocation2 + $0xd78] ss:$40 sps:$4 sm:$0xff]   ;;  %v12519_v20 = vld [vmem:[#allocation2 + $0x78c] ss:$40 sps:$4 sm:$0xff]  }
  0xcf   :  { %3323 = vmatprep.subr.bf16.mxu1 %v12432_v19  ;;  %v12516_v19 = vld [vmem:[#allocation2 + $0xd2c] ss:$40 sps:$4 sm:$0xff]  }
  0xd1   :  { %3337 = vmatpush1.bf16.msra.mxu0 %v12433_v22  ;;  %v12517_v22 = vld [vmem:[#allocation2 + $0x788] ss:$40 sps:$4 sm:$0xff]  }
  0xd2   :  { %3324 = vmatpush2.bf16.msra.mxu1 %v12430_v21  ;;  %3338 = vmatprep.subr.bf16.mxu0 %v12441_v24  ;;  %v12514_v21 = vld [vmem:[#allocation2 + $0xd28] ss:$40 sps:$4 sm:$0xff]   ;;  %v12525_v24 = vld [vmem:[#allocation2 + $0x244] ss:$40 sps:$4 sm:$0xff]  }
  0xd3   :  { %3375 = vmatprep.subr.bf16.mxu1 %v12438_v23  ;;  %v12522_v23 = vld [vmem:[#allocation2 + $0xcdc] ss:$40 sps:$4 sm:$0xff]  }
  0xd5   :  { %3326 = vmatmul.mubr.bf16.vlgmr.msra.gmra.mxu1 %v14464_v6  ;;  %3339 = vmatpush1.bf16.msra.mxu0 %v12439_v26  ;;  %v12523_v26 = vld [vmem:[#allocation2 + $0x240] ss:$40 sps:$4 sm:$0xff]  }
  0xd6   :  { %3376 = vmatpush1.bf16.msra.mxu1 %v12436_v25  ;;  %3340 = vmatprep.subr.bf16.mxu0 %v12447_v28  ;;  %v12520_v25 = vld [vmem:[#allocation2 + $0xcd8] ss:$40 sps:$4 sm:$0xff]   ;;  %v12531_v28 = vld [vmem:[#allocation2 + $0x1f4] ss:$40 sps:$4 sm:$0xff]  }
  0xd7   :  { %3377 = vmatprep.subr.bf16.mxu1 %v12444_v27  ;;  %3407 = vmatprep.mubr.bf16.mxu1 %v14486_v33  ;;  %v12528_v27 = vld [vmem:[#allocation2 + $0xc8c] ss:$40 sps:$4 sm:$0xff]  }
  0xd9   :  { %3341 = vmatpush1.bf16.msra.mxu0 %v12445_v30  ;;  %v12529_v30 = vld [vmem:[#allocation2 + $0x1f0] ss:$40 sps:$4 sm:$0xff]  }
  0xda   :  { %3378 = vmatpush1.bf16.msra.mxu1 %v12442_v29  ;;  %3342 = vmatprep.subr.bf16.mxu0 %v12453_v32  ;;  %v12526_v29 = vld [vmem:[#allocation2 + $0xc88] ss:$40 sps:$4 sm:$0xff]   ;;  %v12537_v32 = vld [vmem:[#allocation2 + $0xf0c] ss:$40 sps:$4 sm:$0xff]  }
  0xdb   :  { %3379 = vmatprep.subr.bf16.mxu1 %v12450_v31  ;;  %v12534_v31 = vld [vmem:[#allocation2 + $0x1a4] ss:$40 sps:$4 sm:$0xff]  }
  0xdd   :  { %3343 = vmatpush1.bf16.msra.mxu0 %v12451_v35  ;;  %v12535_v35 = vld [vmem:[#allocation2 + $0xf08] ss:$40 sps:$4 sm:$0xff]  }
  0xde   :  { %3380 = vmatpush1.bf16.msra.mxu1 %v12448_v34  ;;  %3344 = vmatprep.subr.bf16.mxu0 %v12459_v37  ;;  %v12532_v34 = vld [vmem:[#allocation2 + $0x1a0] ss:$40 sps:$4 sm:$0xff]   ;;  %v12543_v37 = vld [vmem:[#allocation2 + $0x744] ss:$40 sps:$4 sm:$0xff]  }
  0xdf   :  { %3381 = vmatprep.subr.bf16.mxu1 %v12456_v36  ;;  %v12540_v36 = vld [vmem:[#allocation2 + $0x154] ss:$40 sps:$4 sm:$0xff]  }
  0xe1   :  { %3345 = vmatpush1.bf16.msra.mxu0 %v12457_v39  ;;  %v12546_v39 = vld [vmem:[#allocation2 + $0x104] ss:$40 sps:$4 sm:$0xff]  }
  0xe2   :  { %3382 = vmatpush1.bf16.msra.mxu1 %v12454_v38  ;;  %3346 = vmatprep.subr.bf16.mxu0 %v12465_v41  ;;  %v12538_v38 = vld [vmem:[#allocation2 + $0x150] ss:$40 sps:$4 sm:$0xff]   ;;  %v12544_v41 = vld [vmem:[#allocation2 + $0x100] ss:$40 sps:$4 sm:$0xff]  }
  0xe3   :  { %3383 = vmatprep.subr.bf16.mxu1 %v12462_v40  ;;  %v12541_v40 = vld [vmem:[#allocation2 + $0x740] ss:$40 sps:$4 sm:$0xff]  }
  0xe5   :  { %3347 = vmatpush1.bf16.msra.mxu0 %v12463_v43  ;;  %v12552_v43 = vld [vmem:[#allocation2 + $0xb4] ss:$40 sps:$4 sm:$0xff]  }
  0xe6   :  { %3384 = vmatpush1.bf16.msra.mxu1 %v12460_v42  ;;  %3348 = vmatprep.subr.bf16.mxu0 %v12471_v45  ;;  %v12549_v42 = vld [vmem:[#allocation2 + $0x6f4] ss:$40 sps:$4 sm:$0xff]   ;;  %v12550_v45 = vld [vmem:[#allocation2 + $0xb0] ss:$40 sps:$4 sm:$0xff]  }
  0xe7   :  { %3385 = vmatprep.subr.bf16.mxu1 %v12468_v44  ;;  %v12547_v44 = vld [vmem:[#allocation2 + $0x6f0] ss:$40 sps:$4 sm:$0xff]  }
  0xe9   :  { %3349 = vmatpush1.bf16.msra.mxu0 %v12469_v48  ;;  %v12558_v48 = vld [vmem:[#allocation2 + $0x64] ss:$40 sps:$4 sm:$0xff]  }
  0xea   :  { %3386 = vmatpush1.bf16.msra.mxu1 %v12466_v46  ;;  %3350 = vmatprep.subr.bf16.mxu0 %v12477_v50  ;;  %v12555_v46 = vld [vmem:[#allocation2 + $0x6a4] ss:$40 sps:$4 sm:$0xff]   ;;  %v12556_v50 = vld [vmem:[#allocation2 + $0x60] ss:$40 sps:$4 sm:$0xff]  }
  0xeb   :  { %3387 = vmatprep.subr.bf16.mxu1 %v12474_v49  ;;  %v12553_v49 = vld [vmem:[#allocation2 + $0x6a0] ss:$40 sps:$4 sm:$0xff]  }
  0xed   :  { %3351 = vmatpush2.bf16.msra.mxu0 %v12475_v53  ;;  %v12564_v53 = vld [vmem:[#allocation2 + $0x14] ss:$40 sps:$4 sm:$0xff]  }
  0xee   :  { %3388 = vmatpush1.bf16.msra.mxu1 %v12472_v52  ;;  %3352 = vmatprep.subr.bf16.mxu0 %v12483_v55  ;;  %v12561_v52 = vld [vmem:[#allocation2 + $0x654] ss:$40 sps:$4 sm:$0xff]   ;;  %v12567_v55 = vld [vmem:[#allocation2 + $0x604] ss:$40 sps:$4 sm:$0xff]  }
  0xef   :  { %3389 = vmatprep.subr.bf16.mxu1 %v12480_v54  ;;  %v12562_v54 = vld [vmem:[#allocation2 + $0x10] ss:$40 sps:$4 sm:$0xff]  }
  0xf1   :  { %3353 = vmatpush2.bf16.msra.mxu0 %v12481_v57  ;;  %v12565_v57 = vld [vmem:[#allocation2 + $0x600] ss:$40 sps:$4 sm:$0xff]  }
  0xf2   :  { %3390 = vmatpush1.bf16.msra.mxu1 %v12478_v56  ;;  %3354 = vmatprep.subr.bf16.mxu0 %v12489_v59  ;;  %v12570_v56 = vld [vmem:[#allocation2 + $0x4c4] ss:$40 sps:$4 sm:$0xff]   ;;  %v12573_v59 = vld [vmem:[#allocation2 + $0x5b4] ss:$40 sps:$4 sm:$0xff]  }
  0xf3   :  { %3391 = vmatprep.subr.bf16.mxu1 %v12486_v58  ;;  %v12568_v58 = vld [vmem:[#allocation2 + $0x4c0] ss:$40 sps:$4 sm:$0xff]  }
  0xf5   :  { %3355 = vmatpush2.bf16.msra.mxu0 %v12487_v61  ;;  %v12571_v61 = vld [vmem:[#allocation2 + $0x5b0] ss:$40 sps:$4 sm:$0xff]  }
  0xf6   :  { %3392 = vmatpush2.bf16.msra.mxu1 %v12484_v60  ;;  %3356 = vmatprep.subr.bf16.mxu0 %v12495_v63  ;;  %v12576_v60 = vld [vmem:[#allocation2 + $0x474] ss:$40 sps:$4 sm:$0xff]   ;;  %v12579_v63 = vld [vmem:[#allocation2 + $0x564] ss:$40 sps:$4 sm:$0xff]  }
  0xf7   :  { %3393 = vmatprep.subr.bf16.mxu1 %v12492_v62  ;;  %v12574_v62 = vld [vmem:[#allocation2 + $0x470] ss:$40 sps:$4 sm:$0xff]  }
  0xf9   :  { %3357 = vmatpush2.bf16.msra.mxu0 %v12493_v1  ;;  %v12577_v1 = vld [vmem:[#allocation2 + $0x560] ss:$40 sps:$4 sm:$0xff]  }
  0xfa   :  { %3394 = vmatpush2.bf16.msra.mxu1 %v12490_v0  ;;  %3358 = vmatprep.subr.bf16.mxu0 %v12501_v3  ;;  %v12582_v0 = vld [vmem:[#allocation2 + $0x424] ss:$40 sps:$4 sm:$0xff]   ;;  %v12585_v3 = vld [vmem:[#allocation2 + $0x514] ss:$40 sps:$4 sm:$0xff]  }
  0xfb   :  { %3395 = vmatprep.subr.bf16.mxu1 %v12498_v2  ;;  %v12580_v2 = vld [vmem:[#allocation2 + $0x420] ss:$40 sps:$4 sm:$0xff]  }
  0xfd   :  { %3359 = vmatpush2.bf16.msra.mxu0 %v12499_v5  ;;  %v12583_v5 = vld [vmem:[#allocation2 + $0x510] ss:$40 sps:$4 sm:$0xff]  }
  0xfe   :  { %3396 = vmatpush2.bf16.msra.mxu1 %v12496_v4  ;;  %3360 = vmatprep.subr.bf16.mxu0 %v12507_v9  ;;  %v12588_v4 = vld [vmem:[#allocation2 + $0x3d4] ss:$40 sps:$4 sm:$0xff]   ;;  %v12591_v9 = vld [vmem:[#allocation2 + $0x9c4] ss:$40 sps:$4 sm:$0xff]  }
  0xff   :  { %3397 = vmatprep.subr.bf16.mxu1 %v12504_v8  ;;  %v12586_v8 = vld [vmem:[#allocation2 + $0x3d0] ss:$40 sps:$4 sm:$0xff]  }
 0x101   :  { %3361 = vmatpush2.bf16.msra.mxu0 %v12505_v11  ;;  %v12589_v11 = vld [vmem:[#allocation2 + $0x9c0] ss:$40 sps:$4 sm:$0xff]  }
 0x102   :  { %3398 = vmatpush2.bf16.msra.mxu1 %v12502_v10  ;;  %3362 = vmatprep.subr.bf16.mxu0 %v12513_v14  ;;  %v12594_v10 = vld [vmem:[#allocation2 + $0x384] ss:$40 sps:$4 sm:$0xff]   ;;  %v12597_v14 = vld [vmem:[#allocation2 + $0x974] ss:$40 sps:$4 sm:$0xff]  }
 0x103   :  { %3399 = vmatprep.subr.bf16.mxu1 %v12510_v12  ;;  %v12592_v12 = vld [vmem:[#allocation2 + $0x380] ss:$40 sps:$4 sm:$0xff]  }
 0x105   :  { %3363 = vmatpush2.bf16.msra.mxu0 %v12511_v18  ;;  %v12595_v18 = vld [vmem:[#allocation2 + $0x970] ss:$40 sps:$4 sm:$0xff]  }
 0x106   :  { %3400 = vmatpush2.bf16.msra.mxu1 %v12508_v15  ;;  %3364 = vmatprep.subr.bf16.mxu0 %v12519_v20  ;;  %v12600_v15 = vld [vmem:[#allocation2 + $0x334] ss:$40 sps:$4 sm:$0xff]   ;;  %v601_v20 = vlaneseq }
 0x107   :  { %3401 = vmatprep.subr.bf16.mxu1 %v12516_v19  ;;  %v12598_v19 = vld [vmem:[#allocation2 + $0x330] ss:$40 sps:$4 sm:$0xff]  }
 0x109   :  { %3365 = vmatpush2.bf16.msra.mxu0 %v12517_v22  ;;  %v12606_v22 = vld [vmem:[#allocation2 + $0x2e4] ss:$40 sps:$4 sm:$0xff]  }
 0x10a   :  { %3402 = vmatpush2.bf16.msra.mxu1 %v12514_v21  ;;  %3457 = vmatprep.subr.bf16.mxu0 %v12525_v24  ;;  %v12603_v21 = vld [vmem:[#allocation2 + $0x924] ss:$40 sps:$4 sm:$0xff]   ;;  %v12604_v24 = vld [vmem:[#allocation2 + $0x2e0] ss:$40 sps:$4 sm:$0xff]  }
 0x10b   :  { %3403 = vmatprep.subr.bf16.mxu1 %v12522_v23  ;;  %v12601_v23 = vld [vmem:[#allocation2 + $0x920] ss:$40 sps:$4 sm:$0xff]  }
 0x10c   :  { %3367 = vmatmul.mubr.bf16.vlgmr.msra.gmra.mxu0 %v14466_v7 }
 0x10d   :  { %3458 = vmatpush1.bf16.msra.mxu0 %v12523_v26  ;;  %3489 = vmatprep.mubr.bf16.mxu0 %v14455_v47  ;;  %v12609_v26 = vld [vmem:[#allocation2 + $0x8d4] ss:$40 sps:$4 sm:$0xff]  }
 0x10e   :  { %3404 = vmatpush2.bf16.msra.mxu1 %v12520_v25  ;;  %3459 = vmatprep.subr.bf16.mxu0 %v12531_v28  ;;  %v14504_v25 = vshrl.u32 %v601_v20, 7  ;;  %v12607_v28 = vld [vmem:[#allocation2 + $0x8d0] ss:$40 sps:$4 sm:$0xff]   ;;  %v12654_v20 = vld [vmem:[#allocation2 + $0x1fc] ss:$40 sps:$4 sm:$0xff]  }
 0x10f   :  { %3405 = vmatprep.subr.bf16.mxu1 %v12528_v27  ;;  %v12612_v27 = vld [vmem:[#allocation2 + $0x294] ss:$40 sps:$4 sm:$0xff]  }
 0x111   :  { %3460 = vmatpush1.bf16.msra.mxu0 %v12529_v30  ;;  %v12615_v30 = vld [vmem:[#allocation2 + $0x884] ss:$40 sps:$4 sm:$0xff]  }
 0x112   :  { %3406 = vmatpush2.bf16.msra.mxu1 %v12526_v29  ;;  %3461 = vmatprep.subr.bf16.mxu0 %v12534_v31  ;;  %v12610_v29 = vld [vmem:[#allocation2 + $0x290] ss:$40 sps:$4 sm:$0xff]  }
 0x113   :  { %3430 = vmatprep.subr.bf16.mxu1 %v12537_v32  ;;  %v597_v31 = vld [vmem:[#allocation4] sm:$0xff]  ;;  %v14507_v32 = vsub.s32 0, %v14504_v25 }
 0x115   :  { %3408 = vmatmul.mubr.bf16.vlgmr.msra.gmra.mxu1 %v14491_v16  ;;  %3462 = vmatpush1.bf16.msra.mxu0 %v12532_v34  ;;  %v12618_v34 = vld [vmem:[#allocation2 + $0xc44] ss:$40 sps:$4 sm:$0xff]  }
 0x116   :  { %3431 = vmatpush1.bf16.msra.mxu1 %v12535_v35  ;;  %3463 = vmatprep.subr.bf16.mxu0 %v12540_v36  ;;  %v14510_v35 = vsub.s32 1, %v14504_v25  ;;  %v12613_v36 = vld [vmem:[#allocation2 + $0x880] ss:$40 sps:$4 sm:$0xff]  }
 0x117   :  { %3448 = vmatprep.mubr.bf16.mxu1 %v14393_v13  ;;  %3498 = vmatprep.subr.bf16.mxu1 %v12543_v37  ;;  %v604_v37 = vrot.slane %v597_v31, %v14507_v32 }
 0x119   :  { %3464 = vmatpush1.bf16.msra.mxu0 %v12538_v38  ;;  %v12616_v38 = vld [vmem:[#allocation2 + $0xc40] ss:$40 sps:$4 sm:$0xff]  }
 0x11a   :  { %3465 = vmatprep.subr.bf16.mxu0 %v12546_v39  ;;  %v12621_v39 = vld [vmem:[#allocation2 + $0x834] ss:$40 sps:$4 sm:$0xff]  }
 0x11d   :  { %11222 = vmatmul.mubr.msk.bf16.vlgmr.msra.gmra.mxu1 %vm3125_vm0, %v14474_v17  ;;  %3466 = vmatpush1.bf16.msra.mxu0 %v12544_v41  ;;  %v12559_v17 = vld [vmem:[#allocation2 + $0x650] ss:$40 sps:$4 sm:$0xff]   ;;  %v608_v41 = vrot.slane %v597_v31, %v14510_v35  ;;  %v12669_v31 = vld [vmem:[#allocation2 + $0xe74] ss:$40 sps:$4 sm:$0xff]  }
 0x11e   :  { %3499 = vmatpush1.bf16.msra.mxu1 %v12541_v40  ;;  %3467 = vmatprep.subr.bf16.mxu0 %v12552_v43  ;;  %v12624_v40 = vld [vmem:[#allocation2 + $0xbf4] ss:$40 sps:$4 sm:$0xff]  }
 0x11f   :  { %3500 = vmatprep.subr.bf16.mxu1 %v12549_v42  ;;  %3530 = vmatprep.mubr.bf16.mxu1 %v14460_v51 }
 0x121   :  { %3468 = vmatpush1.bf16.msra.mxu0 %v12550_v45  ;;  %v12619_v45 = vld [vmem:[#allocation2 + $0x830] ss:$40 sps:$4 sm:$0xff]  }
 0x122   :  { %3501 = vmatpush1.bf16.msra.mxu1 %v12547_v44  ;;  %3469 = vmatprep.subr.bf16.mxu0 %v12558_v48  ;;  %v12627_v48 = vld [vmem:[#allocation2 + $0x7e4] ss:$40 sps:$4 sm:$0xff]  }
 0x123   :  { %3502 = vmatprep.subr.bf16.mxu1 %v12555_v46  ;;  %v12622_v46 = vld [vmem:[#allocation2 + $0xbf0] ss:$40 sps:$4 sm:$0xff]  }
 0x125   :  { %3470 = vmatpush1.bf16.msra.mxu0 %v12556_v50 }
 0x126   :  { %3503 = vmatpush1.bf16.msra.mxu1 %v12553_v49  ;;  %3471 = vmatprep.subr.bf16.mxu0 %v12564_v53 }
 0x127   :  { %3504 = vmatprep.subr.bf16.mxu1 %v12561_v52  ;;  %v12630_v52 = vld [vmem:[#allocation2 + $0xba4] ss:$40 sps:$4 sm:$0xff]  }
 0x129   :  { %3472 = vmatpush1.bf16.msra.mxu0 %v12562_v54  ;;  %v12625_v54 = vld [vmem:[#allocation2 + $0x7e0] ss:$40 sps:$4 sm:$0xff]  }
 0x12a   :  { %3505 = vmatpush1.bf16.msra.mxu1 %v12559_v17  ;;  %3473 = vmatprep.subr.bf16.mxu0 %v12570_v56 }
 0x12b   :  { %3506 = vmatprep.subr.bf16.mxu1 %v12567_v55  ;;  %v12628_v55 = vld [vmem:[#allocation2 + $0xba0] ss:$40 sps:$4 sm:$0xff]  }
 0x12d   :  { %3474 = vmatpush2.bf16.msra.mxu0 %v12568_v58 }
 0x12e   :  { %3507 = vmatpush1.bf16.msra.mxu1 %v12565_v57  ;;  %3475 = vmatprep.subr.bf16.mxu0 %v12576_v60  ;;  %v12636_v60 = vld [vmem:[#allocation2 + $0xb54] ss:$40 sps:$4 sm:$0xff]  }
 0x12f   :  { %3508 = vmatprep.subr.bf16.mxu1 %v12573_v59  ;;  %v12633_v59 = vld [vmem:[#allocation2 + $0x794] ss:$40 sps:$4 sm:$0xff]  }
 0x131   :  { %3476 = vmatpush2.bf16.msra.mxu0 %v12574_v62 }
 0x132   :  { %3509 = vmatpush1.bf16.msra.mxu1 %v12571_v61  ;;  %3477 = vmatprep.subr.bf16.mxu0 %v12582_v0  ;;  %v12634_v0 = vld [vmem:[#allocation2 + $0xb50] ss:$40 sps:$4 sm:$0xff]  }
 0x133   :  { %3510 = vmatprep.subr.bf16.mxu1 %v12579_v63  ;;  %v12631_v63 = vld [vmem:[#allocation2 + $0x790] ss:$40 sps:$4 sm:$0xff]  }
 0x135   :  { %3478 = vmatpush2.bf16.msra.mxu0 %v12580_v2  ;;  %v12639_v2 = vld [vmem:[#allocation2 + $0xb04] ss:$40 sps:$4 sm:$0xff]  }
 0x136   :  { %3511 = vmatpush1.bf16.msra.mxu1 %v12577_v1  ;;  %3479 = vmatprep.subr.bf16.mxu0 %v12588_v4 }
 0x137   :  { %3512 = vmatprep.subr.bf16.mxu1 %v12585_v3  ;;  %v12642_v3 = vld [vmem:[#allocation2 + $0xf14] ss:$40 sps:$4 sm:$0xff]  }
 0x139   :  { %3480 = vmatpush2.bf16.msra.mxu0 %v12586_v8 }
 0x13a   :  { %3513 = vmatpush1.bf16.msra.mxu1 %v12583_v5  ;;  %3481 = vmatprep.subr.bf16.mxu0 %v12594_v10  ;;  %v12637_v5 = vld [vmem:[#allocation2 + $0xb00] ss:$40 sps:$4 sm:$0xff]   ;;  %v12645_v10 = vld [vmem:[#allocation2 + $0xab4] ss:$40 sps:$4 sm:$0xff]  }
 0x13b   :  { %3514 = vmatprep.subr.bf16.mxu1 %v12591_v9  ;;  %v12640_v9 = vld [vmem:[#allocation2 + $0xf10] ss:$40 sps:$4 sm:$0xff]  }
 0x13d   :  { %3482 = vmatpush2.bf16.msra.mxu0 %v12592_v12 }
 0x13e   :  { %3515 = vmatpush2.bf16.msra.mxu1 %v12589_v11  ;;  %3483 = vmatprep.subr.bf16.mxu0 %v12600_v15  ;;  %v12648_v11 = vld [vmem:[#allocation2 + $0x24c] ss:$40 sps:$4 sm:$0xff]  }
 0x13f   :  { %3516 = vmatprep.subr.bf16.mxu1 %v12597_v14  ;;  %v12643_v14 = vld [vmem:[#allocation2 + $0xab0] ss:$40 sps:$4 sm:$0xff]   ;;  %v12651_v15 = vld [vmem:[#allocation2 + $0xa64] ss:$40 sps:$4 sm:$0xff]  }
 0x141   :  { %3484 = vmatpush2.bf16.msra.mxu0 %v12598_v19  ;;  %v12649_v19 = vld [vmem:[#allocation2 + $0xa60] ss:$40 sps:$4 sm:$0xff]  }
 0x142   :  { %3517 = vmatpush2.bf16.msra.mxu1 %v12595_v18  ;;  %3485 = vmatprep.subr.bf16.mxu0 %v12606_v22  ;;  %v12646_v18 = vld [vmem:[#allocation2 + $0x248] ss:$40 sps:$4 sm:$0xff]   ;;  %v14529_v22 = vld [vmem:[%s14827_s0 + $0x18] ss:$0 sps:$4 sm:$0xff]  }
 0x143   :  { %3518 = vmatprep.subr.bf16.mxu1 %v12603_v21  ;;  %v12657_v21 = vld [vmem:[#allocation2 + $0xa14] ss:$40 sps:$4 sm:$0xff]  }
 0x145   :  { %3486 = vmatpush2.bf16.msra.mxu0 %v12604_v24  ;;  %v12655_v24 = vld [vmem:[#allocation2 + $0xa10] ss:$40 sps:$4 sm:$0xff]  }
 0x146   :  { %3519 = vmatpush2.bf16.msra.mxu1 %v12601_v23  ;;  %3487 = vmatprep.subr.bf16.mxu0 %v12612_v27  ;;  %v12652_v23 = vld [vmem:[#allocation2 + $0x1f8] ss:$40 sps:$4 sm:$0xff]   ;;  %v12663_v27 = vld [vmem:[#allocation2 + $0xec4] ss:$40 sps:$4 sm:$0xff]  }
 0x147   :  { %3520 = vmatprep.subr.bf16.mxu1 %v12609_v26  ;;  %v12660_v26 = vld [vmem:[#allocation2 + $0x1ac] ss:$40 sps:$4 sm:$0xff]  }
 0x149   :  { %3488 = vmatpush2.bf16.msra.mxu0 %v12610_v29  ;;  %v12661_v29 = vld [vmem:[#allocation2 + $0xec0] ss:$40 sps:$4 sm:$0xff]  }
 0x14a   :  { %3521 = vmatpush2.bf16.msra.mxu1 %v12607_v28  ;;  %3539 = vmatprep.subr.bf16.mxu0 %v12618_v34  ;;  %v12658_v28 = vld [vmem:[#allocation2 + $0x1a8] ss:$40 sps:$4 sm:$0xff]   ;;  %v12664_v34 = vld [vmem:[#allocation2 + $0x158] ss:$40 sps:$4 sm:$0xff]  }
 0x14b   :  { %3522 = vmatprep.subr.bf16.mxu1 %v12615_v30  ;;  %v12666_v30 = vld [vmem:[#allocation2 + $0x15c] ss:$40 sps:$4 sm:$0xff]  }
 0x14c   :  { %v3163_v42 = vpop.f32.mrf.mxu0  ;;  %3490 = vmatmul.mubr.bf16.vlgmr.msra.gmra.mxu0 %v14464_v6 }
 0x14d   :  { %v3204_v43 = vpop.f32.mrf.mxu1  ;;  %v3164_v44 = vadd.f32 %v3163_v42, %v604_v37  ;;  %3540 = vmatpush1.bf16.msra.mxu0 %v12616_v38  ;;  %3571 = vmatprep.mubr.bf16.mxu0 %v14486_v33  ;;  %v12672_v37 = vld [vmem:[#allocation2 + $0x10c] ss:$40 sps:$4 sm:$0xff]  }
 0x14e   :  { %3523 = vmatpush2.bf16.msra.mxu1 %v12613_v36  ;;  %v3165_v49 = vpop.f32.mrf.mxu0  ;;  %3541 = vmatprep.subr.bf16.mxu0 %v12624_v40  ;;  %v12667_v36 = vld [vmem:[#allocation2 + $0xe70] ss:$40 sps:$4 sm:$0xff]   ;;  %v12675_v38 = vld [vmem:[#allocation2 + $0xe24] ss:$40 sps:$4 sm:$0xff]   ;;  %v12673_v40 = vld [vmem:[#allocation2 + $0xe20] ss:$40 sps:$4 sm:$0xff]  }
 0x14f   :  { %3524 = vmatprep.subr.bf16.mxu1 %v12621_v39  ;;  %v3206_v50 = vpop.f32.mrf.mxu1  ;;  %v3166_v53 = vadd.f32 %v3165_v49, %v608_v41  ;;  %v14515_v17 = vadd.f32 %v3204_v43, %v3164_v44  ;;  %v12670_v39 = vld [vmem:[#allocation2 + $0x108] ss:$40 sps:$4 sm:$0xff]   ;;  %v12678_v41 = vld [vmem:[#allocation2 + $0xbc] ss:$40 sps:$4 sm:$0xff]   ;;  %v12676_v43 = vld [vmem:[#allocation2 + $0xb8] ss:$40 sps:$4 sm:$0xff]  }
 0x150   :  { %v3167_v56 = vpop.f32.mrf.mxu0  ;;  %v12681_v42 = vld [vmem:[#allocation2 + $0xdd4] ss:$40 sps:$4 sm:$0xff]   ;;  %v12679_v44 = vld [vmem:[#allocation2 + $0xdd0] ss:$40 sps:$4 sm:$0xff]   ;;  %v12685_v49 = vld [vmem:[#allocation2 + $0xd80] ss:$40 sps:$4 sm:$0xff]  }
 0x151   :  { %v3208_v57 = vpop.f32.mrf.mxu1  ;;  %v14518_v58 = vadd.f32 %v3206_v50, %v3166_v53  ;;  %3542 = vmatpush1.bf16.msra.mxu0 %v12622_v46  ;;  %v12687_v46 = vld [vmem:[#allocation2 + $0xd84] ss:$40 sps:$4 sm:$0xff]   ;;  %v12688_v53 = vld [vmem:[#allocation2 + $0x18] ss:$40 sps:$4 sm:$0xff]  }
 0x152   :  { %3525 = vmatpush2.bf16.msra.mxu1 %v12619_v45  ;;  %v3168_v61 = vpop.f32.mrf.mxu0  ;;  %3543 = vmatprep.subr.bf16.mxu0 %v12630_v52  ;;  %v12684_v45 = vld [vmem:[#allocation2 + $0x6c] ss:$40 sps:$4 sm:$0xff]   ;;  %v12690_v50 = vld [vmem:[#allocation2 + $0x1c] ss:$40 sps:$4 sm:$0xff]   ;;  %v12694_v57 = vld [vmem:[#allocation2 + $0x4c8] ss:$40 sps:$4 sm:$0xff]  }
 0x153   :  { %3526 = vmatprep.subr.bf16.mxu1 %v12627_v48  ;;  %v3209_v62 = vpop.f32.mrf.mxu1  ;;  %v12682_v48 = vld [vmem:[#allocation2 + $0x68] ss:$40 sps:$4 sm:$0xff]   ;;  %v12693_v52 = vld [vmem:[#allocation2 + $0xd34] ss:$40 sps:$4 sm:$0xff]   ;;  %v12699_v56 = vld [vmem:[#allocation2 + $0xce4] ss:$40 sps:$4 sm:$0xff]  }
 0x154   :  { %v12705_v61 = vld [vmem:[#allocation2 + $0xc94] ss:$40 sps:$4 sm:$0xff]   ;;  %v12700_v62 = vld [vmem:[#allocation2 + $0x478] ss:$40 sps:$4 sm:$0xff]  }
 0x155   :  { %v14520_v1 = vpop.f32.mrf.mxu1  ;;  %3544 = vmatpush1.bf16.msra.mxu0 %v12628_v55  ;;  %v12696_v55 = vld [vmem:[#allocation2 + $0x4cc] ss:$40 sps:$4 sm:$0xff]  }
 0x156   :  { %3527 = vmatpush2.bf16.msra.mxu1 %v12625_v54  ;;  %3545 = vmatprep.subr.bf16.mxu0 %v12636_v60  ;;  %v12691_v54 = vld [vmem:[#allocation2 + $0xd30] ss:$40 sps:$4 sm:$0xff]   ;;  %v12702_v60 = vld [vmem:[#allocation2 + $0x47c] ss:$40 sps:$4 sm:$0xff]  }
 0x157   :  { %3528 = vmatprep.subr.bf16.mxu1 %v12633_v59  ;;  %v14522_v4 = vpop.f32.mrf.mxu1  ;;  %v12697_v59 = vld [vmem:[#allocation2 + $0xce0] ss:$40 sps:$4 sm:$0xff]  }
 0x159   :  { %v3290_v8 = vpop.f32.mrf.mxu1  ;;  %3546 = vmatpush1.bf16.msra.mxu0 %v12634_v0  ;;  %v12708_v0 = vld [vmem:[#allocation2 + $0x42c] ss:$40 sps:$4 sm:$0xff]  }
 0x15a   :  { %3529 = vmatpush2.bf16.msra.mxu1 %v12631_v63  ;;  %3547 = vmatprep.subr.bf16.mxu0 %v12639_v2  ;;  %v12703_v63 = vld [vmem:[#allocation2 + $0xc90] ss:$40 sps:$4 sm:$0xff]   ;;  %v12711_v2 = vld [vmem:[#allocation2 + $0x74c] ss:$40 sps:$4 sm:$0xff]   ;;  %v12714_v8 = vld [vmem:[#allocation2 + $0x3dc] ss:$40 sps:$4 sm:$0xff]  }
 0x15b   :  { %3594 = vmatprep.subr.bf16.mxu1 %v12642_v3  ;;  %v3291_v12 = vpop.f32.mrf.mxu1  ;;  %v12706_v3 = vld [vmem:[#allocation2 + $0x428] ss:$40 sps:$4 sm:$0xff]  }
 0x15d   :  { %3531 = vmatmul.mubr.bf16.vlgmr.msra.gmra.mxu1 %v14466_v7  ;;  %3548 = vmatpush1.bf16.msra.mxu0 %v12637_v5  ;;  %v12709_v5 = vld [vmem:[#allocation2 + $0x748] ss:$40 sps:$4 sm:$0xff]  }
 0x15e   :  { %3595 = vmatpush1.bf16.msra.mxu1 %v12640_v9  ;;  %3549 = vmatprep.subr.bf16.mxu0 %v12645_v10  ;;  %v12717_v9 = vld [vmem:[#allocation2 + $0x6fc] ss:$40 sps:$4 sm:$0xff]  }
 0x15f   :  { %3612 = vmatprep.mubr.bf16.mxu1 %v14393_v13  ;;  %3621 = vmatprep.subr.bf16.mxu1 %v12648_v11  ;;  %v12712_v11 = vld [vmem:[#allocation2 + $0x3d8] ss:$40 sps:$4 sm:$0xff]  }
 0x161   :  { %3550 = vmatpush1.bf16.msra.mxu0 %v12643_v14  ;;  %v12715_v14 = vld [vmem:[#allocation2 + $0x6f8] ss:$40 sps:$4 sm:$0xff]  }
 0x162   :  { %3551 = vmatprep.subr.bf16.mxu0 %v12651_v15  ;;  %v12720_v15 = vld [vmem:[#allocation2 + $0x38c] ss:$40 sps:$4 sm:$0xff]  }
 0x165   :  { %11223 = vmatmul.mubr.msk.bf16.vlgmr.msra.gmra.mxu1 %vm3125_vm0, %v14529_v22  ;;  %3552 = vmatpush1.bf16.msra.mxu0 %v12649_v19  ;;  %v12723_v19 = vld [vmem:[#allocation2 + $0x6ac] ss:$40 sps:$4 sm:$0xff]  }
 0x166   :  { %3622 = vmatpush1.bf16.msra.mxu1 %v12646_v18  ;;  %3553 = vmatprep.subr.bf16.mxu0 %v12657_v21 }
 0x167   :  { %3623 = vmatprep.subr.bf16.mxu1 %v12654_v20  ;;  %3653 = vmatprep.mubr.bf16.mxu1 %v14455_v47 }
 0x169   :  { %3554 = vmatpush1.bf16.msra.mxu0 %v12655_v24  ;;  %v12718_v24 = vld [vmem:[#allocation2 + $0x388] ss:$40 sps:$4 sm:$0xff]  }
 0x16a   :  { %3624 = vmatpush1.bf16.msra.mxu1 %v12652_v23  ;;  %3555 = vmatprep.subr.bf16.mxu0 %v12663_v27  ;;  %v12726_v27 = vld [vmem:[#allocation2 + $0x33c] ss:$40 sps:$4 sm:$0xff]  }
 0x16b   :  { %3625 = vmatprep.subr.bf16.mxu1 %v12660_v26 }
 0x16d   :  { %3556 = vmatpush2.bf16.msra.mxu0 %v12661_v29  ;;  %v12729_v29 = vld [vmem:[#allocation2 + $0x65c] ss:$40 sps:$4 sm:$0xff]  }
 0x16e   :  { %3626 = vmatpush1.bf16.msra.mxu1 %v12658_v28  ;;  %3557 = vmatprep.subr.bf16.mxu0 %v12669_v31  ;;  %v12732_v31 = vld [vmem:[#allocation2 + $0x2ec] ss:$40 sps:$4 sm:$0xff]  }
 0x16f   :  { %3627 = vmatprep.subr.bf16.mxu1 %v12666_v30  ;;  %v12724_v30 = vld [vmem:[#allocation2 + $0x338] ss:$40 sps:$4 sm:$0xff]  }
 0x171   :  { %3558 = vmatpush2.bf16.msra.mxu0 %v12667_v36  ;;  %v12730_v36 = vld [vmem:[#allocation2 + $0x2e8] ss:$40 sps:$4 sm:$0xff]  }
 0x172   :  { %3628 = vmatpush1.bf16.msra.mxu1 %v12664_v34  ;;  %3559 = vmatprep.subr.bf16.mxu0 %v12675_v38  ;;  %v12735_v34 = vld [vmem:[#allocation2 + $0x60c] ss:$40 sps:$4 sm:$0xff]   ;;  %v12733_v38 = vld [vmem:[#allocation2 + $0x608] ss:$40 sps:$4 sm:$0xff]  }
 0x173   :  { %3629 = vmatprep.subr.bf16.mxu1 %v12672_v37 }
 0x175   :  { %3560 = vmatpush2.bf16.msra.mxu0 %v12673_v40  ;;  %v12741_v40 = vld [vmem:[#allocation2 + $0x5bc] ss:$40 sps:$4 sm:$0xff]  }
 0x176   :  { %3630 = vmatpush1.bf16.msra.mxu1 %v12670_v39  ;;  %3561 = vmatprep.subr.bf16.mxu0 %v12681_v42  ;;  %v12738_v39 = vld [vmem:[#allocation2 + $0x29c] ss:$40 sps:$4 sm:$0xff]   ;;  %v12736_v42 = vld [vmem:[#allocation2 + $0x298] ss:$40 sps:$4 sm:$0xff]  }
 0x177   :  { %3631 = vmatprep.subr.bf16.mxu1 %v12678_v41 }
 0x179   :  { %3562 = vmatpush2.bf16.msra.mxu0 %v12679_v44  ;;  %v12744_v44 = vld [vmem:[#allocation2 + $0xc4c] ss:$40 sps:$4 sm:$0xff]  }
 0x17a   :  { %3632 = vmatpush1.bf16.msra.mxu1 %v12676_v43  ;;  %3563 = vmatprep.subr.bf16.mxu0 %v12687_v46  ;;  %v12739_v43 = vld [vmem:[#allocation2 + $0x5b8] ss:$40 sps:$4 sm:$0xff]   ;;  %v12742_v46 = vld [vmem:[#allocation2 + $0xc48] ss:$40 sps:$4 sm:$0xff]  }
 0x17b   :  { %3633 = vmatprep.subr.bf16.mxu1 %v12684_v45  ;;  %v12747_v45 = vld [vmem:[#allocation2 + $0x56c] ss:$40 sps:$4 sm:$0xff]  }
 0x17d   :  { %3564 = vmatpush2.bf16.msra.mxu0 %v12685_v49  ;;  %v12750_v49 = vld [vmem:[#allocation2 + $0xbfc] ss:$40 sps:$4 sm:$0xff]  }
 0x17e   :  { %3634 = vmatpush1.bf16.msra.mxu1 %v12682_v48  ;;  %3565 = vmatprep.subr.bf16.mxu0 %v12693_v52  ;;  %v12745_v48 = vld [vmem:[#allocation2 + $0x568] ss:$40 sps:$4 sm:$0xff]   ;;  %v12748_v52 = vld [vmem:[#allocation2 + $0xbf8] ss:$40 sps:$4 sm:$0xff]  }
 0x17f   :  { %3635 = vmatprep.subr.bf16.mxu1 %v12690_v50  ;;  %v12753_v50 = vld [vmem:[#allocation2 + $0x51c] ss:$40 sps:$4 sm:$0xff]  }
 0x181   :  { %3566 = vmatpush2.bf16.msra.mxu0 %v12691_v54  ;;  %v12756_v54 = vld [vmem:[#allocation2 + $0xbac] ss:$40 sps:$4 sm:$0xff]  }
 0x182   :  { %3636 = vmatpush1.bf16.msra.mxu1 %v12688_v53  ;;  %3567 = vmatprep.subr.bf16.mxu0 %v12699_v56  ;;  %v12751_v53 = vld [vmem:[#allocation2 + $0x518] ss:$40 sps:$4 sm:$0xff]   ;;  %v12754_v56 = vld [vmem:[#allocation2 + $0xba8] ss:$40 sps:$4 sm:$0xff]  }
 0x183   :  { %3637 = vmatprep.subr.bf16.mxu1 %v12696_v55  ;;  %v12759_v55 = vld [vmem:[#allocation2 + $0x9cc] ss:$40 sps:$4 sm:$0xff]  }
 0x185   :  { %3568 = vmatpush2.bf16.msra.mxu0 %v12697_v59  ;;  %v12762_v59 = vld [vmem:[#allocation2 + $0xb5c] ss:$40 sps:$4 sm:$0xff]  }
 0x186   :  { %3638 = vmatpush2.bf16.msra.mxu1 %v12694_v57  ;;  %3569 = vmatprep.subr.bf16.mxu0 %v12705_v61  ;;  %v12757_v57 = vld [vmem:[#allocation2 + $0x9c8] ss:$40 sps:$4 sm:$0xff]   ;;  %v12760_v61 = vld [vmem:[#allocation2 + $0xb58] ss:$40 sps:$4 sm:$0xff]  }
 0x187   :  { %3639 = vmatprep.subr.bf16.mxu1 %v12702_v60  ;;  %v12765_v60 = vld [vmem:[#allocation2 + $0x97c] ss:$40 sps:$4 sm:$0xff]  }
 0x189   :  { %3570 = vmatpush2.bf16.msra.mxu0 %v12703_v63  ;;  %v12768_v63 = vld [vmem:[#allocation2 + $0xb0c] ss:$40 sps:$4 sm:$0xff]  }
 0x18a   :  { %3640 = vmatpush2.bf16.msra.mxu1 %v12700_v62  ;;  %3662 = vmatprep.subr.bf16.mxu0 %v12711_v2  ;;  %v12763_v62 = vld [vmem:[#allocation2 + $0x978] ss:$40 sps:$4 sm:$0xff]   ;;  %v12766_v2 = vld [vmem:[#allocation2 + $0xb08] ss:$40 sps:$4 sm:$0xff]  }
 0x18b   :  { %3641 = vmatprep.subr.bf16.mxu1 %v12708_v0  ;;  %v12771_v0 = vld [vmem:[#allocation2 + $0x92c] ss:$40 sps:$4 sm:$0xff]  }
 0x18c   :  { %v3245_v10 = vpop.f32.mrf.mxu0  ;;  %3572 = vmatmul.mubr.bf16.vlgmr.msra.gmra.mxu0 %v14491_v16 }
 0x18d   :  { %v3246_v12 = vadd.f32 %v3245_v10, %v14515_v17  ;;  %3663 = vmatpush1.bf16.msra.mxu0 %v12709_v5  ;;  %3694 = vmatprep.mubr.bf16.mxu0 %v14460_v51  ;;  %v12721_v17 = vld [vmem:[#allocation2 + $0x6a8] ss:$40 sps:$4 sm:$0xff]   ;;  %v12774_v5 = vld [vmem:[#allocation2 + $0xabc] ss:$40 sps:$4 sm:$0xff]   ;;  %v12775_v10 = vld [vmem:[#allocation2 + $0x8d8] ss:$40 sps:$4 sm:$0xff]  }
 0x18e   :  { %3642 = vmatpush2.bf16.msra.mxu1 %v12706_v3  ;;  %v3247_v18 = vpop.f32.mrf.mxu0  ;;  %3664 = vmatprep.subr.bf16.mxu0 %v12717_v9  ;;  %v12769_v3 = vld [vmem:[#allocation2 + $0x928] ss:$40 sps:$4 sm:$0xff]   ;;  %v12772_v9 = vld [vmem:[#allocation2 + $0xab8] ss:$40 sps:$4 sm:$0xff]  }
 0x18f   :  { %3643 = vmatprep.subr.bf16.mxu1 %v12714_v8  ;;  %v14537_v20 = vadd.f32 %v14520_v1, %v3246_v12  ;;  %v3248_v21 = vadd.f32 %v3247_v18, %v14518_v58  ;;  %v12727_v58 = vld [vmem:[#allocation2 + $0x658] ss:$40 sps:$4 sm:$0xff]   ;;  %v12777_v8 = vld [vmem:[#allocation2 + $0x8dc] ss:$40 sps:$4 sm:$0xff]   ;;  %v12783_v12 = vld [vmem:[#allocation2 + $0x88c] ss:$40 sps:$4 sm:$0xff]  }
 0x190   :  { %v3249_v23 = vpop.f32.mrf.mxu0  ;;  %v12786_v18 = vld [vmem:[#allocation2 + $0xa1c] ss:$40 sps:$4 sm:$0xff]  }
 0x191   :  { %v14542_v26 = vadd.f32 %v14522_v4, %v3248_v21  ;;  %3665 = vmatpush1.bf16.msra.mxu0 %v12715_v14  ;;  %v12778_v14 = vld [vmem:[#allocation2 + $0xa68] ss:$40 sps:$4 sm:$0xff]   ;;  %v12784_v21 = vld [vmem:[#allocation2 + $0xa18] ss:$40 sps:$4 sm:$0xff]  }
 0x192   :  { %3644 = vmatpush2.bf16.msra.mxu1 %v12712_v11  ;;  %v3250_v28 = vpop.f32.mrf.mxu0  ;;  %3666 = vmatprep.subr.bf16.mxu0 %v12723_v19  ;;  %v12780_v11 = vld [vmem:[#allocation2 + $0xa6c] ss:$40 sps:$4 sm:$0xff]   ;;  %v12789_v19 = vld [vmem:[#allocation2 + $0x83c] ss:$40 sps:$4 sm:$0xff]   ;;  %v12787_v23 = vld [vmem:[#allocation2 + $0x838] ss:$40 sps:$4 sm:$0xff]  }
 0x193   :  { %3645 = vmatprep.subr.bf16.mxu1 %v12720_v15  ;;  %v12781_v15 = vld [vmem:[#allocation2 + $0x888] ss:$40 sps:$4 sm:$0xff]  }
 0x194   :  { %v12793_v28 = vld [vmem:[#allocation2 + $0x7e8] ss:$40 sps:$4 sm:$0xff]  }
 0x195   :  { %v14544_v1 = vpop.f32.mrf.mxu1  ;;  %3667 = vmatpush1.bf16.msra.mxu0 %v12721_v17  ;;  %v12795_v17 = vld [vmem:[#allocation2 + $0x7ec] ss:$40 sps:$4 sm:$0xff]  }
 0x196   :  { %3646 = vmatpush2.bf16.msra.mxu1 %v12718_v24  ;;  %3668 = vmatprep.subr.bf16.mxu0 %v12729_v29  ;;  %v12792_v24 = vld [vmem:[#allocation2 + $0xecc] ss:$40 sps:$4 sm:$0xff]   ;;  %v12798_v29 = vld [vmem:[#allocation2 + $0xe7c] ss:$40 sps:$4 sm:$0xff]  }
 0x197   :  { %3647 = vmatprep.subr.bf16.mxu1 %v12726_v27  ;;  %v14546_v4 = vpop.f32.mrf.mxu1  ;;  %v12790_v27 = vld [vmem:[#allocation2 + $0xec8] ss:$40 sps:$4 sm:$0xff]  }
 0x199   :  { %v3331_v37 = vpop.f32.mrf.mxu1  ;;  %3669 = vmatpush1.bf16.msra.mxu0 %v12727_v58  ;;  %v611_v58 = vsub.s32 2, %v14504_v25 }
 0x19a   :  { %3648 = vmatpush2.bf16.msra.mxu1 %v12724_v30  ;;  %3670 = vmatprep.subr.bf16.mxu0 %v12735_v34  ;;  %v12801_v30 = vld [vmem:[#allocation2 + $0x79c] ss:$40 sps:$4 sm:$0xff]   ;;  %v12796_v34 = vld [vmem:[#allocation2 + $0xe78] ss:$40 sps:$4 sm:$0xff]   ;;  %v12804_v37 = vld [vmem:[#allocation2 + $0xe2c] ss:$40 sps:$4 sm:$0xff]  }
 0x19b   :  { %3649 = vmatprep.subr.bf16.mxu1 %v12732_v31  ;;  %v3332_v41 = vpop.f32.mrf.mxu1  ;;  %v615_v31 = vsub.s32 3, %v14504_v25 }
 0x19d   :  { %3671 = vmatpush1.bf16.msra.mxu0 %v12733_v38  ;;  %v12807_v38 = vld [vmem:[#allocation2 + $0xf1c] ss:$40 sps:$4 sm:$0xff]  }
 0x19e   :  { %3650 = vmatpush2.bf16.msra.mxu1 %v12730_v36  ;;  %3672 = vmatprep.subr.bf16.mxu0 %v12741_v40  ;;  %v12799_v36 = vld [vmem:[#allocation2 + $0x798] ss:$40 sps:$4 sm:$0xff]  }
 0x19f   :  { %3651 = vmatprep.subr.bf16.mxu1 %v12738_v39  ;;  %v14552_v39 = vld [vmem:[#allocation4] sm:$0xff] }
 0x1a0   :  { %v612_v40 = vrot.slane %v14552_v39, %v611_v58  ;;  %v616_v41 = vrot.slane %v14552_v39, %v615_v31 }
 0x1a1   :  { %3673 = vmatpush1.bf16.msra.mxu0 %v12739_v43  ;;  %v12805_v43 = vld [vmem:[#allocation2 + $0xf18] ss:$40 sps:$4 sm:$0xff]  }
 0x1a2   :  { %3652 = vmatpush2.bf16.msra.mxu1 %v12736_v42  ;;  %3674 = vmatprep.subr.bf16.mxu0 %v12747_v45  ;;  %v12802_v42 = vld [vmem:[#allocation2 + $0xe28] ss:$40 sps:$4 sm:$0xff]   ;;  %v12816_v45 = vld [vmem:[#allocation2 + $0x254] ss:$40 sps:$4 sm:$0xff]  }
 0x1a3   :  { %3703 = vmatprep.subr.bf16.mxu1 %v12744_v44  ;;  %v12810_v44 = vld [vmem:[#allocation2 + $0xddc] ss:$40 sps:$4 sm:$0xff]  }
 0x1a5   :  { %3654 = vmatmul.mubr.bf16.vlgmr.msra.gmra.mxu1 %v14464_v6  ;;  %3675 = vmatpush1.bf16.msra.mxu0 %v12745_v48 }
 0x1a6   :  { %3704 = vmatpush1.bf16.msra.mxu1 %v12742_v46  ;;  %3676 = vmatprep.subr.bf16.mxu0 %v12753_v50  ;;  %v3328_v46 = vadd.f32 %v14544_v1, %v612_v40  ;;  %v12814_v1 = vld [vmem:[#allocation2 + $0x250] ss:$40 sps:$4 sm:$0xff]   ;;  %v12849_v40 = vld [vmem:[#allocation2 + $0x6b4] ss:$40 sps:$4 sm:$0xff]  }
 0x1a7   :  { %3705 = vmatprep.subr.bf16.mxu1 %v12750_v49  ;;  %3735 = vmatprep.mubr.bf16.mxu1 %v14486_v33  ;;  %v3330_v49 = vadd.f32 %v14546_v4, %v616_v41  ;;  %v12852_v41 = vld [vmem:[#allocation2 + $0x74] ss:$40 sps:$4 sm:$0xff]  }
 0x1a9   :  { %3677 = vmatpush1.bf16.msra.mxu0 %v12751_v53 }
 0x1aa   :  { %3706 = vmatpush1.bf16.msra.mxu1 %v12748_v52  ;;  %3678 = vmatprep.subr.bf16.mxu0 %v12759_v55  ;;  %v12808_v52 = vld [vmem:[#allocation2 + $0xdd8] ss:$40 sps:$4 sm:$0xff]  }
 0x1ab   :  { %3707 = vmatprep.subr.bf16.mxu1 %v12756_v54  ;;  %v12813_v54 = vld [vmem:[#allocation2 + $0xd8c] ss:$40 sps:$4 sm:$0xff]  }
 0x1ad   :  { %3679 = vmatpush2.bf16.msra.mxu0 %v12757_v57 }
 0x1ae   :  { %3708 = vmatpush1.bf16.msra.mxu1 %v12754_v56  ;;  %3680 = vmatprep.subr.bf16.mxu0 %v12765_v60  ;;  %v12811_v56 = vld [vmem:[#allocation2 + $0xd88] ss:$40 sps:$4 sm:$0xff]   ;;  %v12819_v60 = vld [vmem:[#allocation2 + $0xd3c] ss:$40 sps:$4 sm:$0xff]  }
 0x1af   :  { %3709 = vmatprep.subr.bf16.mxu1 %v12762_v59 }
 0x1b1   :  { %3681 = vmatpush2.bf16.msra.mxu0 %v12763_v62 }
 0x1b2   :  { %3710 = vmatpush1.bf16.msra.mxu1 %v12760_v61  ;;  %3682 = vmatprep.subr.bf16.mxu0 %v12771_v0  ;;  %v12822_v61 = vld [vmem:[#allocation2 + $0x204] ss:$40 sps:$4 sm:$0xff]   ;;  %v12820_v0 = vld [vmem:[#allocation2 + $0x200] ss:$40 sps:$4 sm:$0xff]  }
 0x1b3   :  { %3711 = vmatprep.subr.bf16.mxu1 %v12768_v63  ;;  %v12817_v63 = vld [vmem:[#allocation2 + $0xd38] ss:$40 sps:$4 sm:$0xff]  }
 0x1b5   :  { %3683 = vmatpush2.bf16.msra.mxu0 %v12769_v3 }
 0x1b6   :  { %3712 = vmatpush1.bf16.msra.mxu1 %v12766_v2  ;;  %3684 = vmatprep.subr.bf16.mxu0 %v12777_v8  ;;  %v12825_v2 = vld [vmem:[#allocation2 + $0xcec] ss:$40 sps:$4 sm:$0xff]  }
 0x1b7   :  { %3713 = vmatprep.subr.bf16.mxu1 %v12774_v5  ;;  %v12828_v5 = vld [vmem:[#allocation2 + $0x1b4] ss:$40 sps:$4 sm:$0xff]  }
 0x1b9   :  { %3685 = vmatpush2.bf16.msra.mxu0 %v12775_v10  ;;  %v12823_v10 = vld [vmem:[#allocation2 + $0xce8] ss:$40 sps:$4 sm:$0xff]  }
 0x1ba   :  { %3714 = vmatpush1.bf16.msra.mxu1 %v12772_v9  ;;  %3686 = vmatprep.subr.bf16.mxu0 %v12783_v12  ;;  %v12831_v12 = vld [vmem:[#allocation2 + $0xc9c] ss:$40 sps:$4 sm:$0xff]  }
 0x1bb   :  { %3715 = vmatprep.subr.bf16.mxu1 %v12780_v11  ;;  %v12826_v11 = vld [vmem:[#allocation2 + $0x1b0] ss:$40 sps:$4 sm:$0xff]  }
 0x1bd   :  { %3687 = vmatpush2.bf16.msra.mxu0 %v12781_v15 }
 0x1be   :  { %3716 = vmatpush1.bf16.msra.mxu1 %v12778_v14  ;;  %3688 = vmatprep.subr.bf16.mxu0 %v12789_v19  ;;  %v12834_v14 = vld [vmem:[#allocation2 + $0x164] ss:$40 sps:$4 sm:$0xff]   ;;  %v12829_v19 = vld [vmem:[#allocation2 + $0xc98] ss:$40 sps:$4 sm:$0xff]  }
 0x1bf   :  { %3717 = vmatprep.subr.bf16.mxu1 %v12786_v18 }
 0x1c1   :  { %3689 = vmatpush2.bf16.msra.mxu0 %v12787_v23  ;;  %v12837_v23 = vld [vmem:[#allocation2 + $0x754] ss:$40 sps:$4 sm:$0xff]  }
 0x1c2   :  { %3718 = vmatpush1.bf16.msra.mxu1 %v12784_v21  ;;  %3690 = vmatprep.subr.bf16.mxu0 %v12795_v17  ;;  %v12832_v21 = vld [vmem:[#allocation2 + $0x160] ss:$40 sps:$4 sm:$0xff]  }
 0x1c3   :  { %3719 = vmatprep.subr.bf16.mxu1 %v12792_v24 }
 0x1c5   :  { %3691 = vmatpush2.bf16.msra.mxu0 %v12793_v28  ;;  %v12835_v28 = vld [vmem:[#allocation2 + $0x750] ss:$40 sps:$4 sm:$0xff]  }
 0x1c6   :  { %3720 = vmatpush2.bf16.msra.mxu1 %v12790_v27  ;;  %3692 = vmatprep.subr.bf16.mxu0 %v12801_v30  ;;  %v12843_v30 = vld [vmem:[#allocation2 + $0x704] ss:$40 sps:$4 sm:$0xff]  }
 0x1c7   :  { %3721 = vmatprep.subr.bf16.mxu1 %v12798_v29  ;;  %v12838_v29 = vld [vmem:[#allocation2 + $0x110] ss:$40 sps:$4 sm:$0xff]  }
 0x1c9   :  { %3693 = vmatpush2.bf16.msra.mxu0 %v12799_v36 }
 0x1ca   :  { %3722 = vmatpush2.bf16.msra.mxu1 %v12796_v34  ;;  %3758 = vmatprep.subr.bf16.mxu0 %v12807_v38  ;;  %v12846_v34 = vld [vmem:[#allocation2 + $0xc4] ss:$40 sps:$4 sm:$0xff]   ;;  %v12844_v38 = vld [vmem:[#allocation2 + $0xc0] ss:$40 sps:$4 sm:$0xff]  }
 0x1cb   :  { %3723 = vmatprep.subr.bf16.mxu1 %v12804_v37  ;;  %v12841_v37 = vld [vmem:[#allocation2 + $0x700] ss:$40 sps:$4 sm:$0xff]  }
 0x1cc   :  { %v3368_v48 = vpop.f32.mrf.mxu0  ;;  %3695 = vmatmul.mubr.bf16.vlgmr.msra.gmra.mxu0 %v14466_v7 }
 0x1cd   :  { %v3369_v50 = vadd.f32 %v3368_v48, %v3328_v46  ;;  %3759 = vmatpush1.bf16.msra.mxu0 %v12805_v43  ;;  %3776 = vmatprep.mubr.bf16.mxu0 %v14393_v13  ;;  %v12850_v43 = vld [vmem:[#allocation2 + $0x70] ss:$40 sps:$4 sm:$0xff]   ;;  %v12853_v46 = vld [vmem:[#allocation2 + $0x660] ss:$40 sps:$4 sm:$0xff]  }
 0x1ce   :  { %3724 = vmatpush2.bf16.msra.mxu1 %v12802_v42  ;;  %v3370_v53 = vpop.f32.mrf.mxu0  ;;  %3785 = vmatprep.subr.bf16.mxu0 %v12816_v45  ;;  %v12847_v42 = vld [vmem:[#allocation2 + $0x6b0] ss:$40 sps:$4 sm:$0xff]   ;;  %v12858_v45 = vld [vmem:[#allocation2 + $0x24] ss:$40 sps:$4 sm:$0xff]   ;;  %v12856_v48 = vld [vmem:[#allocation2 + $0x20] ss:$40 sps:$4 sm:$0xff]  }
 0x1cf   :  { %3725 = vmatprep.subr.bf16.mxu1 %v12810_v44  ;;  %v3371_v55 = vadd.f32 %v3370_v53, %v3330_v49  ;;  %v12855_v44 = vld [vmem:[#allocation2 + $0x664] ss:$40 sps:$4 sm:$0xff]   ;;  %v12861_v49 = vld [vmem:[#allocation2 + $0x614] ss:$40 sps:$4 sm:$0xff]   ;;  %v12862_v53 = vld [vmem:[#allocation2 + $0x4d0] ss:$40 sps:$4 sm:$0xff]  }
 0x1d0   :  { %v3372_v57 = vpop.f32.mrf.mxu0 }
 0x1d1   :  { %v12873_v57 = vld [vmem:[#allocation2 + $0x574] ss:$40 sps:$4 sm:$0xff]  }
 0x1d2   :  { %3726 = vmatpush2.bf16.msra.mxu1 %v12808_v52  ;;  %v3373_v59 = vpop.f32.mrf.mxu0  ;;  %v12859_v52 = vld [vmem:[#allocation2 + $0x610] ss:$40 sps:$4 sm:$0xff]  }
 0x1d3   :  { %3727 = vmatprep.subr.bf16.mxu1 %v12813_v54  ;;  %v12870_v54 = vld [vmem:[#allocation2 + $0x484] ss:$40 sps:$4 sm:$0xff]   ;;  %v12871_v59 = vld [vmem:[#allocation2 + $0x570] ss:$40 sps:$4 sm:$0xff]  }
 0x1d4   :  { %11224 = vmatmul.mubr.msk.bf16.vlgmr.msra.gmra.mxu0 %vm3125_vm0, %v14529_v22 }
 0x1d5   :  { %v3409_v4 = vpop.f32.mrf.mxu1  ;;  %3786 = vmatpush1.bf16.msra.mxu0 %v12814_v1  ;;  %3817 = vmatprep.mubr.bf16.mxu0 %v14455_v47  ;;  %v12840_v47 = vld [vmem:[#allocation2 + $0x114] ss:$40 sps:$4 sm:$0xff]  }
 0x1d6   :  { %3728 = vmatpush2.bf16.msra.mxu1 %v12811_v56  ;;  %v3410_v62 = vadd.f32 %v3409_v4, %v3369_v50  ;;  %3787 = vmatprep.subr.bf16.mxu0 %v12822_v61  ;;  %v12864_v50 = vld [vmem:[#allocation2 + $0x4d4] ss:$40 sps:$4 sm:$0xff]   ;;  %v12868_v56 = vld [vmem:[#allocation2 + $0x480] ss:$40 sps:$4 sm:$0xff]   ;;  %v12879_v61 = vld [vmem:[#allocation2 + $0x524] ss:$40 sps:$4 sm:$0xff]  }
 0x1d7   :  { %v3411_v3 = vpop.f32.mrf.mxu1  ;;  %3729 = vmatprep.subr.bf16.mxu1 %v12819_v60  ;;  %v12876_v1 = vld [vmem:[#allocation2 + $0x434] ss:$40 sps:$4 sm:$0xff]   ;;  %v12874_v60 = vld [vmem:[#allocation2 + $0x430] ss:$40 sps:$4 sm:$0xff]   ;;  %v12882_v4 = vld [vmem:[#allocation2 + $0x3e4] ss:$40 sps:$4 sm:$0xff]  }
 0x1d8   :  { %v3412_v8 = vadd.f32 %v3411_v3, %v3371_v55  ;;  %v12865_v55 = vld [vmem:[#allocation2 + $0x5c0] ss:$40 sps:$4 sm:$0xff]   ;;  %v12883_v3 = vld [vmem:[#allocation2 + $0x9d0] ss:$40 sps:$4 sm:$0xff]  }
 0x1d9   :  { %v3413_v9 = vpop.f32.mrf.mxu1  ;;  %3788 = vmatpush1.bf16.msra.mxu0 %v12820_v0  ;;  %v12885_v0 = vld [vmem:[#allocation2 + $0x9d4] ss:$40 sps:$4 sm:$0xff]  }
 0x1da   :  { %3730 = vmatpush2.bf16.msra.mxu1 %v12817_v63  ;;  %3789 = vmatprep.subr.bf16.mxu0 %v12828_v5  ;;  %v12880_v63 = vld [vmem:[#allocation2 + $0x3e0] ss:$40 sps:$4 sm:$0xff]   ;;  %v12886_v5 = vld [vmem:[#allocation2 + $0x390] ss:$40 sps:$4 sm:$0xff]   ;;  %v12894_v9 = vld [vmem:[#allocation2 + $0x344] ss:$40 sps:$4 sm:$0xff]  }
 0x1db   :  { %v3414_v22 = vpop.f32.mrf.mxu1  ;;  %3731 = vmatprep.subr.bf16.mxu1 %v12825_v2  ;;  %v12888_v2 = vld [vmem:[#allocation2 + $0x394] ss:$40 sps:$4 sm:$0xff]  }
 0x1dc   :  { %v12900_v22 = vld [vmem:[#allocation2 + $0x2f4] ss:$40 sps:$4 sm:$0xff]  }
 0x1dd   :  { %v3450_v15 = vpop.f32.mrf.mxu1  ;;  %3790 = vmatpush1.bf16.msra.mxu0 %v12826_v11  ;;  %v12892_v11 = vld [vmem:[#allocation2 + $0x340] ss:$40 sps:$4 sm:$0xff]  }
 0x1de   :  { %3732 = vmatpush2.bf16.msra.mxu1 %v12823_v10  ;;  %v14567_v18 = vadd.f32 %v3450_v15, %v3410_v62  ;;  %3791 = vmatprep.subr.bf16.mxu0 %v12834_v14  ;;  %v12877_v62 = vld [vmem:[#allocation2 + $0x520] ss:$40 sps:$4 sm:$0xff]   ;;  %v12895_v14 = vld [vmem:[#allocation2 + $0x930] ss:$40 sps:$4 sm:$0xff]  }
 0x1df   :  { %v3452_v24 = vpop.f32.mrf.mxu1  ;;  %3733 = vmatprep.subr.bf16.mxu1 %v12831_v12  ;;  %v12889_v10 = vld [vmem:[#allocation2 + $0x980] ss:$40 sps:$4 sm:$0xff]   ;;  %v12897_v12 = vld [vmem:[#allocation2 + $0x934] ss:$40 sps:$4 sm:$0xff]   ;;  %v12898_v15 = vld [vmem:[#allocation2 + $0x2f0] ss:$40 sps:$4 sm:$0xff]  }
 0x1e0   :  { %v14569_v17 = vadd.f32 %v3452_v24, %v3412_v8  ;;  %v12891_v8 = vld [vmem:[#allocation2 + $0x984] ss:$40 sps:$4 sm:$0xff]   ;;  %v12901_v24 = vld [vmem:[#allocation2 + $0x8e0] ss:$40 sps:$4 sm:$0xff]  }
 0x1e1   :  { %v3454_v27 = vpop.f32.mrf.mxu1  ;;  %3792 = vmatpush1.bf16.msra.mxu0 %v12832_v21  ;;  %v12906_v21 = vld [vmem:[#allocation2 + $0x2a4] ss:$40 sps:$4 sm:$0xff]  }
 0x1e2   :  { %3734 = vmatpush2.bf16.msra.mxu1 %v12829_v19  ;;  %3793 = vmatprep.subr.bf16.mxu0 %v12840_v47  ;;  %v12903_v19 = vld [vmem:[#allocation2 + $0x8e4] ss:$40 sps:$4 sm:$0xff]   ;;  %v12904_v47 = vld [vmem:[#allocation2 + $0x2a0] ss:$40 sps:$4 sm:$0xff]  }
 0x1e3   :  { %3826 = vmatprep.subr.bf16.mxu1 %v12837_v23  ;;  %v3455_v36 = vpop.f32.mrf.mxu1 }
 0x1e4   :  { %v12910_v36 = vld [vmem:[#allocation2 + $0xc50] ss:$40 sps:$4 sm:$0xff]  }
 0x1e5   :  { %3736 = vmatmul.mubr.bf16.vlgmr.msra.gmra.mxu1 %v14491_v16  ;;  %3794 = vmatpush1.bf16.msra.mxu0 %v12838_v29  ;;  %v12912_v29 = vld [vmem:[#allocation2 + $0xc54] ss:$40 sps:$4 sm:$0xff]  }
 0x1e6   :  { %3827 = vmatpush1.bf16.msra.mxu1 %v12835_v28  ;;  %3795 = vmatprep.subr.bf16.mxu0 %v12846_v34  ;;  %v12909_v28 = vld [vmem:[#allocation2 + $0x894] ss:$40 sps:$4 sm:$0xff]   ;;  %v12907_v34 = vld [vmem:[#allocation2 + $0x890] ss:$40 sps:$4 sm:$0xff]  }
 0x1e7   :  { %3828 = vmatprep.subr.bf16.mxu1 %v12843_v30  ;;  %3858 = vmatprep.mubr.bf16.mxu1 %v14460_v51  ;;  %v12867_v51 = vld [vmem:[#allocation2 + $0x5c4] ss:$40 sps:$4 sm:$0xff]  }
 0x1e9   :  { %3796 = vmatpush1.bf16.msra.mxu0 %v12844_v38  ;;  %v12915_v38 = vld [vmem:[#allocation2 + $0x844] ss:$40 sps:$4 sm:$0xff]  }
 0x1ea   :  { %3829 = vmatpush1.bf16.msra.mxu1 %v12841_v37  ;;  %3797 = vmatprep.subr.bf16.mxu0 %v12852_v41  ;;  %v619_v41 = vsub.s32 4, %v14504_v25 }
 0x1eb   :  { %3830 = vmatprep.subr.bf16.mxu1 %v12849_v40  ;;  %v12918_v40 = vld [vmem:[#allocation2 + $0xc04] ss:$40 sps:$4 sm:$0xff]  }
 0x1ed   :  { %3798 = vmatpush1.bf16.msra.mxu0 %v12850_v43  ;;  %v12913_v43 = vld [vmem:[#allocation2 + $0x840] ss:$40 sps:$4 sm:$0xff]  }
 0x1ee   :  { %3831 = vmatpush1.bf16.msra.mxu1 %v12847_v42  ;;  %3799 = vmatprep.subr.bf16.mxu0 %v12858_v45  ;;  %v623_v42 = vsub.s32 5, %v14504_v25  ;;  %v12921_v45 = vld [vmem:[#allocation2 + $0x7f4] ss:$40 sps:$4 sm:$0xff]  }
 0x1ef   :  { %3832 = vmatprep.subr.bf16.mxu1 %v12855_v44  ;;  %v12916_v44 = vld [vmem:[#allocation2 + $0xc00] ss:$40 sps:$4 sm:$0xff]  }
 0x1f1   :  { %3800 = vmatpush1.bf16.msra.mxu0 %v12856_v48  ;;  %v620_v48 = vrot.slane %v14552_v39, %v619_v41 }
 0x1f2   :  { %3833 = vmatpush1.bf16.msra.mxu1 %v12853_v46  ;;  %3801 = vmatprep.subr.bf16.mxu0 %v12864_v50  ;;  %v12924_v46 = vld [vmem:[#allocation2 + $0xbb4] ss:$40 sps:$4 sm:$0xff]   ;;  %v12922_v50 = vld [vmem:[#allocation2 + $0xbb0] ss:$40 sps:$4 sm:$0xff]  }
 0x1f3   :  { %3834 = vmatprep.subr.bf16.mxu1 %v12861_v49  ;;  %v624_v49 = vrot.slane %v14552_v39, %v623_v42  ;;  %v12936_v39 = vld [vmem:[#allocation2 + $0xf24] ss:$40 sps:$4 sm:$0xff]  }
 0x1f5   :  { %3802 = vmatpush2.bf16.msra.mxu0 %v12862_v53  ;;  %v12930_v53 = vld [vmem:[#allocation2 + $0xb64] ss:$40 sps:$4 sm:$0xff]  }
 0x1f6   :  { %3835 = vmatpush1.bf16.msra.mxu1 %v12859_v52  ;;  %3803 = vmatprep.subr.bf16.mxu0 %v12870_v54  ;;  %v12927_v52 = vld [vmem:[#allocation2 + $0x7a4] ss:$40 sps:$4 sm:$0xff]  }
 0x1f7   :  { %3836 = vmatprep.subr.bf16.mxu1 %v12867_v51 }
 0x1f9   :  { %3804 = vmatpush2.bf16.msra.mxu0 %v12868_v56 }
 0x1fa   :  { %3837 = vmatpush1.bf16.msra.mxu1 %v12865_v55  ;;  %3805 = vmatprep.subr.bf16.mxu0 %v12876_v1  ;;  %v12933_v1 = vld [vmem:[#allocation2 + $0xb14] ss:$40 sps:$4 sm:$0xff]  }
 0x1fb   :  { %3838 = vmatprep.subr.bf16.mxu1 %v12873_v57  ;;  %v12928_v57 = vld [vmem:[#allocation2 + $0xb60] ss:$40 sps:$4 sm:$0xff]  }
 0x1fd   :  { %3806 = vmatpush2.bf16.msra.mxu0 %v12874_v60 }
 0x1fe   :  { %3839 = vmatpush1.bf16.msra.mxu1 %v12871_v59  ;;  %3807 = vmatprep.subr.bf16.mxu0 %v12882_v4  ;;  %v12931_v4 = vld [vmem:[#allocation2 + $0xb10] ss:$40 sps:$4 sm:$0xff]  }
 0x1ff   :  { %3840 = vmatprep.subr.bf16.mxu1 %v12879_v61 }
 0x201   :  { %3808 = vmatpush2.bf16.msra.mxu0 %v12880_v63  ;;  %v12939_v63 = vld [vmem:[#allocation2 + $0xac4] ss:$40 sps:$4 sm:$0xff]  }
 0x202   :  { %3841 = vmatpush1.bf16.msra.mxu1 %v12877_v62  ;;  %3809 = vmatprep.subr.bf16.mxu0 %v12888_v2  ;;  %v12934_v62 = vld [vmem:[#allocation2 + $0xf20] ss:$40 sps:$4 sm:$0xff]  }
 0x203   :  { %3842 = vmatprep.subr.bf16.mxu1 %v12885_v0  ;;  %v12942_v0 = vld [vmem:[#allocation6 + $0x234] ss:$40 sps:$4 sm:$0xff]  }
 0x205   :  { %3810 = vmatpush2.bf16.msra.mxu0 %v12886_v5  ;;  %v12937_v5 = vld [vmem:[#allocation2 + $0xac0] ss:$40 sps:$4 sm:$0xff]  }
 0x206   :  { %3843 = vmatpush2.bf16.msra.mxu1 %v12883_v3  ;;  %3811 = vmatprep.subr.bf16.mxu0 %v12894_v9 }
 0x207   :  { %3844 = vmatprep.subr.bf16.mxu1 %v12891_v8  ;;  %v12945_v8 = vld [vmem:[#allocation2 + $0xa74] ss:$40 sps:$4 sm:$0xff]  }
 0x209   :  { %3812 = vmatpush2.bf16.msra.mxu0 %v12892_v11  ;;  %v12940_v11 = vld [vmem:[#allocation6 + $0x230] ss:$40 sps:$4 sm:$0xff]  }
 0x20a   :  { %3845 = vmatpush2.bf16.msra.mxu1 %v12889_v10  ;;  %3813 = vmatprep.subr.bf16.mxu0 %v12900_v22  ;;  %v3950_v10 = vmax.f32 %v14542_v26, 0.0  ;;  %v12949_v26 = vld [vmem:[#allocation2 + $0xa20] ss:$40 sps:$4 sm:$0xff]  }
 0x20b   :  { %3846 = vmatprep.subr.bf16.mxu1 %v12897_v12  ;;  %v12943_v12 = vld [vmem:[#allocation2 + $0xa70] ss:$40 sps:$4 sm:$0xff]  }
 0x20c   :  { %v3491_v23 = vpop.f32.mrf.mxu0 }
 0x20d   :  { %3814 = vmatpush2.bf16.msra.mxu0 %v12898_v15  ;;  %v3492_v51 = vadd.f32 %v3491_v23, %v620_v48  ;;  %v12954_v23 = vld [vmem:[#allocation6 + $0x194] ss:$40 sps:$4 sm:$0xff]  }
 0x20e   :  { %3847 = vmatpush2.bf16.msra.mxu1 %v12895_v14  ;;  %v3493_v27 = vpop.f32.mrf.mxu0  ;;  %3815 = vmatprep.subr.bf16.mxu0 %v12906_v21  ;;  %v12948_v14 = vld [vmem:[#allocation6 + $0x1e4] ss:$40 sps:$4 sm:$0xff]   ;;  %v12946_v21 = vld [vmem:[#allocation6 + $0x1e0] ss:$40 sps:$4 sm:$0xff]   ;;  %v12978_v48 = vld [vmem:[#allocation6 + $0x54] ss:$40 sps:$4 sm:$0xff]  }
 0x20f   :  { %3848 = vmatprep.subr.bf16.mxu1 %v12903_v19  ;;  %v3494_v55 = vadd.f32 %v3493_v27, %v624_v49  ;;  %v14594_v19 = vpack.c.bf16 %v3950_v10, %v3950_v10  ;;  %v12955_v27 = vld [vmem:[#allocation2 + $0xed0] ss:$40 sps:$4 sm:$0xff]   ;;  %v12981_v49 = vld [vmem:[#allocation2 + $0xd94] ss:$40 sps:$4 sm:$0xff]  }
 0x210   :  { %v3495_v30 = vpop.f32.mrf.mxu0 }
 0x211   :  { %3816 = vmatpush2.bf16.msra.mxu0 %v12904_v47  ;;  %v12957_v47 = vld [vmem:[#allocation2 + $0xed4] ss:$40 sps:$4 sm:$0xff]  }
 0x212   :  { %3849 = vmatpush2.bf16.msra.mxu1 %v12901_v24  ;;  %v3496_v37 = vpop.f32.mrf.mxu0  ;;  %3867 = vmatprep.subr.bf16.mxu0 %v12912_v29  ;;  %v12952_v24 = vld [vmem:[#allocation6 + $0x190] ss:$40 sps:$4 sm:$0xff]   ;;  %v12958_v30 = vld [vmem:[#allocation6 + $0x140] ss:$40 sps:$4 sm:$0xff]  }
 0x213   :  { %3850 = vmatprep.subr.bf16.mxu1 %v12909_v28  ;;  %v12960_v28 = vld [vmem:[#allocation6 + $0x144] ss:$40 sps:$4 sm:$0xff]  }
 0x214   :  { %3818 = vmatmul.mubr.bf16.vlgmr.msra.gmra.mxu0 %v14464_v6  ;;  %v12919_v6 = vld [vmem:[#allocation2 + $0x7f0] ss:$40 sps:$4 sm:$0xff]   ;;  %v12963_v29 = vld [vmem:[#allocation2 + $0xe84] ss:$40 sps:$4 sm:$0xff]   ;;  %v12969_v37 = vld [vmem:[#allocation2 + $0xe34] ss:$40 sps:$4 sm:$0xff]  }
 0x215   :  { %3868 = vmatpush1.bf16.msra.mxu0 %v12910_v36  ;;  %3899 = vmatprep.mubr.bf16.mxu0 %v14486_v33  ;;  %v12925_v33 = vld [vmem:[#allocation2 + $0x7a0] ss:$40 sps:$4 sm:$0xff]   ;;  %v12966_v36 = vld [vmem:[#allocation6 + $0xf4] ss:$40 sps:$4 sm:$0xff]  }
 0x216   :  { %3851 = vmatpush2.bf16.msra.mxu1 %v12907_v34  ;;  %3869 = vmatprep.subr.bf16.mxu0 %v12918_v40  ;;  %v12961_v34 = vld [vmem:[#allocation2 + $0xe80] ss:$40 sps:$4 sm:$0xff]   ;;  %v12967_v40 = vld [vmem:[#allocation2 + $0xe30] ss:$40 sps:$4 sm:$0xff]  }
 0x217   :  { %3852 = vmatprep.subr.bf16.mxu1 %v12915_v38  ;;  %v12964_v38 = vld [vmem:[#allocation6 + $0xf0] ss:$40 sps:$4 sm:$0xff]  }
 0x219   :  { %3870 = vmatpush1.bf16.msra.mxu0 %v12916_v44  ;;  %v12975_v44 = vld [vmem:[#allocation2 + $0xde4] ss:$40 sps:$4 sm:$0xff]  }
 0x21a   :  { %3853 = vmatpush2.bf16.msra.mxu1 %v12913_v43  ;;  %3871 = vmatprep.subr.bf16.mxu0 %v12924_v46  ;;  %v12972_v43 = vld [vmem:[#allocation6 + $0xa4] ss:$40 sps:$4 sm:$0xff]  }
 0x21b   :  { %3854 = vmatprep.subr.bf16.mxu1 %v12921_v45  ;;  %v12970_v45 = vld [vmem:[#allocation6 + $0xa0] ss:$40 sps:$4 sm:$0xff]  }
 0x21c   :  { %v12973_v46 = vld [vmem:[#allocation2 + $0xde0] ss:$40 sps:$4 sm:$0xff]  }
 0x21d   :  { %v3532_v54 = vpop.f32.mrf.mxu1  ;;  %3872 = vmatpush1.bf16.msra.mxu0 %v12922_v50  ;;  %v12979_v50 = vld [vmem:[#allocation2 + $0xd90] ss:$40 sps:$4 sm:$0xff]  }
 0x21e   :  { %v14583_v56 = vadd.f32 %v3532_v54, %v3492_v51  ;;  %3855 = vmatpush2.bf16.msra.mxu1 %v12919_v6  ;;  %3873 = vmatprep.subr.bf16.mxu0 %v12930_v53  ;;  %v12976_v6 = vld [vmem:[#allocation6 + $0x50] ss:$40 sps:$4 sm:$0xff]   ;;  %v12982_v51 = vld [vmem:[#allocation6] ss:$40 sps:$4 sm:$0xff]  }
 0x21f   :  { %v3534_v59 = vpop.f32.mrf.mxu1  ;;  %3856 = vmatprep.subr.bf16.mxu1 %v12927_v52  ;;  %v12984_v52 = vld [vmem:[#allocation6 + $0x4] ss:$40 sps:$4 sm:$0xff]  }
 0x220   :  { %v14585_v60 = vadd.f32 %v3534_v59, %v3494_v55  ;;  %v12987_v53 = vld [vmem:[#allocation2 + $0xd44] ss:$40 sps:$4 sm:$0xff]   ;;  %v12985_v54 = vld [vmem:[#allocation2 + $0xd40] ss:$40 sps:$4 sm:$0xff]  }
 0x221   :  { %v3536_v61 = vpop.f32.mrf.mxu1  ;;  %3874 = vmatpush1.bf16.msra.mxu0 %v12928_v57  ;;  %v12990_v55 = vld [vmem:[#allocation6 + $0x4b4] ss:$40 sps:$4 sm:$0xff]   ;;  %v12988_v57 = vld [vmem:[#allocation6 + $0x4b0] ss:$40 sps:$4 sm:$0xff]   ;;  %v12996_v59 = vld [vmem:[#allocation6 + $0x464] ss:$40 sps:$4 sm:$0xff]  }
 0x222   :  { %3857 = vmatpush2.bf16.msra.mxu1 %v12925_v33  ;;  %3875 = vmatprep.subr.bf16.mxu0 %v12933_v1  ;;  %v12993_v33 = vld [vmem:[#allocation2 + $0xcf4] ss:$40 sps:$4 sm:$0xff]   ;;  %v12991_v1 = vld [vmem:[#allocation2 + $0xcf0] ss:$40 sps:$4 sm:$0xff]  }
 0x223   :  { %3922 = vmatprep.subr.bf16.mxu1 %v12936_v39  ;;  %v3537_v2 = vpop.f32.mrf.mxu1  ;;  %v12999_v39 = vld [vmem:[#allocation2 + $0xca4] ss:$40 sps:$4 sm:$0xff]  }
 0x224   :  { %v12994_v61 = vld [vmem:[#allocation6 + $0x460] ss:$40 sps:$4 sm:$0xff]   ;;  %v13002_v2 = vld [vmem:[#allocation6 + $0x414] ss:$40 sps:$4 sm:$0xff]  }
 0x225   :  { %3859 = vmatmul.mubr.bf16.vlgmr.msra.gmra.mxu1 %v14466_v7  ;;  %v14588_v3 = vpop.f32.mrf.mxu1  ;;  %3876 = vmatpush1.bf16.msra.mxu0 %v12931_v4  ;;  %v12951_v7 = vld [vmem:[#allocation2 + $0xa24] ss:$40 sps:$4 sm:$0xff]  }
 0x226   :  { %3923 = vmatpush1.bf16.msra.mxu1 %v12934_v62  ;;  %3877 = vmatprep.subr.bf16.mxu0 %v12939_v63  ;;  %v12997_v62 = vld [vmem:[#allocation2 + $0xca0] ss:$40 sps:$4 sm:$0xff]  }
 0x227   :  { %3940 = vmatprep.mubr.bf16.mxu1 %v14393_v13  ;;  %v14591_v9 = vpop.f32.mrf.mxu1  ;;  %8823 = vmatprep.subr.bf16.mxu1 %v12942_v0  ;;  %v14252_v13 = vld [vmem:[%s14827_s0 + $0x18] ss:$0 sps:$4 sm:$0xff]  }
 0x229   :  { %v3618_v22 = vpop.f32.mrf.mxu1  ;;  %3878 = vmatpush1.bf16.msra.mxu0 %v12937_v5  ;;  %v13005_v5 = vld [vmem:[#allocation6 + $0x734] ss:$40 sps:$4 sm:$0xff]  }
 0x22a   :  { %3879 = vmatprep.subr.bf16.mxu0 %v12945_v8  ;;  %v13003_v22 = vld [vmem:[#allocation6 + $0x730] ss:$40 sps:$4 sm:$0xff]  }
 0x22b   :  { %v3619_v15 = vpop.f32.mrf.mxu1 }
 0x22d   :  { %11225 = vmatmul.mubr.msk.bf16.vlgmr.msra.gmra.mxu1 %vm3125_vm0, %v14252_v13  ;;  %3880 = vmatpush1.bf16.msra.mxu0 %v12943_v12  ;;  %v13009_v13 = vld [vmem:[#allocation6 + $0x6e0] ss:$40 sps:$4 sm:$0xff]  }
 0x22e   :  { %8824 = vmatpush1.bf16.msra.mxu1 %v12940_v11  ;;  %8855 = vmatprep.mubr.bf16.mxu1 %v14594_v19  ;;  %v13000_v11 = vld [vmem:[#allocation6 + $0x410] ss:$40 sps:$4 sm:$0xff]  }
 0x22f   :  { %8825 = vmatprep.subr.bf16.mxu1 %v12948_v14  ;;  %3881 = vmatprep.subr.bf16.mxu0 %v12951_v7  ;;  %v13008_v14 = vld [vmem:[#allocation6 + $0x3c4] ss:$40 sps:$4 sm:$0xff]   ;;  %v3952_v7 = vmax.f32 %v14569_v17, 0.0  ;;  %v13012_v17 = vld [vmem:[#allocation6 + $0x370] ss:$40 sps:$4 sm:$0xff]  }
 0x231   :  { %3882 = vmatpush1.bf16.msra.mxu0 %v12949_v26  ;;  %v14610_v26 = vpack.c.bf16 %v3952_v7, %v3952_v7  ;;  %v13069_v7 = vld [vmem:[#allocation6 + $0x8c0] ss:$40 sps:$4 sm:$0xff]  }
 0x232   :  { %8826 = vmatpush1.bf16.msra.mxu1 %v12946_v21  ;;  %3883 = vmatprep.subr.bf16.mxu0 %v12957_v47  ;;  %v13011_v21 = vld [vmem:[#allocation6 + $0x6e4] ss:$40 sps:$4 sm:$0xff]  }
 0x233   :  { %8827 = vmatprep.subr.bf16.mxu1 %v12954_v23  ;;  %v13017_v23 = vld [vmem:[#allocation6 + $0x694] ss:$40 sps:$4 sm:$0xff]   ;;  %v13023_v47 = vld [vmem:[#allocation6 + $0x644] ss:$40 sps:$4 sm:$0xff]  }
 0x235   :  { %3884 = vmatpush2.bf16.msra.mxu0 %v12955_v27  ;;  %v13018_v27 = vld [vmem:[#allocation6 + $0x320] ss:$40 sps:$4 sm:$0xff]  }
 0x236   :  { %8828 = vmatpush1.bf16.msra.mxu1 %v12952_v24  ;;  %3885 = vmatprep.subr.bf16.mxu0 %v12963_v29  ;;  %v13020_v24 = vld [vmem:[#allocation6 + $0x324] ss:$40 sps:$4 sm:$0xff]   ;;  %v13024_v29 = vld [vmem:[#allocation6 + $0x2d0] ss:$40 sps:$4 sm:$0xff]  }
 0x237   :  { %8829 = vmatprep.subr.bf16.mxu1 %v12960_v28  ;;  %v13026_v28 = vld [vmem:[#allocation6 + $0x2d4] ss:$40 sps:$4 sm:$0xff]  }
 0x239   :  { %3886 = vmatpush2.bf16.msra.mxu0 %v12961_v34  ;;  %v13027_v34 = vld [vmem:[#allocation6 + $0x5f0] ss:$40 sps:$4 sm:$0xff]  }
 0x23a   :  { %8830 = vmatpush1.bf16.msra.mxu1 %v12958_v30  ;;  %3887 = vmatprep.subr.bf16.mxu0 %v12969_v37  ;;  %v13029_v30 = vld [vmem:[#allocation6 + $0x5f4] ss:$40 sps:$4 sm:$0xff]   ;;  %v13035_v37 = vld [vmem:[#allocation6 + $0x5a4] ss:$40 sps:$4 sm:$0xff]  }
 0x23b   :  { %8831 = vmatprep.subr.bf16.mxu1 %v12966_v36  ;;  %v13032_v36 = vld [vmem:[#allocation6 + $0x284] ss:$40 sps:$4 sm:$0xff]  }
 0x23d   :  { %3888 = vmatpush2.bf16.msra.mxu0 %v12967_v40  ;;  %v13030_v40 = vld [vmem:[#allocation6 + $0x280] ss:$40 sps:$4 sm:$0xff]  }
 0x23e   :  { %8832 = vmatpush1.bf16.msra.mxu1 %v12964_v38  ;;  %3889 = vmatprep.subr.bf16.mxu0 %v12975_v44  ;;  %v3949_v44 = vmax.f32 %v14537_v20, 0.0 }
 0x23f   :  { %8833 = vmatprep.subr.bf16.mxu1 %v12972_v43  ;;  %v13033_v43 = vld [vmem:[#allocation6 + $0x5a0] ss:$40 sps:$4 sm:$0xff]  }
 0x241   :  { %3890 = vmatpush2.bf16.msra.mxu0 %v12973_v46 }
 0x242   :  { %8834 = vmatpush1.bf16.msra.mxu1 %v12970_v45  ;;  %3891 = vmatprep.subr.bf16.mxu0 %v12981_v49  ;;  %v13038_v45 = vld [vmem:[#allocation6 + $0xc34] ss:$40 sps:$4 sm:$0xff]  }
 0x243   :  { %8835 = vmatprep.subr.bf16.mxu1 %v12978_v48  ;;  %v13041_v49 = vld [vmem:[#allocation6 + $0x554] ss:$40 sps:$4 sm:$0xff]  }
 0x245   :  { %3892 = vmatpush2.bf16.msra.mxu0 %v12979_v50 }
 0x246   :  { %8836 = vmatpush1.bf16.msra.mxu1 %v12976_v6  ;;  %3893 = vmatprep.subr.bf16.mxu0 %v12987_v53  ;;  %v13036_v6 = vld [vmem:[#allocation6 + $0xc30] ss:$40 sps:$4 sm:$0xff]  }
 0x247   :  { %8837 = vmatprep.subr.bf16.mxu1 %v12984_v52  ;;  %v14620_v52 = vpack.c.bf16 %v3949_v44, %v3949_v44  ;;  %v13039_v53 = vld [vmem:[#allocation6 + $0x550] ss:$40 sps:$4 sm:$0xff]   ;;  %v13101_v44 = vld [vmem:[#allocation6 + $0x1134] ss:$40 sps:$4 sm:$0xff]  }
 0x249   :  { %3894 = vmatpush2.bf16.msra.mxu0 %v12985_v54 }
 0x24a   :  { %8838 = vmatpush1.bf16.msra.mxu1 %v12982_v51  ;;  %3895 = vmatprep.subr.bf16.mxu0 %v12993_v33  ;;  %v13044_v51 = vld [vmem:[#allocation6 + $0xbe4] ss:$40 sps:$4 sm:$0xff]  }
 0x24b   :  { %8839 = vmatprep.subr.bf16.mxu1 %v12990_v55  ;;  %v13042_v55 = vld [vmem:[#allocation6 + $0xbe0] ss:$40 sps:$4 sm:$0xff]   ;;  %v13047_v33 = vld [vmem:[#allocation6 + $0x504] ss:$40 sps:$4 sm:$0xff]  }
 0x24c   :  { %v3573_v4 = vpop.f32.mrf.mxu0 }
 0x24d   :  { %v3574_v63 = vadd.f32 %v3573_v4, %v14583_v56  ;;  %3896 = vmatpush2.bf16.msra.mxu0 %v12991_v1  ;;  %v13050_v1 = vld [vmem:[#allocation6 + $0xb94] ss:$40 sps:$4 sm:$0xff]   ;;  %v13056_v4 = vld [vmem:[#allocation6 + $0xb44] ss:$40 sps:$4 sm:$0xff]  }
 0x24e   :  { %8840 = vmatpush2.bf16.msra.mxu1 %v12988_v57  ;;  %v3575_v0 = vpop.f32.mrf.mxu0  ;;  %3897 = vmatprep.subr.bf16.mxu0 %v12999_v39  ;;  %v13045_v57 = vld [vmem:[#allocation6 + $0x500] ss:$40 sps:$4 sm:$0xff]   ;;  %v13053_v39 = vld [vmem:[#allocation6 + $0x9b4] ss:$40 sps:$4 sm:$0xff]  }
 0x24f   :  { %8841 = vmatprep.subr.bf16.mxu1 %v12996_v59  ;;  %v14603_v8 = vadd.f32 %v14588_v3, %v3574_v63  ;;  %v3576_v10 = vadd.f32 %v3575_v0, %v14585_v60  ;;  %v13006_v3 = vld [vmem:[#allocation6 + $0x3c0] ss:$40 sps:$4 sm:$0xff]   ;;  %v13014_v60 = vld [vmem:[#allocation6 + $0x374] ss:$40 sps:$4 sm:$0xff]   ;;  %v13048_v59 = vld [vmem:[#allocation6 + $0xb90] ss:$40 sps:$4 sm:$0xff]  }
 0x250   :  { %v3577_v12 = vpop.f32.mrf.mxu0  ;;  %v13059_v63 = vld [vmem:[#allocation6 + $0x964] ss:$40 sps:$4 sm:$0xff]   ;;  %v13057_v0 = vld [vmem:[#allocation6 + $0x960] ss:$40 sps:$4 sm:$0xff]  }
 0x251   :  { %v14608_v56 = vadd.f32 %v14591_v9, %v3576_v10  ;;  %3898 = vmatpush2.bf16.msra.mxu0 %v12997_v62  ;;  %v13015_v9 = vld [vmem:[#allocation6 + $0x690] ss:$40 sps:$4 sm:$0xff]   ;;  %v13054_v62 = vld [vmem:[#allocation6 + $0xb40] ss:$40 sps:$4 sm:$0xff]   ;;  %v13065_v10 = vld [vmem:[#allocation6 + $0x914] ss:$40 sps:$4 sm:$0xff]  }
 0x252   :  { %8842 = vmatpush2.bf16.msra.mxu1 %v12994_v61  ;;  %v3578_v15 = vpop.f32.mrf.mxu0  ;;  %8864 = vmatprep.subr.bf16.mxu0 %v13005_v5  ;;  %v13051_v61 = vld [vmem:[#allocation6 + $0x9b0] ss:$40 sps:$4 sm:$0xff]   ;;  %v13068_v12 = vld [vmem:[#allocation6 + $0xaa4] ss:$40 sps:$4 sm:$0xff]  }
 0x253   :  { %8843 = vmatprep.subr.bf16.mxu1 %v13002_v2  ;;  %v3954_v48 = vmax.f32 %v14608_v56, 0.0  ;;  %v13062_v2 = vld [vmem:[#allocation6 + $0xaf4] ss:$40 sps:$4 sm:$0xff]   ;;  %v13060_v5 = vld [vmem:[#allocation6 + $0xaf0] ss:$40 sps:$4 sm:$0xff]  }
 0x254   :  { %3900 = vmatmul.mubr.bf16.vlgmr.msra.gmra.mxu0 %v14491_v16  ;;  %v13021_v16 = vld [vmem:[#allocation6 + $0x640] ss:$40 sps:$4 sm:$0xff]   ;;  %v13074_v56 = vld [vmem:[#allocation6 + $0xa54] ss:$40 sps:$4 sm:$0xff]   ;;  %v13072_v15 = vld [vmem:[#allocation6 + $0xa50] ss:$40 sps:$4 sm:$0xff]  }
 0x255   :  { %8865 = vmatpush1.bf16.msra.mxu0 %v13003_v22  ;;  %8896 = vmatprep.mubr.bf16.mxu0 %v14610_v26  ;;  %v14622_v20 = vpack.c.bf16 %v3954_v48, %v3954_v48  ;;  %v13066_v22 = vld [vmem:[#allocation6 + $0xaa0] ss:$40 sps:$4 sm:$0xff]   ;;  %v13099_v48 = vld [vmem:[#allocation6 + $0x1130] ss:$40 sps:$4 sm:$0xff]  }
 0x256   :  { %8844 = vmatpush2.bf16.msra.mxu1 %v13000_v11  ;;  %8866 = vmatprep.subr.bf16.mxu0 %v13011_v21  ;;  %v13063_v11 = vld [vmem:[#allocation6 + $0x910] ss:$40 sps:$4 sm:$0xff]   ;;  %v13077_v21 = vld [vmem:[#allocation6 + $0x874] ss:$40 sps:$4 sm:$0xff]  }
 0x257   :  { %8845 = vmatprep.subr.bf16.mxu1 %v13008_v14  ;;  %v13071_v14 = vld [vmem:[#allocation6 + $0x8c4] ss:$40 sps:$4 sm:$0xff]  }
 0x259   :  { %8867 = vmatpush1.bf16.msra.mxu0 %v13009_v13  ;;  %v13080_v13 = vld [vmem:[#allocation6 + $0xa04] ss:$40 sps:$4 sm:$0xff]  }
 0x25a   :  { %8846 = vmatpush2.bf16.msra.mxu1 %v13006_v3  ;;  %8868 = vmatprep.subr.bf16.mxu0 %v13017_v23  ;;  %v13075_v3 = vld [vmem:[#allocation6 + $0x870] ss:$40 sps:$4 sm:$0xff]   ;;  %v13083_v23 = vld [vmem:[#allocation6 + $0x824] ss:$40 sps:$4 sm:$0xff]  }
 0x25b   :  { %8847 = vmatprep.subr.bf16.mxu1 %v13014_v60  ;;  %v13078_v60 = vld [vmem:[#allocation6 + $0xa00] ss:$40 sps:$4 sm:$0xff]  }
 0x25d   :  { %8869 = vmatpush1.bf16.msra.mxu0 %v13015_v9  ;;  %v13086_v9 = vld [vmem:[#allocation6 + $0xeb4] ss:$40 sps:$4 sm:$0xff]  }
 0x25e   :  { %8848 = vmatpush2.bf16.msra.mxu1 %v13012_v17  ;;  %8870 = vmatprep.subr.bf16.mxu0 %v13023_v47  ;;  %v13081_v17 = vld [vmem:[#allocation6 + $0x820] ss:$40 sps:$4 sm:$0xff]   ;;  %v13089_v47 = vld [vmem:[#allocation6 + $0x7d4] ss:$40 sps:$4 sm:$0xff]  }
 0x25f   :  { %8849 = vmatprep.subr.bf16.mxu1 %v13020_v24  ;;  %v13084_v24 = vld [vmem:[#allocation6 + $0xeb0] ss:$40 sps:$4 sm:$0xff]  }
 0x261   :  { %8871 = vmatpush1.bf16.msra.mxu0 %v13021_v16  ;;  %v13092_v16 = vld [vmem:[#allocation6 + $0xe64] ss:$40 sps:$4 sm:$0xff]  }
 0x262   :  { %8850 = vmatpush2.bf16.msra.mxu1 %v13018_v27  ;;  %8872 = vmatprep.subr.bf16.mxu0 %v13029_v30  ;;  %v13087_v27 = vld [vmem:[#allocation6 + $0x7d0] ss:$40 sps:$4 sm:$0xff]  }
 0x263   :  { %8851 = vmatprep.subr.bf16.mxu1 %v13026_v28  ;;  %v13090_v28 = vld [vmem:[#allocation6 + $0xe60] ss:$40 sps:$4 sm:$0xff]  }
 0x265   :  { %v14614_v38 = vpop.f32.mrf.mxu1  ;;  %8873 = vmatpush1.bf16.msra.mxu0 %v13027_v34 }
 0x266   :  { %8852 = vmatpush2.bf16.msra.mxu1 %v13024_v29  ;;  %8874 = vmatprep.subr.bf16.mxu0 %v13035_v37  ;;  %v13095_v29 = vld [vmem:[#allocation6 + $0x784] ss:$40 sps:$4 sm:$0xff]   ;;  %v13098_v37 = vld [vmem:[#allocation6 + $0xe14] ss:$40 sps:$4 sm:$0xff]  }
 0x267   :  { %8853 = vmatprep.subr.bf16.mxu1 %v13032_v36  ;;  %v14617_v46 = vpop.f32.mrf.mxu1  ;;  %v13093_v36 = vld [vmem:[#allocation6 + $0x780] ss:$40 sps:$4 sm:$0xff]  }
 0x269   :  { %v3659_v50 = vpop.f32.mrf.mxu1  ;;  %8875 = vmatpush1.bf16.msra.mxu0 %v13033_v43  ;;  %v13096_v43 = vld [vmem:[#allocation6 + $0xe10] ss:$40 sps:$4 sm:$0xff]  }
 0x26a   :  { %8854 = vmatpush2.bf16.msra.mxu1 %v13030_v40  ;;  %8876 = vmatprep.subr.bf16.mxu0 %v13041_v49  ;;  %v3951_v40 = vmax.f32 %v14567_v18, 0.0  ;;  %v13107_v50 = vld [vmem:[#allocation6 + $0x10e4] ss:$40 sps:$4 sm:$0xff]   ;;  %v13110_v18 = vld [vmem:[#allocation6 + $0xd74] ss:$40 sps:$4 sm:$0xff]  }
 0x26b   :  { %8905 = vmatprep.subr.bf16.mxu1 %v13038_v45  ;;  %v3660_v54 = vpop.f32.mrf.mxu1 }
 0x26d   :  { %8856 = vmatmul.mubr.bf16.vlgmr.msra.gmra.mxu1 %v14620_v52  ;;  %8877 = vmatpush1.bf16.msra.mxu0 %v13039_v53  ;;  %v14629_v53 = vpack.c.bf16 %v3951_v40, %v3951_v40  ;;  %v13135_v40 = vld [vmem:[#allocation6 + $0xf00] ss:$40 sps:$4 sm:$0xff]  }
 0x26e   :  { %8906 = vmatpush1.bf16.msra.mxu1 %v13036_v6  ;;  %8937 = vmatprep.mubr.bf16.mxu1 %v14622_v20  ;;  %v13104_v6 = vld [vmem:[#allocation6 + $0xdc4] ss:$40 sps:$4 sm:$0xff]  }
 0x26f   :  { %8907 = vmatprep.subr.bf16.mxu1 %v13044_v51  ;;  %8878 = vmatprep.subr.bf16.mxu0 %v13047_v33  ;;  %v13102_v51 = vld [vmem:[#allocation6 + $0xdc0] ss:$40 sps:$4 sm:$0xff]  }
 0x271   :  { %8879 = vmatpush1.bf16.msra.mxu0 %v13045_v57  ;;  %v13113_v57 = vld [vmem:[#allocation6 + $0x1094] ss:$40 sps:$4 sm:$0xff]  }
 0x272   :  { %8908 = vmatpush1.bf16.msra.mxu1 %v13042_v55  ;;  %8880 = vmatprep.subr.bf16.mxu0 %v13053_v39  ;;  %v13105_v55 = vld [vmem:[#allocation6 + $0x10e0] ss:$40 sps:$4 sm:$0xff]   ;;  %v631_v39 = vsub.s32 7, %v14504_v25 }
 0x273   :  { %8909 = vmatprep.subr.bf16.mxu1 %v13050_v1 }
 0x275   :  { %8881 = vmatpush2.bf16.msra.mxu0 %v13051_v61  ;;  %v13111_v61 = vld [vmem:[#allocation6 + $0x1090] ss:$40 sps:$4 sm:$0xff]  }
 0x276   :  { %8910 = vmatpush1.bf16.msra.mxu1 %v13048_v59  ;;  %8882 = vmatprep.subr.bf16.mxu0 %v13059_v63  ;;  %v13108_v59 = vld [vmem:[#allocation6 + $0xd70] ss:$40 sps:$4 sm:$0xff]   ;;  %v13119_v63 = vld [vmem:[#allocation6 + $0x1044] ss:$40 sps:$4 sm:$0xff]  }
 0x277   :  { %8911 = vmatprep.subr.bf16.mxu1 %v13056_v4  ;;  %v13116_v4 = vld [vmem:[#allocation6 + $0xd24] ss:$40 sps:$4 sm:$0xff]  }
 0x279   :  { %8883 = vmatpush2.bf16.msra.mxu0 %v13057_v0  ;;  %v13114_v0 = vld [vmem:[#allocation6 + $0xd20] ss:$40 sps:$4 sm:$0xff]  }
 0x27a   :  { %8912 = vmatpush1.bf16.msra.mxu1 %v13054_v62  ;;  %8884 = vmatprep.subr.bf16.mxu0 %v13065_v10  ;;  %v13117_v10 = vld [vmem:[#allocation6 + $0x1040] ss:$40 sps:$4 sm:$0xff]  }
 0x27b   :  { %8913 = vmatprep.subr.bf16.mxu1 %v13062_v2  ;;  %v14635_v2 = vld [vmem:[#allocation4] sm:$0xff] }
 0x27d   :  { %8885 = vmatpush2.bf16.msra.mxu0 %v13063_v11  ;;  %v13122_v11 = vld [vmem:[#allocation6 + $0xcd4] ss:$40 sps:$4 sm:$0xff]  }
 0x27e   :  { %8914 = vmatpush1.bf16.msra.mxu1 %v13060_v5  ;;  %8886 = vmatprep.subr.bf16.mxu0 %v13071_v14  ;;  %v632_v5 = vrot.slane %v14635_v2, %v631_v39 }
 0x27f   :  { %8915 = vmatprep.subr.bf16.mxu1 %v13068_v12  ;;  %v13125_v12 = vld [vmem:[#allocation6 + $0xff4] ss:$40 sps:$4 sm:$0xff]  }
 0x280   :  { %v3658_v14 = vadd.f32 %v14617_v46, %v632_v5  ;;  %v13201_v5 = vld [vmem:[#allocation6 + $0x14a0] ss:$40 sps:$4 sm:$0xff]  }
 0x281   :  { %8887 = vmatpush2.bf16.msra.mxu0 %v13069_v7  ;;  %v13123_v7 = vld [vmem:[#allocation6 + $0xff0] ss:$40 sps:$4 sm:$0xff]  }
 0x282   :  { %8916 = vmatpush1.bf16.msra.mxu1 %v13066_v22  ;;  %8888 = vmatprep.subr.bf16.mxu0 %v13077_v21  ;;  %v13120_v22 = vld [vmem:[#allocation6 + $0xcd0] ss:$40 sps:$4 sm:$0xff]   ;;  %v13131_v21 = vld [vmem:[#allocation6 + $0xfa4] ss:$40 sps:$4 sm:$0xff]  }
 0x283   :  { %8917 = vmatprep.subr.bf16.mxu1 %v13074_v56  ;;  %v13128_v56 = vld [vmem:[#allocation6 + $0xc84] ss:$40 sps:$4 sm:$0xff]  }
 0x285   :  { %8889 = vmatpush2.bf16.msra.mxu0 %v13075_v3 }
 0x286   :  { %8918 = vmatpush1.bf16.msra.mxu1 %v13072_v15  ;;  %8890 = vmatprep.subr.bf16.mxu0 %v13083_v23  ;;  %v13126_v15 = vld [vmem:[#allocation6 + $0xc80] ss:$40 sps:$4 sm:$0xff]   ;;  %v3953_v23 = vmax.f32 %v14603_v8, 0.0 }
 0x287   :  { %8919 = vmatprep.subr.bf16.mxu1 %v13080_v13 }
 0x289   :  { %8891 = vmatpush2.bf16.msra.mxu0 %v13081_v17 }
 0x28a   :  { %8920 = vmatpush1.bf16.msra.mxu1 %v13078_v60  ;;  %8892 = vmatprep.subr.bf16.mxu0 %v13089_v47  ;;  %v13129_v60 = vld [vmem:[#allocation6 + $0xfa0] ss:$40 sps:$4 sm:$0xff]   ;;  %v13132_v47 = vld [vmem:[#allocation6 + $0xf50] ss:$40 sps:$4 sm:$0xff]  }
 0x28b   :  { %8921 = vmatprep.subr.bf16.mxu1 %v13086_v9  ;;  %v13173_v9 = vld [vmem:[#allocation6 + $0x1634] ss:$40 sps:$4 sm:$0xff]  }
 0x28c   :  { %v14626_v30 = vpop.f32.mrf.mxu0 }
 0x28d   :  { %8893 = vmatpush2.bf16.msra.mxu0 %v13087_v27 }
 0x28e   :  { %8922 = vmatpush2.bf16.msra.mxu1 %v13084_v24  ;;  %v3698_v34 = vpop.f32.mrf.mxu0  ;;  %8894 = vmatprep.subr.bf16.mxu0 %v13095_v29  ;;  %v13134_v24 = vld [vmem:[#allocation6 + $0xf54] ss:$40 sps:$4 sm:$0xff]   ;;  %v14644_v29 = vpack.c.bf16 %v3953_v23, %v3953_v23 }
 0x28f   :  { %8923 = vmatprep.subr.bf16.mxu1 %v13092_v16  ;;  %v3699_v13 = vadd.f32 %v3698_v34, %v3658_v14  ;;  %v13137_v34 = vld [vmem:[#allocation6 + $0xf04] ss:$40 sps:$4 sm:$0xff]   ;;  %v13207_v14 = vld [vmem:[#allocation6 + $0x1450] ss:$40 sps:$4 sm:$0xff]   ;;  %v13158_v23 = vld [vmem:[#allocation6 + $0x11d4] ss:$40 sps:$4 sm:$0xff]  }
 0x290   :  { %v3700_v45 = vpop.f32.mrf.mxu0 }
 0x291   :  { %8895 = vmatpush2.bf16.msra.mxu0 %v13093_v36  ;;  %v13177_v45 = vld [vmem:[#allocation6 + $0x15e0] ss:$40 sps:$4 sm:$0xff]  }
 0x292   :  { %8924 = vmatpush2.bf16.msra.mxu1 %v13090_v28  ;;  %v3701_v49 = vpop.f32.mrf.mxu0  ;;  %8946 = vmatprep.subr.bf16.mxu0 %v13101_v44  ;;  %v13171_v28 = vld [vmem:[#allocation6 + $0x1630] ss:$40 sps:$4 sm:$0xff]   ;;  %v13140_v44 = vld [vmem:[#allocation6 + $0x13b4] ss:$40 sps:$4 sm:$0xff]  }
 0x293   :  { %8925 = vmatprep.subr.bf16.mxu1 %v13098_v37  ;;  %v13179_v37 = vld [vmem:[#allocation6 + $0x15e4] ss:$40 sps:$4 sm:$0xff]   ;;  %v13138_v49 = vld [vmem:[#allocation6 + $0x13b0] ss:$40 sps:$4 sm:$0xff]  }
 0x294   :  { %v14631_v54 = vpop.f32.mrf.mxu0  ;;  %8897 = vmatmul.mubr.bf16.vlgmr.msra.gmra.mxu0 %v14629_v53 }
 0x295   :  { %8947 = vmatpush1.bf16.msra.mxu0 %v13099_v48  ;;  %v13185_v48 = vld [vmem:[#allocation6 + $0x1594] ss:$40 sps:$4 sm:$0xff]  }
 0x296   :  { %8926 = vmatpush2.bf16.msra.mxu1 %v13096_v43  ;;  %v3780_v33 = vpop.f32.mrf.mxu0  ;;  %8948 = vmatprep.subr.bf16.mxu0 %v13107_v50  ;;  %v13191_v50 = vld [vmem:[#allocation6 + $0x1544] ss:$40 sps:$4 sm:$0xff]  }
 0x297   :  { %8927 = vmatprep.subr.bf16.mxu1 %v13104_v6  ;;  %v13183_v6 = vld [vmem:[#allocation6 + $0x1590] ss:$40 sps:$4 sm:$0xff]  }
 0x298   :  { %v3782_v1 = vpop.f32.mrf.mxu0 }
 0x299   :  { %8949 = vmatpush1.bf16.msra.mxu0 %v13105_v55  ;;  %v13141_v55 = vld [vmem:[#allocation6 + $0x1360] ss:$40 sps:$4 sm:$0xff]   ;;  %v13144_v1 = vld [vmem:[#allocation6 + $0x1310] ss:$40 sps:$4 sm:$0xff]  }
 0x29a   :  { %8928 = vmatpush2.bf16.msra.mxu1 %v13102_v51  ;;  %v3783_v62 = vpop.f32.mrf.mxu0  ;;  %8950 = vmatprep.subr.bf16.mxu0 %v13113_v57  ;;  %v13143_v51 = vld [vmem:[#allocation6 + $0x1364] ss:$40 sps:$4 sm:$0xff]   ;;  %v13146_v57 = vld [vmem:[#allocation6 + $0x1314] ss:$40 sps:$4 sm:$0xff]  }
 0x29b   :  { %8929 = vmatprep.subr.bf16.mxu1 %v13110_v18  ;;  %v13189_v18 = vld [vmem:[#allocation6 + $0x1540] ss:$40 sps:$4 sm:$0xff]   ;;  %v13149_v62 = vld [vmem:[#allocation6 + $0x12c4] ss:$40 sps:$4 sm:$0xff]  }
 0x29d   :  { %8951 = vmatpush1.bf16.msra.mxu0 %v13111_v61  ;;  %v13195_v61 = vld [vmem:[#allocation6 + $0x14f0] ss:$40 sps:$4 sm:$0xff]  }
 0x29e   :  { %8930 = vmatpush2.bf16.msra.mxu1 %v13108_v59  ;;  %8952 = vmatprep.subr.bf16.mxu0 %v13119_v63  ;;  %v627_v59 = vsub.s32 6, %v14504_v25  ;;  %v13147_v63 = vld [vmem:[#allocation6 + $0x12c0] ss:$40 sps:$4 sm:$0xff]  }
 0x29f   :  { %8931 = vmatprep.subr.bf16.mxu1 %v13116_v4  ;;  %v13203_v4 = vld [vmem:[#allocation6 + $0x14a4] ss:$40 sps:$4 sm:$0xff]   ;;  %v14133_v25 = vld [vmem:[#allocation6 + $0x1600] ss:$40 sps:$4 sm:$0xff]  }
 0x2a1   :  { %8953 = vmatpush1.bf16.msra.mxu0 %v13117_v10  ;;  %v13209_v10 = vld [vmem:[#allocation6 + $0x1454] ss:$40 sps:$4 sm:$0xff]  }
 0x2a2   :  { %8932 = vmatpush2.bf16.msra.mxu1 %v13114_v0  ;;  %8954 = vmatprep.subr.bf16.mxu0 %v13125_v12  ;;  %v628_v0 = vrot.slane %v14635_v2, %v627_v59  ;;  %v13150_v12 = vld [vmem:[#allocation6 + $0x1270] ss:$40 sps:$4 sm:$0xff]  }
 0x2a3   :  { %8933 = vmatprep.subr.bf16.mxu1 %v13122_v11  ;;  %v13152_v11 = vld [vmem:[#allocation6 + $0x1274] ss:$40 sps:$4 sm:$0xff]  }
 0x2a5   :  { %v14641_v3 = vpop.f32.mrf.mxu1  ;;  %8955 = vmatpush1.bf16.msra.mxu0 %v13123_v7  ;;  %v13215_v7 = vld [vmem:[#allocation6 + $0x1404] ss:$40 sps:$4 sm:$0xff]  }
 0x2a6   :  { %8934 = vmatpush2.bf16.msra.mxu1 %v13120_v22  ;;  %8956 = vmatprep.subr.bf16.mxu0 %v13131_v21  ;;  %v3656_v22 = vadd.f32 %v14614_v38, %v628_v0  ;;  %v13213_v21 = vld [vmem:[#allocation6 + $0x1400] ss:$40 sps:$4 sm:$0xff]   ;;  %v13156_v38 = vld [vmem:[#allocation6 + $0x11d0] ss:$40 sps:$4 sm:$0xff]   ;;  %v13263_v0 = vld [vmem:[#allocation6 + $0x1684] ss:$40 sps:$4 sm:$0xff]  }
 0x2a7   :  { %v3739_v17 = vpop.f32.mrf.mxu1  ;;  %8935 = vmatprep.subr.bf16.mxu1 %v13128_v56  ;;  %v13155_v56 = vld [vmem:[#allocation6 + $0x1224] ss:$40 sps:$4 sm:$0xff]  }
 0x2a8   :  { %v3740_v46 = vadd.f32 %v3739_v17, %v3699_v13  ;;  %v3697_v2 = vadd.f32 %v14626_v30, %v3656_v22  ;;  %v13221_v13 = vld [vmem:[#allocation6 + $0x18b4] ss:$40 sps:$4 sm:$0xff]   ;;  %v13219_v17 = vld [vmem:[#allocation6 + $0x18b0] ss:$40 sps:$4 sm:$0xff]   ;;  %v13159_v30 = vld [vmem:[#allocation6 + $0x1180] ss:$40 sps:$4 sm:$0xff]  }
 0x2a9   :  { %v3741_v27 = vpop.f32.mrf.mxu1  ;;  %8957 = vmatpush1.bf16.msra.mxu0 %v13129_v60 }
 0x2aa   :  { %v3781_v16 = vadd.f32 %v3780_v33, %v3740_v46  ;;  %8936 = vmatpush2.bf16.msra.mxu1 %v13126_v15  ;;  %8958 = vmatprep.subr.bf16.mxu0 %v13134_v24  ;;  %v13197_v33 = vld [vmem:[#allocation6 + $0x14f4] ss:$40 sps:$4 sm:$0xff]   ;;  %v13153_v15 = vld [vmem:[#allocation6 + $0x1220] ss:$40 sps:$4 sm:$0xff]   ;;  %v3738_v60 = vadd.f32 %v14641_v3, %v3697_v2  ;;  %v13161_v24 = vld [vmem:[#allocation6 + $0x1184] ss:$40 sps:$4 sm:$0xff]  }
 0x2ab   :  { %v3742_v36 = vpop.f32.mrf.mxu1  ;;  %8987 = vmatprep.subr.bf16.mxu1 %v13173_v9  ;;  %v13227_v9 = vld [vmem:[#allocation6 + $0x1864] ss:$40 sps:$4 sm:$0xff]   ;;  %v13233_v27 = vld [vmem:[#allocation6 + $0x1814] ss:$40 sps:$4 sm:$0xff]  }
 0x2ac   :  { %v3956_v8 = vmax.f32 %v3781_v16, 0.0  ;;  %v3779_v46 = vadd.f32 %v14631_v54, %v3738_v60  ;;  %v13164_v3 = vld [vmem:[#allocation6 + $0x23c] ss:$40 sps:$4 sm:$0xff]   ;;  %v13167_v54 = vld [vmem:[#allocation6 + $0x1ec] ss:$40 sps:$4 sm:$0xff]  }
 0x2ad   :  { %8938 = vmatmul.mubr.bf16.vlgmr.msra.gmra.mxu1 %v14644_v29  ;;  %8959 = vmatpush1.bf16.msra.mxu0 %v13132_v47  ;;  %v13225_v47 = vld [vmem:[#allocation6 + $0x1860] ss:$40 sps:$4 sm:$0xff]   ;;  %v13200_v2 = vld [vmem:[#allocation6 + $0xc] ss:$40 sps:$4 sm:$0xff]  }
 0x2ae   :  { %v14647_v43 = vpack.c.bf16 %v3956_v8, %v3956_v8  ;;  %8988 = vmatpush1.bf16.msra.mxu1 %v13171_v28  ;;  %8960 = vmatprep.subr.bf16.mxu0 %v13137_v34  ;;  %v3955_v16 = vmax.f32 %v3779_v46, 0.0  ;;  %v13231_v28 = vld [vmem:[#allocation6 + $0x1810] ss:$40 sps:$4 sm:$0xff]  }
 0x2af   :  { %8989 = vmatprep.subr.bf16.mxu1 %v13179_v37  ;;  %v13162_v34 = vld [vmem:[#allocation6 + $0x238] ss:$40 sps:$4 sm:$0xff]   ;;  %v13239_v37 = vld [vmem:[#allocation6 + $0x17c4] ss:$40 sps:$4 sm:$0xff]   ;;  %v13198_v60 = vld [vmem:[#allocation6 + $0x8] ss:$40 sps:$4 sm:$0xff]  }
 0x2b0   :  { %8978 = vmatprep.mubr.bf16.mxu0 %v14647_v43  ;;  %v14658_v36 = vpack.c.bf16 %v3955_v16, %v3955_v16  ;;  %v13224_v16 = vld [vmem:[#allocation6 + $0x3cc] ss:$40 sps:$4 sm:$0xff]  }
 0x2b1   :  { %8961 = vmatpush1.bf16.msra.mxu0 %v13135_v40  ;;  %v13165_v40 = vld [vmem:[#allocation6 + $0x1e8] ss:$40 sps:$4 sm:$0xff]  }
 0x2b2   :  { %8990 = vmatpush1.bf16.msra.mxu1 %v13177_v45  ;;  %8962 = vmatprep.subr.bf16.mxu0 %v13140_v44  ;;  %v13170_v44 = vld [vmem:[#allocation6 + $0x19c] ss:$40 sps:$4 sm:$0xff]   ;;  %v13237_v45 = vld [vmem:[#allocation6 + $0x17c0] ss:$40 sps:$4 sm:$0xff]  }
 0x2b3   :  { %8991 = vmatprep.subr.bf16.mxu1 %v13185_v48 }
 0x2b5   :  { %8963 = vmatpush2.bf16.msra.mxu0 %v13138_v49  ;;  %v13245_v49 = vld [vmem:[#allocation6 + $0x1774] ss:$40 sps:$4 sm:$0xff]  }
 0x2b6   :  { %8992 = vmatpush1.bf16.msra.mxu1 %v13183_v6  ;;  %8964 = vmatprep.subr.bf16.mxu0 %v13143_v51  ;;  %v13243_v51 = vld [vmem:[#allocation6 + $0x1770] ss:$40 sps:$4 sm:$0xff]  }
 0x2b7   :  { %8993 = vmatprep.subr.bf16.mxu1 %v13191_v50  ;;  %v13168_v50 = vld [vmem:[#allocation6 + $0x198] ss:$40 sps:$4 sm:$0xff]  }
 0x2b9   :  { %8965 = vmatpush2.bf16.msra.mxu0 %v13141_v55 }
 0x2ba   :  { %8994 = vmatpush1.bf16.msra.mxu1 %v13189_v18  ;;  %8966 = vmatprep.subr.bf16.mxu0 %v13146_v57  ;;  %v13251_v18 = vld [vmem:[#allocation6 + $0x1724] ss:$40 sps:$4 sm:$0xff]   ;;  %v13174_v57 = vld [vmem:[#allocation6 + $0x148] ss:$40 sps:$4 sm:$0xff]  }
 0x2bb   :  { %8995 = vmatprep.subr.bf16.mxu1 %v13197_v33  ;;  %v13176_v33 = vld [vmem:[#allocation6 + $0x14c] ss:$40 sps:$4 sm:$0xff]  }
 0x2bd   :  { %8967 = vmatpush2.bf16.msra.mxu0 %v13144_v1  ;;  %v13182_v1 = vld [vmem:[#allocation6 + $0xfc] ss:$40 sps:$4 sm:$0xff]  }
 0x2be   :  { %8996 = vmatpush1.bf16.msra.mxu1 %v13195_v61  ;;  %8968 = vmatprep.subr.bf16.mxu0 %v13149_v62  ;;  %v13249_v61 = vld [vmem:[#allocation6 + $0x1720] ss:$40 sps:$4 sm:$0xff]  }
 0x2bf   :  { %8997 = vmatprep.subr.bf16.mxu1 %v13203_v4  ;;  %v13257_v4 = vld [vmem:[#allocation6 + $0x16d4] ss:$40 sps:$4 sm:$0xff]   ;;  %v13180_v62 = vld [vmem:[#allocation6 + $0xf8] ss:$40 sps:$4 sm:$0xff]  }
 0x2c1   :  { %8969 = vmatpush2.bf16.msra.mxu0 %v13147_v63  ;;  %v13255_v63 = vld [vmem:[#allocation6 + $0x16d0] ss:$40 sps:$4 sm:$0xff]  }
 0x2c2   :  { %8998 = vmatpush1.bf16.msra.mxu1 %v13201_v5  ;;  %8970 = vmatprep.subr.bf16.mxu0 %v13152_v11  ;;  %v13188_v5 = vld [vmem:[#allocation6 + $0xac] ss:$40 sps:$4 sm:$0xff]   ;;  %v13186_v11 = vld [vmem:[#allocation6 + $0xa8] ss:$40 sps:$4 sm:$0xff]  }
 0x2c3   :  { %8999 = vmatprep.subr.bf16.mxu1 %v13209_v10 }
 0x2c5   :  { %8971 = vmatpush2.bf16.msra.mxu0 %v13150_v12  ;;  %v13261_v12 = vld [vmem:[#allocation6 + $0x1680] ss:$40 sps:$4 sm:$0xff]  }
 0x2c6   :  { %9000 = vmatpush1.bf16.msra.mxu1 %v13207_v14  ;;  %8972 = vmatprep.subr.bf16.mxu0 %v13155_v56  ;;  %v13269_v14 = vld [vmem:[#allocation6 + $0x73c] ss:$40 sps:$4 sm:$0xff]  }
 0x2c7   :  { %9001 = vmatprep.subr.bf16.mxu1 %v13215_v7  ;;  %v13194_v7 = vld [vmem:[#allocation6 + $0x5c] ss:$40 sps:$4 sm:$0xff]  }
 0x2c9   :  { %8973 = vmatpush2.bf16.msra.mxu0 %v13153_v15  ;;  %v13192_v15 = vld [vmem:[#allocation6 + $0x58] ss:$40 sps:$4 sm:$0xff]  }
 0x2ca   :  { %9002 = vmatpush1.bf16.msra.mxu1 %v13213_v21  ;;  %8974 = vmatprep.subr.bf16.mxu0 %v13158_v23  ;;  %v13206_v23 = vld [vmem:[#allocation6 + $0x4bc] ss:$40 sps:$4 sm:$0xff]  }
 0x2cb   :  { %9003 = vmatprep.subr.bf16.mxu1 %v13221_v13 }
 0x2cd   :  { %8975 = vmatpush2.bf16.msra.mxu0 %v13156_v38 }
 0x2ce   :  { %9004 = vmatpush2.bf16.msra.mxu1 %v13219_v17  ;;  %8976 = vmatprep.subr.bf16.mxu0 %v13161_v24  ;;  %v13212_v24 = vld [vmem:[#allocation6 + $0x46c] ss:$40 sps:$4 sm:$0xff]  }
 0x2cf   :  { %9005 = vmatprep.subr.bf16.mxu1 %v13227_v9  ;;  %v13204_v9 = vld [vmem:[#allocation6 + $0x4b8] ss:$40 sps:$4 sm:$0xff]  }
 0x2d1   :  { %8977 = vmatpush2.bf16.msra.mxu0 %v13159_v30  ;;  %v13210_v30 = vld [vmem:[#allocation6 + $0x468] ss:$40 sps:$4 sm:$0xff]  }
 0x2d2   :  { %9006 = vmatpush2.bf16.msra.mxu1 %v13225_v47  ;;  %9028 = vmatprep.subr.bf16.mxu0 %v13164_v3  ;;  %v13218_v47 = vld [vmem:[#allocation6 + $0x41c] ss:$40 sps:$4 sm:$0xff]   ;;  %v13222_v3 = vld [vmem:[#allocation6 + $0x3c8] ss:$40 sps:$4 sm:$0xff]  }
 0x2d3   :  { %9007 = vmatprep.subr.bf16.mxu1 %v13233_v27  ;;  %v13216_v27 = vld [vmem:[#allocation6 + $0x418] ss:$40 sps:$4 sm:$0xff]  }
 0x2d4   :  { %v14660_v8 = vpop.f32.mrf.mxu0  ;;  %8979 = vmatmul.mubr.bf16.vlgmr.msra.gmra.mxu0 %v14658_v36 }
 0x2d5   :  { %9029 = vmatpush1.bf16.msra.mxu0 %v13162_v34  ;;  %9060 = vmatprep.mubr.bf16.mxu0 %v14594_v19  ;;  %v13228_v34 = vld [vmem:[#allocation6 + $0x378] ss:$40 sps:$4 sm:$0xff]  }
 0x2d6   :  { %9008 = vmatpush2.bf16.msra.mxu1 %v13231_v28  ;;  %v14664_v48 = vpop.f32.mrf.mxu0  ;;  %9030 = vmatprep.subr.bf16.mxu0 %v13167_v54  ;;  %v13230_v28 = vld [vmem:[#allocation6 + $0x37c] ss:$40 sps:$4 sm:$0xff]   ;;  %v13236_v54 = vld [vmem:[#allocation6 + $0x32c] ss:$40 sps:$4 sm:$0xff]  }
 0x2d7   :  { %9009 = vmatprep.subr.bf16.mxu1 %v13239_v37  ;;  %v13234_v37 = vld [vmem:[#allocation6 + $0x328] ss:$40 sps:$4 sm:$0xff]  }
 0x2d8   :  { %v3823_v6 = vpop.f32.mrf.mxu0 }
 0x2d9   :  { %9031 = vmatpush1.bf16.msra.mxu0 %v13165_v40  ;;  %v13242_v40 = vld [vmem:[#allocation6 + $0x2dc] ss:$40 sps:$4 sm:$0xff]  }
 0x2da   :  { %9010 = vmatpush2.bf16.msra.mxu1 %v13237_v45  ;;  %v3824_v55 = vpop.f32.mrf.mxu0  ;;  %9032 = vmatprep.subr.bf16.mxu0 %v13170_v44  ;;  %v13240_v44 = vld [vmem:[#allocation6 + $0x2d8] ss:$40 sps:$4 sm:$0xff]   ;;  %v598_v45 = vld [vmem:[#allocation4 + $0x8] sm:$0x3] }
 0x2db   :  { %9011 = vmatprep.subr.bf16.mxu1 %v13245_v49  ;;  %v13248_v49 = vld [vmem:[#allocation6 + $0x28c] ss:$40 sps:$4 sm:$0xff]   ;;  %v636_v6 = vrot.slane %v598_v45, %v14507_v32  ;;  %v640_v55 = vrot.slane %v598_v45, %v14510_v35  ;;  %v13294_v45 = vld [vmem:[#allocation6 + $0xa08] ss:$40 sps:$4 sm:$0xff]  }
 0x2dd   :  { %9033 = vmatpush1.bf16.msra.mxu0 %v13168_v50  ;;  %v13246_v50 = vld [vmem:[#allocation6 + $0x288] ss:$40 sps:$4 sm:$0xff]  }
 0x2de   :  { %9012 = vmatpush2.bf16.msra.mxu1 %v13243_v51  ;;  %9034 = vmatprep.subr.bf16.mxu0 %v13176_v33  ;;  %v13254_v51 = vld [vmem:[#allocation6 + $0xc3c] ss:$40 sps:$4 sm:$0xff]   ;;  %v13252_v33 = vld [vmem:[#allocation6 + $0xc38] ss:$40 sps:$4 sm:$0xff]  }
 0x2df   :  { %9013 = vmatprep.subr.bf16.mxu1 %v13251_v18  ;;  %v3820_v18 = vadd.f32 %v14660_v8, %v636_v6  ;;  %v13302_v6 = vld [vmem:[#allocation6 + $0xebc] ss:$40 sps:$4 sm:$0xff]  }
 0x2e1   :  { %9035 = vmatpush1.bf16.msra.mxu0 %v13174_v57  ;;  %v13260_v57 = vld [vmem:[#allocation6 + $0xbec] ss:$40 sps:$4 sm:$0xff]  }
 0x2e2   :  { %9014 = vmatpush2.bf16.msra.mxu1 %v13249_v61  ;;  %9036 = vmatprep.subr.bf16.mxu0 %v13182_v1  ;;  %v3822_v1 = vadd.f32 %v14664_v48, %v640_v55  ;;  %v13264_v48 = vld [vmem:[#allocation6 + $0xb98] ss:$40 sps:$4 sm:$0xff]  }
 0x2e3   :  { %9015 = vmatprep.subr.bf16.mxu1 %v13257_v4 }
 0x2e5   :  { %v14666_v10 = vpop.f32.mrf.mxu1  ;;  %9037 = vmatpush1.bf16.msra.mxu0 %v13180_v62  ;;  %v13258_v62 = vld [vmem:[#allocation6 + $0xbe8] ss:$40 sps:$4 sm:$0xff]  }
 0x2e6   :  { %9016 = vmatpush2.bf16.msra.mxu1 %v13255_v63  ;;  %9038 = vmatprep.subr.bf16.mxu0 %v13188_v5  ;;  %v3861_v61 = vadd.f32 %v14666_v10, %v3820_v18  ;;  %v13266_v5 = vld [vmem:[#allocation6 + $0xb9c] ss:$40 sps:$4 sm:$0xff]   ;;  %v13300_v18 = vld [vmem:[#allocation6 + $0xeb8] ss:$40 sps:$4 sm:$0xff]  }
 0x2e7   :  { %v14668_v22 = vpop.f32.mrf.mxu1  ;;  %9017 = vmatprep.subr.bf16.mxu1 %v13263_v0 }
 0x2e8   :  { %v3863_v63 = vadd.f32 %v14668_v22, %v3822_v1  ;;  %v13270_v22 = vld [vmem:[#allocation6 + $0xb48] ss:$40 sps:$4 sm:$0xff]   ;;  %v13303_v1 = vld [vmem:[#allocation6 + $0x558] ss:$40 sps:$4 sm:$0xff]  }
 0x2e9   :  { %v3864_v56 = vpop.f32.mrf.mxu1  ;;  %9039 = vmatpush1.bf16.msra.mxu0 %v13186_v11 }
 0x2ea   :  { %9018 = vmatpush2.bf16.msra.mxu1 %v13261_v12  ;;  %9040 = vmatprep.subr.bf16.mxu0 %v13194_v7 }
 0x2eb   :  { %v3865_v21 = vpop.f32.mrf.mxu1  ;;  %9069 = vmatprep.subr.bf16.mxu1 %v13269_v14 }
 0x2ec   :  { %v13267_v21 = vld [vmem:[#allocation6 + $0x738] ss:$40 sps:$4 sm:$0xff]  }
 0x2ed   :  { %v3942_v13 = vpop.f32.mrf.mxu1  ;;  %9041 = vmatpush1.bf16.msra.mxu0 %v13192_v15  ;;  %v13272_v15 = vld [vmem:[#allocation6 + $0xb4c] ss:$40 sps:$4 sm:$0xff]  }
 0x2ee   :  { %9042 = vmatprep.subr.bf16.mxu0 %v13200_v2 }
 0x2ef   :  { %v3944_v38 = vpop.f32.mrf.mxu1 }
 0x2f1   :  { %v3946_v17 = vpop.f32.mrf.mxu1  ;;  %9043 = vmatpush1.bf16.msra.mxu0 %v13198_v60 }
 0x2f2   :  { %9044 = vmatprep.subr.bf16.mxu0 %v13206_v23  ;;  %v13275_v23 = vld [vmem:[#allocation6 + $0x6ec] ss:$40 sps:$4 sm:$0xff]  }
 0x2f3   :  { %v3947_v46 = vpop.f32.mrf.mxu1 }
 0x2f4   :  { %v13281_v46 = vld [vmem:[#allocation6 + $0x69c] ss:$40 sps:$4 sm:$0xff]  }
 0x2f5   :  { %9045 = vmatpush2.bf16.msra.mxu0 %v13204_v9  ;;  %v13276_v9 = vld [vmem:[#allocation6 + $0xaf8] ss:$40 sps:$4 sm:$0xff]  }
 0x2f6   :  { %9046 = vmatprep.subr.bf16.mxu0 %v13212_v24  ;;  %v13284_v24 = vld [vmem:[#allocation6 + $0xaac] ss:$40 sps:$4 sm:$0xff]  }
 0x2f9   :  { %9047 = vmatpush2.bf16.msra.mxu0 %v13210_v30  ;;  %v13279_v30 = vld [vmem:[#allocation6 + $0x698] ss:$40 sps:$4 sm:$0xff]  }
 0x2fa   :  { %9048 = vmatprep.subr.bf16.mxu0 %v13218_v47  ;;  %v13282_v47 = vld [vmem:[#allocation6 + $0xaa8] ss:$40 sps:$4 sm:$0xff]  }
 0x2fd   :  { %9049 = vmatpush2.bf16.msra.mxu0 %v13216_v27  ;;  %v13287_v27 = vld [vmem:[#allocation6 + $0x64c] ss:$40 sps:$4 sm:$0xff]  }
 0x2fe   :  { %9050 = vmatprep.subr.bf16.mxu0 %v13224_v16  ;;  %v13290_v16 = vld [vmem:[#allocation6 + $0xa5c] ss:$40 sps:$4 sm:$0xff]  }
 0x301   :  { %9051 = vmatpush2.bf16.msra.mxu0 %v13222_v3  ;;  %v13285_v3 = vld [vmem:[#allocation6 + $0x648] ss:$40 sps:$4 sm:$0xff]  }
 0x302   :  { %9052 = vmatprep.subr.bf16.mxu0 %v13230_v28  ;;  %v13288_v28 = vld [vmem:[#allocation6 + $0xa58] ss:$40 sps:$4 sm:$0xff]  }
 0x305   :  { %9053 = vmatpush2.bf16.msra.mxu0 %v13228_v34  ;;  %v13293_v34 = vld [vmem:[#allocation6 + $0x5fc] ss:$40 sps:$4 sm:$0xff]  }
 0x306   :  { %9054 = vmatprep.subr.bf16.mxu0 %v13236_v54  ;;  %v13296_v54 = vld [vmem:[#allocation6 + $0xa0c] ss:$40 sps:$4 sm:$0xff]  }
 0x309   :  { %9055 = vmatpush2.bf16.msra.mxu0 %v13234_v37 }
 0x30a   :  { %9056 = vmatprep.subr.bf16.mxu0 %v13242_v40  ;;  %v13291_v40 = vld [vmem:[#allocation6 + $0x5f8] ss:$40 sps:$4 sm:$0xff]  }
 0x30d   :  { %9057 = vmatpush2.bf16.msra.mxu0 %v13240_v44 }
 0x30e   :  { %9058 = vmatprep.subr.bf16.mxu0 %v13248_v49  ;;  %v13299_v49 = vld [vmem:[#allocation6 + $0x5ac] ss:$40 sps:$4 sm:$0xff]  }
 0x311   :  { %9059 = vmatpush2.bf16.msra.mxu0 %v13246_v50 }
 0x312   :  { %9110 = vmatprep.subr.bf16.mxu0 %v13254_v51  ;;  %v13297_v51 = vld [vmem:[#allocation6 + $0x5a8] ss:$40 sps:$4 sm:$0xff]  }
 0x314   :  { %v3901_v4 = vpop.f32.mrf.mxu0  ;;  %9061 = vmatmul.mubr.bf16.vlgmr.msra.gmra.mxu0 %v14620_v52 }
 0x315   :  { %v3902_v0 = vadd.f32 %v3901_v4, %v3861_v61  ;;  %9111 = vmatpush1.bf16.msra.mxu0 %v13252_v33  ;;  %9142 = vmatprep.mubr.bf16.mxu0 %v14622_v20  ;;  %v13305_v33 = vld [vmem:[#allocation6 + $0x55c] ss:$40 sps:$4 sm:$0xff]   ;;  %v13306_v61 = vld [vmem:[#allocation6 + $0xe68] ss:$40 sps:$4 sm:$0xff]   ;;  %v13311_v4 = vld [vmem:[#allocation6 + $0x50c] ss:$40 sps:$4 sm:$0xff]  }
 0x316   :  { %v3903_v8 = vpop.f32.mrf.mxu0  ;;  %9112 = vmatprep.subr.bf16.mxu0 %v13260_v57  ;;  %v13308_v57 = vld [vmem:[#allocation6 + $0xe6c] ss:$40 sps:$4 sm:$0xff]  }
 0x317   :  { %v3943_v11 = vadd.f32 %v3942_v13, %v3902_v0  ;;  %v3904_v12 = vadd.f32 %v3903_v8, %v3863_v63  ;;  %v13278_v13 = vld [vmem:[#allocation6 + $0xafc] ss:$40 sps:$4 sm:$0xff]   ;;  %v13309_v63 = vld [vmem:[#allocation6 + $0x508] ss:$40 sps:$4 sm:$0xff]   ;;  %v13312_v0 = vld [vmem:[#allocation6 + $0xe18] ss:$40 sps:$4 sm:$0xff]  }
 0x318   :  { %v3905_v14 = vpop.f32.mrf.mxu0  ;;  %v13320_v8 = vld [vmem:[#allocation6 + $0xdcc] ss:$40 sps:$4 sm:$0xff]  }
 0x319   :  { %v3945_v7 = vadd.f32 %v3944_v38, %v3904_v12  ;;  %9113 = vmatpush1.bf16.msra.mxu0 %v13258_v62  ;;  %v3957_v10 = vmax.f32 %v3943_v11, 0.0  ;;  %v13273_v38 = vld [vmem:[#allocation6 + $0x6e8] ss:$40 sps:$4 sm:$0xff]   ;;  %v13314_v62 = vld [vmem:[#allocation6 + $0xe1c] ss:$40 sps:$4 sm:$0xff]  }
 0x31a   :  { %v3906_v56 = vpop.f32.mrf.mxu0  ;;  %9114 = vmatprep.subr.bf16.mxu0 %v13266_v5  ;;  %v13317_v5 = vld [vmem:[#allocation6 + $0x9bc] ss:$40 sps:$4 sm:$0xff]   ;;  %v13315_v11 = vld [vmem:[#allocation6 + $0x9b8] ss:$40 sps:$4 sm:$0xff]   ;;  %v13318_v12 = vld [vmem:[#allocation6 + $0xdc8] ss:$40 sps:$4 sm:$0xff]  }
 0x31b   :  { %v3958_v2 = vmax.f32 %v3945_v7, 0.0  ;;  %v14680_v17 = vpack.c.bf16 %v3957_v10, %v3957_v10  ;;  %v13323_v14 = vld [vmem:[#allocation6 + $0x96c] ss:$40 sps:$4 sm:$0xff]   ;;  %v13326_v7 = vld [vmem:[#allocation6 + $0xd7c] ss:$40 sps:$4 sm:$0xff]  }
 0x31c   :  { %v13324_v10 = vld [vmem:[#allocation6 + $0xd78] ss:$40 sps:$4 sm:$0xff]   ;;  %v13329_v56 = vld [vmem:[#allocation6 + $0x91c] ss:$40 sps:$4 sm:$0xff]  }
 0x31d   :  { %v14678_v60 = vpack.c.bf16 %v3958_v2, %v3958_v2  ;;  %9115 = vmatpush1.bf16.msra.mxu0 %v13264_v48  ;;  %v13321_v48 = vld [vmem:[#allocation6 + $0x968] ss:$40 sps:$4 sm:$0xff]   ;;  %v13327_v2 = vld [vmem:[#allocation6 + $0x918] ss:$40 sps:$4 sm:$0xff]  }
 0x31e   :  { %9116 = vmatprep.subr.bf16.mxu0 %v13272_v15  ;;  %v13332_v15 = vld [vmem:[#allocation6 + $0xd2c] ss:$40 sps:$4 sm:$0xff]  }
 0x31f   :  { %9019 = vmatprep.mubr.bf16.mxu1 %v14678_v60 }
 0x320   :  { %9020 = vmatmul.mubr.bf16.vlgmr.msra.gmra.mxu1 %v14680_v17 }
 0x321   :  { %9070 = vmatpush1.bf16.msra.mxu1 %v13267_v21  ;;  %9101 = vmatprep.mubr.bf16.mxu1 %v14610_v26  ;;  %v13330_v21 = vld [vmem:[#allocation6 + $0xd28] ss:$40 sps:$4 sm:$0xff]  }
 0x322   :  { %9117 = vmatpush1.bf16.msra.mxu0 %v13270_v22  ;;  %9071 = vmatprep.subr.bf16.mxu1 %v13275_v23  ;;  %v13335_v22 = vld [vmem:[#allocation6 + $0x8cc] ss:$40 sps:$4 sm:$0xff]   ;;  %v13338_v23 = vld [vmem:[#allocation6 + $0xcdc] ss:$40 sps:$4 sm:$0xff]  }
 0x323   :  { %9118 = vmatprep.subr.bf16.mxu0 %v13278_v13  ;;  %v13333_v13 = vld [vmem:[#allocation6 + $0x8c8] ss:$40 sps:$4 sm:$0xff]  }
 0x325   :  { %9072 = vmatpush1.bf16.msra.mxu1 %v13273_v38  ;;  %v13336_v38 = vld [vmem:[#allocation6 + $0xcd8] ss:$40 sps:$4 sm:$0xff]  }
 0x326   :  { %9119 = vmatpush1.bf16.msra.mxu0 %v13276_v9  ;;  %9073 = vmatprep.subr.bf16.mxu1 %v13281_v46  ;;  %v13341_v9 = vld [vmem:[#allocation6 + $0x87c] ss:$40 sps:$4 sm:$0xff]   ;;  %v13344_v46 = vld [vmem:[#allocation6 + $0xc8c] ss:$40 sps:$4 sm:$0xff]  }
 0x327   :  { %9120 = vmatprep.subr.bf16.mxu0 %v13284_v24  ;;  %v14689_v24 = vld [vmem:[#allocation7] sm:$0xff] }
 0x329   :  { %9074 = vmatpush1.bf16.msra.mxu1 %v13279_v30  ;;  %v13339_v30 = vld [vmem:[#allocation6 + $0x878] ss:$40 sps:$4 sm:$0xff]  }
 0x32a   :  { %9121 = vmatpush1.bf16.msra.mxu0 %v13282_v47  ;;  %9075 = vmatprep.subr.bf16.mxu1 %v13287_v27  ;;  %v13342_v47 = vld [vmem:[#allocation6 + $0xc88] ss:$40 sps:$4 sm:$0xff]   ;;  %v13347_v27 = vld [vmem:[#allocation6 + $0x82c] ss:$40 sps:$4 sm:$0xff]  }
 0x32b   :  { %9122 = vmatprep.subr.bf16.mxu0 %v13290_v16  ;;  %v4776_v16 = vrot.slane %v14689_v24, %v14507_v32 }
 0x32d   :  { %v14685_v37 = vpop.f32.mrf.mxu1  ;;  %9076 = vmatpush1.bf16.msra.mxu1 %v13285_v3  ;;  %v13350_v3 = vld [vmem:[#allocation6 + $0x163c] ss:$40 sps:$4 sm:$0xff]  }
 0x32e   :  { %9123 = vmatpush1.bf16.msra.mxu0 %v13288_v28  ;;  %9077 = vmatprep.subr.bf16.mxu1 %v13293_v34  ;;  %v4780_v28 = vrot.slane %v14689_v24, %v14510_v35  ;;  %v13345_v34 = vld [vmem:[#allocation6 + $0x828] ss:$40 sps:$4 sm:$0xff]  }
 0x32f   :  { %v14687_v44 = vpop.f32.mrf.mxu1  ;;  %9124 = vmatprep.subr.bf16.mxu0 %v13296_v54  ;;  %v13348_v54 = vld [vmem:[#allocation6 + $0x1638] ss:$40 sps:$4 sm:$0xff]  }
 0x331   :  { %v8861_v50 = vpop.f32.mrf.mxu1  ;;  %9078 = vmatpush1.bf16.msra.mxu1 %v13291_v40  ;;  %v8858_v40 = vadd.f32 %v14685_v37, %v4776_v16  ;;  %v13362_v37 = vld [vmem:[#allocation6 + $0x159c] ss:$40 sps:$4 sm:$0xff]   ;;  %v13390_v16 = vld [vmem:[#allocation6 + $0x1408] ss:$40 sps:$4 sm:$0xff]  }
 0x332   :  { %9125 = vmatpush1.bf16.msra.mxu0 %v13294_v45  ;;  %9079 = vmatprep.subr.bf16.mxu1 %v13299_v49  ;;  %v13353_v45 = vld [vmem:[#allocation6 + $0x7dc] ss:$40 sps:$4 sm:$0xff]   ;;  %v13356_v49 = vld [vmem:[#allocation6 + $0x15ec] ss:$40 sps:$4 sm:$0xff]   ;;  %v8860_v50 = vadd.f32 %v14687_v44, %v4780_v28 }
 0x333   :  { %v8862_v55 = vpop.f32.mrf.mxu1  ;;  %9126 = vmatprep.subr.bf16.mxu0 %v13302_v6 }
 0x334   :  { %v13351_v55 = vld [vmem:[#allocation6 + $0x7d8] ss:$40 sps:$4 sm:$0xff]  }
 0x335   :  { %9080 = vmatpush1.bf16.msra.mxu1 %v13297_v51 }
 0x336   :  { %9127 = vmatpush2.bf16.msra.mxu0 %v13300_v18  ;;  %9081 = vmatprep.subr.bf16.mxu1 %v13305_v33  ;;  %v13354_v33 = vld [vmem:[#allocation6 + $0x15e8] ss:$40 sps:$4 sm:$0xff]  }
 0x337   :  { %9128 = vmatprep.subr.bf16.mxu0 %v13308_v57  ;;  %v13359_v57 = vld [vmem:[#allocation6 + $0x78c] ss:$40 sps:$4 sm:$0xff]  }
 0x339   :  { %9082 = vmatpush1.bf16.msra.mxu1 %v13303_v1 }
 0x33a   :  { %9129 = vmatpush2.bf16.msra.mxu0 %v13306_v61  ;;  %9083 = vmatprep.subr.bf16.mxu1 %v13311_v4  ;;  %v13357_v4 = vld [vmem:[#allocation6 + $0x788] ss:$40 sps:$4 sm:$0xff]  }
 0x33b   :  { %9130 = vmatprep.subr.bf16.mxu0 %v13314_v62  ;;  %v13360_v62 = vld [vmem:[#allocation6 + $0x1598] ss:$40 sps:$4 sm:$0xff]  }
 0x33d   :  { %9084 = vmatpush1.bf16.msra.mxu1 %v13309_v63  ;;  %v13365_v63 = vld [vmem:[#allocation6 + $0x113c] ss:$40 sps:$4 sm:$0xff]  }
 0x33e   :  { %9131 = vmatpush2.bf16.msra.mxu0 %v13312_v0  ;;  %9085 = vmatprep.subr.bf16.mxu1 %v13317_v5  ;;  %v13368_v0 = vld [vmem:[#allocation6 + $0x154c] ss:$40 sps:$4 sm:$0xff]   ;;  %v13363_v5 = vld [vmem:[#allocation6 + $0x1138] ss:$40 sps:$4 sm:$0xff]  }
 0x33f   :  { %9132 = vmatprep.subr.bf16.mxu0 %v13320_v8  ;;  %v13366_v8 = vld [vmem:[#allocation6 + $0x1548] ss:$40 sps:$4 sm:$0xff]  }
 0x341   :  { %9086 = vmatpush2.bf16.msra.mxu1 %v13315_v11  ;;  %v13371_v11 = vld [vmem:[#allocation6 + $0x10ec] ss:$40 sps:$4 sm:$0xff]  }
 0x342   :  { %9133 = vmatpush2.bf16.msra.mxu0 %v13318_v12  ;;  %9087 = vmatprep.subr.bf16.mxu1 %v13323_v14  ;;  %v13374_v12 = vld [vmem:[#allocation6 + $0x14fc] ss:$40 sps:$4 sm:$0xff]   ;;  %v13369_v14 = vld [vmem:[#allocation6 + $0x10e8] ss:$40 sps:$4 sm:$0xff]  }
 0x343   :  { %9134 = vmatprep.subr.bf16.mxu0 %v13326_v7  ;;  %v13372_v7 = vld [vmem:[#allocation6 + $0x14f8] ss:$40 sps:$4 sm:$0xff]  }
 0x345   :  { %9088 = vmatpush2.bf16.msra.mxu1 %v13321_v48  ;;  %v13377_v48 = vld [vmem:[#allocation6 + $0x109c] ss:$40 sps:$4 sm:$0xff]  }
 0x346   :  { %9135 = vmatpush2.bf16.msra.mxu0 %v13324_v10  ;;  %9089 = vmatprep.subr.bf16.mxu1 %v13329_v56  ;;  %v13380_v10 = vld [vmem:[#allocation6 + $0x14ac] ss:$40 sps:$4 sm:$0xff]   ;;  %v13375_v56 = vld [vmem:[#allocation6 + $0x1098] ss:$40 sps:$4 sm:$0xff]  }
 0x347   :  { %9136 = vmatprep.subr.bf16.mxu0 %v13332_v15  ;;  %v13378_v15 = vld [vmem:[#allocation6 + $0x14a8] ss:$40 sps:$4 sm:$0xff]  }
 0x349   :  { %9090 = vmatpush2.bf16.msra.mxu1 %v13327_v2  ;;  %v13383_v2 = vld [vmem:[#allocation6 + $0x104c] ss:$40 sps:$4 sm:$0xff]  }
 0x34a   :  { %9137 = vmatpush2.bf16.msra.mxu0 %v13330_v21  ;;  %9091 = vmatprep.subr.bf16.mxu1 %v13335_v22  ;;  %v13386_v21 = vld [vmem:[#allocation6 + $0x145c] ss:$40 sps:$4 sm:$0xff]   ;;  %v13381_v22 = vld [vmem:[#allocation6 + $0x1048] ss:$40 sps:$4 sm:$0xff]  }
 0x34b   :  { %9138 = vmatprep.subr.bf16.mxu0 %v13338_v23  ;;  %v13384_v23 = vld [vmem:[#allocation6 + $0x1458] ss:$40 sps:$4 sm:$0xff]  }
 0x34d   :  { %9092 = vmatpush2.bf16.msra.mxu1 %v13333_v13  ;;  %v13389_v13 = vld [vmem:[#allocation6 + $0xffc] ss:$40 sps:$4 sm:$0xff]  }
 0x34e   :  { %9139 = vmatpush2.bf16.msra.mxu0 %v13336_v38  ;;  %9093 = vmatprep.subr.bf16.mxu1 %v13341_v9  ;;  %v13392_v9 = vld [vmem:[#allocation6 + $0x140c] ss:$40 sps:$4 sm:$0xff]  }
 0x34f   :  { %9140 = vmatprep.subr.bf16.mxu0 %v13344_v46 }
 0x351   :  { %9094 = vmatpush2.bf16.msra.mxu1 %v13339_v30 }
 0x352   :  { %9141 = vmatpush2.bf16.msra.mxu0 %v13342_v47  ;;  %9095 = vmatprep.subr.bf16.mxu1 %v13347_v27  ;;  %v13387_v47 = vld [vmem:[#allocation6 + $0xff8] ss:$40 sps:$4 sm:$0xff]  }
 0x353   :  { %9192 = vmatprep.subr.bf16.mxu0 %v13350_v3  ;;  %v13395_v3 = vld [vmem:[#allocation6 + $0xfac] ss:$40 sps:$4 sm:$0xff]  }
 0x354   :  { %v8898_v6 = vpop.f32.mrf.mxu0 }
 0x355   :  { %v8899_v51 = vadd.f32 %v8898_v6, %v8858_v40  ;;  %9096 = vmatpush2.bf16.msra.mxu1 %v13345_v34  ;;  %9143 = vmatmul.mubr.bf16.vlgmr.msra.gmra.mxu0 %v14644_v29  ;;  %v13398_v34 = vld [vmem:[#allocation6 + $0x18bc] ss:$40 sps:$4 sm:$0xff]   ;;  %v13393_v40 = vld [vmem:[#allocation6 + $0xfa8] ss:$40 sps:$4 sm:$0xff]   ;;  %v13404_v6 = vld [vmem:[#allocation6 + $0x186c] ss:$40 sps:$4 sm:$0xff]  }
 0x356   :  { %9193 = vmatpush1.bf16.msra.mxu0 %v13348_v54  ;;  %9224 = vmatprep.mubr.bf16.mxu0 %v14678_v60  ;;  %v8900_v18 = vpop.f32.mrf.mxu0 }
 0x357   :  { %v8901_v1 = vadd.f32 %v8900_v18, %v8860_v50  ;;  %9097 = vmatprep.subr.bf16.mxu1 %v13353_v45  ;;  %9194 = vmatprep.subr.bf16.mxu0 %v13356_v49  ;;  %v13396_v45 = vld [vmem:[#allocation6 + $0x18b8] ss:$40 sps:$4 sm:$0xff]   ;;  %v13401_v49 = vld [vmem:[#allocation6 + $0xf5c] ss:$40 sps:$4 sm:$0xff]  }
 0x358   :  { %v8902_v61 = vpop.f32.mrf.mxu0  ;;  %v13399_v50 = vld [vmem:[#allocation6 + $0xf58] ss:$40 sps:$4 sm:$0xff]   ;;  %v13410_v18 = vld [vmem:[#allocation6 + $0x181c] ss:$40 sps:$4 sm:$0xff]  }
 0x359   :  { %9098 = vmatpush2.bf16.msra.mxu1 %v13351_v55  ;;  %v13407_v55 = vld [vmem:[#allocation6 + $0xf0c] ss:$40 sps:$4 sm:$0xff]   ;;  %v13411_v61 = vld [vmem:[#allocation6 + $0x13b8] ss:$40 sps:$4 sm:$0xff]  }
 0x35a   :  { %9195 = vmatpush1.bf16.msra.mxu0 %v13354_v33  ;;  %v8903_v44 = vpop.f32.mrf.mxu0  ;;  %9099 = vmatprep.subr.bf16.mxu1 %v13359_v57  ;;  %v13405_v33 = vld [vmem:[#allocation6 + $0xf08] ss:$40 sps:$4 sm:$0xff]   ;;  %v13408_v57 = vld [vmem:[#allocation6 + $0x1818] ss:$40 sps:$4 sm:$0xff]  }
 0x35b   :  { %9196 = vmatprep.subr.bf16.mxu0 %v13362_v37  ;;  %v13416_v37 = vld [vmem:[#allocation6 + $0x17cc] ss:$40 sps:$4 sm:$0xff]  }
 0x35c   :  { %v13419_v44 = vld [vmem:[#allocation6 + $0x136c] ss:$40 sps:$4 sm:$0xff]  }
 0x35d   :  { %9100 = vmatpush2.bf16.msra.mxu1 %v13357_v4  ;;  %v13414_v4 = vld [vmem:[#allocation6 + $0x17c8] ss:$40 sps:$4 sm:$0xff]  }
 0x35e   :  { %9197 = vmatpush1.bf16.msra.mxu0 %v13360_v62  ;;  %9151 = vmatprep.subr.bf16.mxu1 %v13365_v63  ;;  %v13422_v62 = vld [vmem:[#allocation6 + $0x177c] ss:$40 sps:$4 sm:$0xff]   ;;  %v13417_v63 = vld [vmem:[#allocation6 + $0x1368] ss:$40 sps:$4 sm:$0xff]  }
 0x35f   :  { %9198 = vmatprep.subr.bf16.mxu0 %v13368_v0  ;;  %v13420_v0 = vld [vmem:[#allocation6 + $0x1778] ss:$40 sps:$4 sm:$0xff]  }
 0x360   :  { %9102 = vmatmul.mubr.bf16.vlgmr.msra.gmra.mxu1 %v14629_v53 }
 0x361   :  { %9152 = vmatpush1.bf16.msra.mxu1 %v13363_v5  ;;  %9183 = vmatprep.mubr.bf16.mxu1 %v14647_v43  ;;  %v13425_v5 = vld [vmem:[#allocation6 + $0x131c] ss:$40 sps:$4 sm:$0xff]  }
 0x362   :  { %9199 = vmatpush1.bf16.msra.mxu0 %v13366_v8  ;;  %9153 = vmatprep.subr.bf16.mxu1 %v13371_v11  ;;  %v13428_v8 = vld [vmem:[#allocation6 + $0x172c] ss:$40 sps:$4 sm:$0xff]   ;;  %v13423_v11 = vld [vmem:[#allocation6 + $0x1318] ss:$40 sps:$4 sm:$0xff]  }
 0x363   :  { %9200 = vmatprep.subr.bf16.mxu0 %v13374_v12  ;;  %v13426_v12 = vld [vmem:[#allocation6 + $0x1728] ss:$40 sps:$4 sm:$0xff]  }
 0x365   :  { %9154 = vmatpush1.bf16.msra.mxu1 %v13369_v14  ;;  %v13431_v14 = vld [vmem:[#allocation6 + $0x12cc] ss:$40 sps:$4 sm:$0xff]  }
 0x366   :  { %9201 = vmatpush1.bf16.msra.mxu0 %v13372_v7  ;;  %9155 = vmatprep.subr.bf16.mxu1 %v13377_v48  ;;  %v13434_v7 = vld [vmem:[#allocation6 + $0x16dc] ss:$40 sps:$4 sm:$0xff]   ;;  %v13429_v48 = vld [vmem:[#allocation6 + $0x12c8] ss:$40 sps:$4 sm:$0xff]  }
 0x367   :  { %9202 = vmatprep.subr.bf16.mxu0 %v13380_v10  ;;  %v13432_v10 = vld [vmem:[#allocation6 + $0x16d8] ss:$40 sps:$4 sm:$0xff]  }
 0x369   :  { %9156 = vmatpush1.bf16.msra.mxu1 %v13375_v56  ;;  %v13437_v56 = vld [vmem:[#allocation6 + $0x127c] ss:$40 sps:$4 sm:$0xff]  }
 0x36a   :  { %9203 = vmatpush1.bf16.msra.mxu0 %v13378_v15  ;;  %9157 = vmatprep.subr.bf16.mxu1 %v13383_v2  ;;  %v13440_v15 = vld [vmem:[#allocation6 + $0x168c] ss:$40 sps:$4 sm:$0xff]   ;;  %v13435_v2 = vld [vmem:[#allocation6 + $0x1278] ss:$40 sps:$4 sm:$0xff]  }
 0x36b   :  { %9204 = vmatprep.subr.bf16.mxu0 %v13386_v21  ;;  %v13438_v21 = vld [vmem:[#allocation6 + $0x1688] ss:$40 sps:$4 sm:$0xff]  }
 0x36d   :  { %v8939_v38 = vpop.f32.mrf.mxu1  ;;  %9158 = vmatpush1.bf16.msra.mxu1 %v13381_v22  ;;  %v13443_v22 = vld [vmem:[#allocation6 + $0x122c] ss:$40 sps:$4 sm:$0xff]  }
 0x36e   :  { %v14701_v46 = vadd.f32 %v8939_v38, %v8899_v51  ;;  %9205 = vmatpush1.bf16.msra.mxu0 %v13384_v23  ;;  %9159 = vmatprep.subr.bf16.mxu1 %v13389_v13  ;;  %v13402_v51 = vld [vmem:[#allocation6 + $0x1868] ss:$40 sps:$4 sm:$0xff]   ;;  %v13446_v23 = vld [vmem:[#allocation6 + $0x744] ss:$40 sps:$4 sm:$0xff]  }
 0x36f   :  { %v8941_v30 = vpop.f32.mrf.mxu1  ;;  %9206 = vmatprep.subr.bf16.mxu0 %v13392_v9  ;;  %v13441_v13 = vld [vmem:[#allocation6 + $0x1228] ss:$40 sps:$4 sm:$0xff]   ;;  %v13449_v9 = vld [vmem:[#allocation6 + $0x11dc] ss:$40 sps:$4 sm:$0xff]  }
 0x370   :  { %v14703_v27 = vadd.f32 %v8941_v30, %v8901_v1  ;;  %v13413_v1 = vld [vmem:[#allocation6 + $0x13bc] ss:$40 sps:$4 sm:$0xff]   ;;  %v13444_v38 = vld [vmem:[#allocation6 + $0x740] ss:$40 sps:$4 sm:$0xff]  }
 0x371   :  { %v8943_v28 = vpop.f32.mrf.mxu1  ;;  %9160 = vmatpush1.bf16.msra.mxu1 %v13387_v47  ;;  %v13452_v30 = vld [vmem:[#allocation6 + $0x6f4] ss:$40 sps:$4 sm:$0xff]  }
 0x372   :  { %9207 = vmatpush1.bf16.msra.mxu0 %v13390_v16  ;;  %9161 = vmatprep.subr.bf16.mxu1 %v13395_v3  ;;  %v13447_v3 = vld [vmem:[#allocation6 + $0x11d8] ss:$40 sps:$4 sm:$0xff]  }
 0x373   :  { %v8944_v54 = vpop.f32.mrf.mxu1  ;;  %9208 = vmatprep.subr.bf16.mxu0 %v13398_v34  ;;  %v13450_v34 = vld [vmem:[#allocation6 + $0x6f0] ss:$40 sps:$4 sm:$0xff]  }
 0x374   :  { %v13455_v54 = vld [vmem:[#allocation6 + $0x118c] ss:$40 sps:$4 sm:$0xff]  }
 0x375   :  { %9162 = vmatpush1.bf16.msra.mxu1 %v13393_v40 }
 0x376   :  { %9209 = vmatpush2.bf16.msra.mxu0 %v13396_v45  ;;  %9163 = vmatprep.subr.bf16.mxu1 %v13401_v49  ;;  %v13458_v45 = vld [vmem:[#allocation6 + $0x6a4] ss:$40 sps:$4 sm:$0xff]  }
 0x377   :  { %9210 = vmatprep.subr.bf16.mxu0 %v13404_v6 }
 0x379   :  { %9164 = vmatpush1.bf16.msra.mxu1 %v13399_v50  ;;  %v13456_v50 = vld [vmem:[#allocation6 + $0x6a0] ss:$40 sps:$4 sm:$0xff]  }
 0x37a   :  { %9211 = vmatpush2.bf16.msra.mxu0 %v13402_v51  ;;  %9165 = vmatprep.subr.bf16.mxu1 %v13407_v55  ;;  %v13461_v51 = vld [vmem:[#allocation6 + $0x244] ss:$40 sps:$4 sm:$0xff]   ;;  %v13464_v55 = vld [vmem:[#allocation6 + $0x654] ss:$40 sps:$4 sm:$0xff]  }
 0x37b   :  { %9212 = vmatprep.subr.bf16.mxu0 %v13410_v18  ;;  %v13459_v18 = vld [vmem:[#allocation6 + $0x240] ss:$40 sps:$4 sm:$0xff]  }
 0x37d   :  { %9166 = vmatpush1.bf16.msra.mxu1 %v13405_v33  ;;  %v13462_v33 = vld [vmem:[#allocation6 + $0x650] ss:$40 sps:$4 sm:$0xff]  }
 0x37e   :  { %9213 = vmatpush2.bf16.msra.mxu0 %v13408_v57  ;;  %9167 = vmatprep.subr.bf16.mxu1 %v13413_v1  ;;  %v13470_v57 = vld [vmem:[#allocation6 + $0x604] ss:$40 sps:$4 sm:$0xff]   ;;  %v13465_v1 = vld [vmem:[#allocation6 + $0x1f0] ss:$40 sps:$4 sm:$0xff]  }
 0x37f   :  { %9214 = vmatprep.subr.bf16.mxu0 %v13416_v37  ;;  %v13468_v37 = vld [vmem:[#allocation6 + $0x600] ss:$40 sps:$4 sm:$0xff]  }
 0x381   :  { %9168 = vmatpush2.bf16.msra.mxu1 %v13411_v61  ;;  %v13473_v61 = vld [vmem:[#allocation6 + $0x1a4] ss:$40 sps:$4 sm:$0xff]  }
 0x382   :  { %9215 = vmatpush2.bf16.msra.mxu0 %v13414_v4  ;;  %9169 = vmatprep.subr.bf16.mxu1 %v13419_v44  ;;  %v13476_v4 = vld [vmem:[#allocation6 + $0x5b4] ss:$40 sps:$4 sm:$0xff]   ;;  %v13471_v44 = vld [vmem:[#allocation6 + $0x1a0] ss:$40 sps:$4 sm:$0xff]  }
 0x383   :  { %9216 = vmatprep.subr.bf16.mxu0 %v13422_v62  ;;  %v13474_v62 = vld [vmem:[#allocation6 + $0x5b0] ss:$40 sps:$4 sm:$0xff]  }
 0x385   :  { %9170 = vmatpush2.bf16.msra.mxu1 %v13417_v63  ;;  %v13479_v63 = vld [vmem:[#allocation6 + $0x154] ss:$40 sps:$4 sm:$0xff]  }
 0x386   :  { %9217 = vmatpush2.bf16.msra.mxu0 %v13420_v0  ;;  %9171 = vmatprep.subr.bf16.mxu1 %v13425_v5  ;;  %v13482_v0 = vld [vmem:[#allocation6 + $0x564] ss:$40 sps:$4 sm:$0xff]   ;;  %v13477_v5 = vld [vmem:[#allocation6 + $0x150] ss:$40 sps:$4 sm:$0xff]  }
 0x387   :  { %9218 = vmatprep.subr.bf16.mxu0 %v13428_v8  ;;  %v13480_v8 = vld [vmem:[#allocation6 + $0x560] ss:$40 sps:$4 sm:$0xff]  }
 0x389   :  { %9172 = vmatpush2.bf16.msra.mxu1 %v13423_v11  ;;  %v13485_v11 = vld [vmem:[#allocation6 + $0x104] ss:$40 sps:$4 sm:$0xff]  }
 0x38a   :  { %9219 = vmatpush2.bf16.msra.mxu0 %v13426_v12  ;;  %9173 = vmatprep.subr.bf16.mxu1 %v13431_v14  ;;  %v13488_v12 = vld [vmem:[#allocation6 + $0x514] ss:$40 sps:$4 sm:$0xff]   ;;  %v13483_v14 = vld [vmem:[#allocation6 + $0x100] ss:$40 sps:$4 sm:$0xff]  }
 0x38b   :  { %9220 = vmatprep.subr.bf16.mxu0 %v13434_v7  ;;  %v13486_v7 = vld [vmem:[#allocation6 + $0x510] ss:$40 sps:$4 sm:$0xff]  }
 0x38d   :  { %9174 = vmatpush2.bf16.msra.mxu1 %v13429_v48  ;;  %v13491_v48 = vld [vmem:[#allocation6 + $0xb4] ss:$40 sps:$4 sm:$0xff]  }
 0x38e   :  { %9221 = vmatpush2.bf16.msra.mxu0 %v13432_v10  ;;  %9175 = vmatprep.subr.bf16.mxu1 %v13437_v56  ;;  %v13494_v10 = vld [vmem:[#allocation6 + $0x9c4] ss:$40 sps:$4 sm:$0xff]   ;;  %v13489_v56 = vld [vmem:[#allocation6 + $0xb0] ss:$40 sps:$4 sm:$0xff]  }
 0x38f   :  { %9222 = vmatprep.subr.bf16.mxu0 %v13440_v15  ;;  %v13492_v15 = vld [vmem:[#allocation6 + $0x9c0] ss:$40 sps:$4 sm:$0xff]  }
 0x391   :  { %9176 = vmatpush2.bf16.msra.mxu1 %v13435_v2  ;;  %v13497_v2 = vld [vmem:[#allocation6 + $0x64] ss:$40 sps:$4 sm:$0xff]  }
 0x392   :  { %9223 = vmatpush2.bf16.msra.mxu0 %v13438_v21  ;;  %9177 = vmatprep.subr.bf16.mxu1 %v13443_v22  ;;  %v13500_v21 = vld [vmem:[#allocation6 + $0x974] ss:$40 sps:$4 sm:$0xff]   ;;  %v13495_v22 = vld [vmem:[#allocation6 + $0x60] ss:$40 sps:$4 sm:$0xff]  }
 0x393   :  { %9274 = vmatprep.subr.bf16.mxu0 %v13446_v23  ;;  %v13498_v23 = vld [vmem:[#allocation6 + $0x970] ss:$40 sps:$4 sm:$0xff]  }
 0x394   :  { %v8980_v47 = vpop.f32.mrf.mxu0 }
 0x395   :  { %v14706_v16 = vadd.f32 %v8980_v47, %v14701_v46  ;;  %9178 = vmatpush2.bf16.msra.mxu1 %v13441_v13  ;;  %9225 = vmatmul.mubr.bf16.vlgmr.msra.gmra.mxu0 %v14680_v17  ;;  %v13453_v46 = vld [vmem:[#allocation6 + $0x1188] ss:$40 sps:$4 sm:$0xff]   ;;  %v13503_v13 = vld [vmem:[#allocation6 + $0x14] ss:$40 sps:$4 sm:$0xff]   ;;  %v13509_v47 = vld [vmem:[#allocation6 + $0x4c4] ss:$40 sps:$4 sm:$0xff]  }
 0x396   :  { %9275 = vmatpush1.bf16.msra.mxu0 %v13444_v38  ;;  %9306 = vmatprep.mubr.bf16.mxu0 %v14610_v26  ;;  %v8982_v28 = vpop.f32.mrf.mxu0  ;;  %v13506_v38 = vld [vmem:[#allocation6 + $0x924] ss:$40 sps:$4 sm:$0xff]  }
 0x397   :  { %v14711_v40 = vadd.f32 %v8982_v28, %v14703_v27  ;;  %9179 = vmatprep.subr.bf16.mxu1 %v13449_v9  ;;  %9276 = vmatprep.subr.bf16.mxu0 %v13452_v30  ;;  %v13467_v27 = vld [vmem:[#allocation6 + $0x1f4] ss:$40 sps:$4 sm:$0xff]   ;;  %v13501_v9 = vld [vmem:[#allocation6 + $0x10] ss:$40 sps:$4 sm:$0xff]   ;;  %v13504_v30 = vld [vmem:[#allocation6 + $0x920] ss:$40 sps:$4 sm:$0xff]  }
 0x398   :  { %v8984_v49 = vpop.f32.mrf.mxu0  ;;  %v13507_v28 = vld [vmem:[#allocation6 + $0x4c0] ss:$40 sps:$4 sm:$0xff]  }
 0x399   :  { %9180 = vmatpush2.bf16.msra.mxu1 %v13447_v3  ;;  %v13512_v3 = vld [vmem:[#allocation6 + $0x8d4] ss:$40 sps:$4 sm:$0xff]   ;;  %v13513_v49 = vld [vmem:[#allocation6 + $0x470] ss:$40 sps:$4 sm:$0xff]  }
 0x39a   :  { %9277 = vmatpush1.bf16.msra.mxu0 %v13450_v34  ;;  %v8985_v6 = vpop.f32.mrf.mxu0  ;;  %9181 = vmatprep.subr.bf16.mxu1 %v13455_v54  ;;  %v13510_v34 = vld [vmem:[#allocation6 + $0x8d0] ss:$40 sps:$4 sm:$0xff]   ;;  %v13515_v54 = vld [vmem:[#allocation6 + $0x474] ss:$40 sps:$4 sm:$0xff]  }
 0x39b   :  { %9278 = vmatprep.subr.bf16.mxu0 %v13458_v45  ;;  %v13518_v45 = vld [vmem:[#allocation6 + $0x884] ss:$40 sps:$4 sm:$0xff]  }
 0x39c   :  { %v13521_v6 = vld [vmem:[#allocation6 + $0x424] ss:$40 sps:$4 sm:$0xff]  }
 0x39d   :  { %9182 = vmatpush2.bf16.msra.mxu1 %v13453_v46  ;;  %v13516_v46 = vld [vmem:[#allocation6 + $0x880] ss:$40 sps:$4 sm:$0xff]  }
 0x39e   :  { %9279 = vmatpush1.bf16.msra.mxu0 %v13456_v50  ;;  %9233 = vmatprep.subr.bf16.mxu1 %v13461_v51  ;;  %v13524_v50 = vld [vmem:[#allocation6 + $0x834] ss:$40 sps:$4 sm:$0xff]   ;;  %v13519_v51 = vld [vmem:[#allocation6 + $0x420] ss:$40 sps:$4 sm:$0xff]  }
 0x39f   :  { %9280 = vmatprep.subr.bf16.mxu0 %v13464_v55  ;;  %v13522_v55 = vld [vmem:[#allocation6 + $0x830] ss:$40 sps:$4 sm:$0xff]  }
 0x3a0   :  { %9184 = vmatmul.mubr.bf16.vlgmr.msra.gmra.mxu1 %v14658_v36 }
 0x3a1   :  { %9234 = vmatpush1.bf16.msra.mxu1 %v13459_v18  ;;  %9265 = vmatprep.mubr.bf16.mxu1 %v14594_v19  ;;  %v13527_v18 = vld [vmem:[#allocation6 + $0x3d4] ss:$40 sps:$4 sm:$0xff]  }
 0x3a2   :  { %9281 = vmatpush1.bf16.msra.mxu0 %v13462_v33  ;;  %9235 = vmatprep.subr.bf16.mxu1 %v13467_v27  ;;  %v13530_v33 = vld [vmem:[#allocation6 + $0x7e4] ss:$40 sps:$4 sm:$0xff]   ;;  %v13525_v27 = vld [vmem:[#allocation6 + $0x3d0] ss:$40 sps:$4 sm:$0xff]  }
 0x3a3   :  { %9282 = vmatprep.subr.bf16.mxu0 %v13470_v57  ;;  %v13528_v57 = vld [vmem:[#allocation6 + $0x7e0] ss:$40 sps:$4 sm:$0xff]  }
 0x3a5   :  { %9236 = vmatpush1.bf16.msra.mxu1 %v13465_v1  ;;  %v13533_v1 = vld [vmem:[#allocation6 + $0x384] ss:$40 sps:$4 sm:$0xff]  }
 0x3a6   :  { %9283 = vmatpush1.bf16.msra.mxu0 %v13468_v37  ;;  %9237 = vmatprep.subr.bf16.mxu1 %v13473_v61  ;;  %v13536_v37 = vld [vmem:[#allocation6 + $0x794] ss:$40 sps:$4 sm:$0xff]   ;;  %v13531_v61 = vld [vmem:[#allocation6 + $0x380] ss:$40 sps:$4 sm:$0xff]  }
 0x3a7   :  { %9284 = vmatprep.subr.bf16.mxu0 %v13476_v4  ;;  %v13534_v4 = vld [vmem:[#allocation6 + $0x790] ss:$40 sps:$4 sm:$0xff]  }
 0x3a9   :  { %9238 = vmatpush1.bf16.msra.mxu1 %v13471_v44  ;;  %v13539_v44 = vld [vmem:[#allocation6 + $0x334] ss:$40 sps:$4 sm:$0xff]  }
 0x3aa   :  { %9285 = vmatpush1.bf16.msra.mxu0 %v13474_v62  ;;  %9239 = vmatprep.subr.bf16.mxu1 %v13479_v63  ;;  %v13542_v62 = vld [vmem:[#allocation6 + $0x1144] ss:$40 sps:$4 sm:$0xff]   ;;  %v13537_v63 = vld [vmem:[#allocation6 + $0x330] ss:$40 sps:$4 sm:$0xff]  }
 0x3ab   :  { %9286 = vmatprep.subr.bf16.mxu0 %v13482_v0  ;;  %v13540_v0 = vld [vmem:[#allocation6 + $0x1140] ss:$40 sps:$4 sm:$0xff]  }
 0x3ad   :  { %9240 = vmatpush1.bf16.msra.mxu1 %v13477_v5  ;;  %v13545_v5 = vld [vmem:[#allocation6 + $0x2e4] ss:$40 sps:$4 sm:$0xff]  }
 0x3ae   :  { %9287 = vmatpush1.bf16.msra.mxu0 %v13480_v8  ;;  %9241 = vmatprep.subr.bf16.mxu1 %v13485_v11  ;;  %v13548_v8 = vld [vmem:[#allocation6 + $0x10f4] ss:$40 sps:$4 sm:$0xff]  }
 0x3af   :  { %9288 = vmatprep.subr.bf16.mxu0 %v13488_v12  ;;  %v13543_v12 = vld [vmem:[#allocation6 + $0x2e0] ss:$40 sps:$4 sm:$0xff]  }
 0x3b1   :  { %9242 = vmatpush1.bf16.msra.mxu1 %v13483_v14 }
 0x3b2   :  { %9289 = vmatpush1.bf16.msra.mxu0 %v13486_v7  ;;  %9243 = vmatprep.subr.bf16.mxu1 %v13491_v48  ;;  %v13546_v7 = vld [vmem:[#allocation6 + $0x10f0] ss:$40 sps:$4 sm:$0xff]   ;;  %v13551_v48 = vld [vmem:[#allocation6 + $0x294] ss:$40 sps:$4 sm:$0xff]  }
 0x3b3   :  { %9290 = vmatprep.subr.bf16.mxu0 %v13494_v10  ;;  %v13554_v10 = vld [vmem:[#allocation6 + $0x10a4] ss:$40 sps:$4 sm:$0xff]  }
 0x3b5   :  { %9244 = vmatpush1.bf16.msra.mxu1 %v13489_v56 }
 0x3b6   :  { %9291 = vmatpush2.bf16.msra.mxu0 %v13492_v15  ;;  %9245 = vmatprep.subr.bf16.mxu1 %v13497_v2  ;;  %v13549_v15 = vld [vmem:[#allocation6 + $0x290] ss:$40 sps:$4 sm:$0xff]  }
 0x3b7   :  { %9292 = vmatprep.subr.bf16.mxu0 %v13500_v21  ;;  %v13552_v21 = vld [vmem:[#allocation6 + $0x10a0] ss:$40 sps:$4 sm:$0xff]  }
 0x3b9   :  { %9246 = vmatpush1.bf16.msra.mxu1 %v13495_v22  ;;  %v13557_v22 = vld [vmem:[#allocation6 + $0xc44] ss:$40 sps:$4 sm:$0xff]  }
 0x3ba   :  { %9293 = vmatpush2.bf16.msra.mxu0 %v13498_v23  ;;  %9247 = vmatprep.subr.bf16.mxu1 %v13503_v13  ;;  %v13560_v23 = vld [vmem:[#allocation6 + $0x1054] ss:$40 sps:$4 sm:$0xff]   ;;  %v13555_v13 = vld [vmem:[#allocation6 + $0xc40] ss:$40 sps:$4 sm:$0xff]  }
 0x3bb   :  { %9294 = vmatprep.subr.bf16.mxu0 %v13506_v38  ;;  %v13558_v38 = vld [vmem:[#allocation6 + $0x1050] ss:$40 sps:$4 sm:$0xff]  }
 0x3bd   :  { %9248 = vmatpush1.bf16.msra.mxu1 %v13501_v9  ;;  %v13563_v9 = vld [vmem:[#allocation6 + $0xbf4] ss:$40 sps:$4 sm:$0xff]  }
 0x3be   :  { %9295 = vmatpush2.bf16.msra.mxu0 %v13504_v30  ;;  %9249 = vmatprep.subr.bf16.mxu1 %v13509_v47  ;;  %v13566_v30 = vld [vmem:[#allocation6 + $0x1004] ss:$40 sps:$4 sm:$0xff]  }
 0x3bf   :  { %9296 = vmatprep.subr.bf16.mxu0 %v13512_v3 }
 0x3c1   :  { %9250 = vmatpush2.bf16.msra.mxu1 %v13507_v28  ;;  %v13561_v28 = vld [vmem:[#allocation6 + $0xbf0] ss:$40 sps:$4 sm:$0xff]  }
 0x3c2   :  { %9297 = vmatpush2.bf16.msra.mxu0 %v13510_v34  ;;  %9251 = vmatprep.subr.bf16.mxu1 %v13515_v54  ;;  %v13564_v54 = vld [vmem:[#allocation6 + $0x1000] ss:$40 sps:$4 sm:$0xff]  }
 0x3c3   :  { %9298 = vmatprep.subr.bf16.mxu0 %v13518_v45  ;;  %v13569_v45 = vld [vmem:[#allocation6 + $0xba4] ss:$40 sps:$4 sm:$0xff]  }
 0x3c5   :  { %9252 = vmatpush2.bf16.msra.mxu1 %v13513_v49 }
 0x3c6   :  { %9299 = vmatpush2.bf16.msra.mxu0 %v13516_v46  ;;  %9253 = vmatprep.subr.bf16.mxu1 %v13521_v6  ;;  %v13572_v46 = vld [vmem:[#allocation6 + $0xfb4] ss:$40 sps:$4 sm:$0xff]  }
 0x3c7   :  { %9300 = vmatprep.subr.bf16.mxu0 %v13524_v50  ;;  %v13567_v50 = vld [vmem:[#allocation6 + $0xba0] ss:$40 sps:$4 sm:$0xff]  }
 0x3c9   :  { %9254 = vmatpush2.bf16.msra.mxu1 %v13519_v51  ;;  %v13570_v51 = vld [vmem:[#allocation6 + $0xfb0] ss:$40 sps:$4 sm:$0xff]  }
 0x3ca   :  { %9301 = vmatpush2.bf16.msra.mxu0 %v13522_v55  ;;  %9255 = vmatprep.subr.bf16.mxu1 %v13527_v18  ;;  %v13575_v55 = vld [vmem:[#allocation6 + $0xb54] ss:$40 sps:$4 sm:$0xff]   ;;  %v13578_v18 = vld [vmem:[#allocation6 + $0xf64] ss:$40 sps:$4 sm:$0xff]  }
 0x3cb   :  { %9302 = vmatprep.subr.bf16.mxu0 %v13530_v33  ;;  %v13573_v33 = vld [vmem:[#allocation6 + $0xb50] ss:$40 sps:$4 sm:$0xff]  }
 0x3cd   :  { %9256 = vmatpush2.bf16.msra.mxu1 %v13525_v27  ;;  %v13576_v27 = vld [vmem:[#allocation6 + $0xf60] ss:$40 sps:$4 sm:$0xff]  }
 0x3ce   :  { %9303 = vmatpush2.bf16.msra.mxu0 %v13528_v57  ;;  %9257 = vmatprep.subr.bf16.mxu1 %v13533_v1  ;;  %v13581_v57 = vld [vmem:[#allocation6 + $0xb04] ss:$40 sps:$4 sm:$0xff]   ;;  %v13579_v1 = vld [vmem:[#allocation6 + $0xb00] ss:$40 sps:$4 sm:$0xff]  }
 0x3cf   :  { %9304 = vmatprep.subr.bf16.mxu0 %v13536_v37  ;;  %v13582_v37 = vld [vmem:[#allocation6 + $0xf10] ss:$40 sps:$4 sm:$0xff]  }
 0x3d1   :  { %9258 = vmatpush2.bf16.msra.mxu1 %v13531_v61  ;;  %v13587_v61 = vld [vmem:[#allocation6 + $0xab4] ss:$40 sps:$4 sm:$0xff]  }
 0x3d2   :  { %9305 = vmatpush2.bf16.msra.mxu0 %v13534_v4  ;;  %9259 = vmatprep.subr.bf16.mxu1 %v13539_v44  ;;  %v13590_v4 = vld [vmem:[#allocation6 + $0x13c4] ss:$40 sps:$4 sm:$0xff]   ;;  %v13585_v44 = vld [vmem:[#allocation6 + $0xab0] ss:$40 sps:$4 sm:$0xff]  }
 0x3d3   :  { %9356 = vmatprep.subr.bf16.mxu0 %v13542_v62  ;;  %v13588_v62 = vld [vmem:[#allocation6 + $0x13c0] ss:$40 sps:$4 sm:$0xff]  }
 0x3d4   :  { %v14715_v11 = vpop.f32.mrf.mxu0 }
 0x3d5   :  { %9260 = vmatpush2.bf16.msra.mxu1 %v13537_v63  ;;  %9307 = vmatmul.mubr.bf16.vlgmr.msra.gmra.mxu0 %v14629_v53  ;;  %v13593_v63 = vld [vmem:[#allocation6 + $0xa64] ss:$40 sps:$4 sm:$0xff]  }
 0x3d6   :  { %9357 = vmatpush1.bf16.msra.mxu0 %v13540_v0  ;;  %9388 = vmatprep.mubr.bf16.mxu0 %v14647_v43  ;;  %v14719_v14 = vpop.f32.mrf.mxu0  ;;  %v13596_v0 = vld [vmem:[#allocation6 + $0x1374] ss:$40 sps:$4 sm:$0xff]  }
 0x3d7   :  { %9261 = vmatprep.subr.bf16.mxu1 %v13545_v5  ;;  %9358 = vmatprep.subr.bf16.mxu0 %v13548_v8  ;;  %v13591_v5 = vld [vmem:[#allocation6 + $0xa60] ss:$40 sps:$4 sm:$0xff]   ;;  %v13594_v8 = vld [vmem:[#allocation6 + $0x1370] ss:$40 sps:$4 sm:$0xff]  }
 0x3d8   :  { %v9066_v56 = vpop.f32.mrf.mxu0 }
 0x3d9   :  { %9262 = vmatpush2.bf16.msra.mxu1 %v13543_v12  ;;  %v13599_v12 = vld [vmem:[#allocation6 + $0xa14] ss:$40 sps:$4 sm:$0xff]   ;;  %v13605_v56 = vld [vmem:[#allocation6 + $0xec4] ss:$40 sps:$4 sm:$0xff]  }
 0x3da   :  { %9359 = vmatpush1.bf16.msra.mxu0 %v13546_v7  ;;  %v9067_v2 = vpop.f32.mrf.mxu0  ;;  %9263 = vmatprep.subr.bf16.mxu1 %v13551_v48  ;;  %v13602_v7 = vld [vmem:[#allocation6 + $0x1324] ss:$40 sps:$4 sm:$0xff]   ;;  %v13597_v48 = vld [vmem:[#allocation6 + $0xa10] ss:$40 sps:$4 sm:$0xff]  }
 0x3db   :  { %9360 = vmatprep.subr.bf16.mxu0 %v13554_v10  ;;  %v13600_v10 = vld [vmem:[#allocation6 + $0x1320] ss:$40 sps:$4 sm:$0xff]  }
 0x3dc   :  { %v13603_v2 = vld [vmem:[#allocation6 + $0xec0] ss:$40 sps:$4 sm:$0xff]  }
 0x3dd   :  { %9264 = vmatpush2.bf16.msra.mxu1 %v13549_v15  ;;  %v13608_v15 = vld [vmem:[#allocation6 + $0x12d4] ss:$40 sps:$4 sm:$0xff]  }
 0x3de   :  { %9361 = vmatpush1.bf16.msra.mxu0 %v13552_v21  ;;  %9315 = vmatprep.subr.bf16.mxu1 %v13557_v22  ;;  %v13606_v21 = vld [vmem:[#allocation6 + $0x12d0] ss:$40 sps:$4 sm:$0xff]   ;;  %v13611_v22 = vld [vmem:[#allocation6 + $0xe74] ss:$40 sps:$4 sm:$0xff]  }
 0x3df   :  { %9362 = vmatprep.subr.bf16.mxu0 %v13560_v23  ;;  %v13614_v23 = vld [vmem:[#allocation6 + $0x1284] ss:$40 sps:$4 sm:$0xff]  }
 0x3e0   :  { %9266 = vmatmul.mubr.bf16.vlgmr.msra.gmra.mxu1 %v14620_v52  ;;  %v9021_v47 = vpop.f32.mrf.mxu1 }
 0x3e1   :  { %v14723_v3 = vadd.f32 %v9021_v47, %v14706_v16  ;;  %9316 = vmatpush1.bf16.msra.mxu1 %v13555_v13  ;;  %9347 = vmatprep.mubr.bf16.mxu1 %v14622_v20  ;;  %v13609_v13 = vld [vmem:[#allocation6 + $0xe70] ss:$40 sps:$4 sm:$0xff]   ;;  %v13615_v47 = vld [vmem:[#allocation6 + $0xe20] ss:$40 sps:$4 sm:$0xff]  }
 0x3e2   :  { %9363 = vmatpush1.bf16.msra.mxu0 %v13558_v38  ;;  %v9023_v34 = vpop.f32.mrf.mxu1  ;;  %9317 = vmatprep.subr.bf16.mxu1 %v13563_v9  ;;  %v13612_v38 = vld [vmem:[#allocation6 + $0x1280] ss:$40 sps:$4 sm:$0xff]   ;;  %v13617_v9 = vld [vmem:[#allocation6 + $0xe24] ss:$40 sps:$4 sm:$0xff]  }
 0x3e3   :  { %v14727_v49 = vadd.f32 %v9023_v34, %v14711_v40  ;;  %9364 = vmatprep.subr.bf16.mxu0 %v13566_v30  ;;  %v13584_v40 = vld [vmem:[#allocation6 + $0xf14] ss:$40 sps:$4 sm:$0xff]  }
 0x3e4   :  { %v9025_v6 = vpop.f32.mrf.mxu1  ;;  %v13620_v30 = vld [vmem:[#allocation6 + $0x1234] ss:$40 sps:$4 sm:$0xff]  }
 0x3e5   :  { %9318 = vmatpush1.bf16.msra.mxu1 %v13561_v28  ;;  %v13618_v28 = vld [vmem:[#allocation6 + $0x1230] ss:$40 sps:$4 sm:$0xff]   ;;  %v13623_v34 = vld [vmem:[#allocation6 + $0xdd4] ss:$40 sps:$4 sm:$0xff]   ;;  %v13629_v6 = vld [vmem:[#allocation6 + $0xd84] ss:$40 sps:$4 sm:$0xff]  }
 0x3e6   :  { %9365 = vmatpush1.bf16.msra.mxu0 %v13564_v54  ;;  %v9026_v16 = vpop.f32.mrf.mxu1  ;;  %9319 = vmatprep.subr.bf16.mxu1 %v13569_v45  ;;  %v13626_v54 = vld [vmem:[#allocation6 + $0x11e4] ss:$40 sps:$4 sm:$0xff]   ;;  %v13621_v45 = vld [vmem:[#allocation6 + $0xdd0] ss:$40 sps:$4 sm:$0xff]  }
 0x3e7   :  { %9366 = vmatprep.subr.bf16.mxu0 %v13572_v46  ;;  %v13624_v46 = vld [vmem:[#allocation6 + $0x11e0] ss:$40 sps:$4 sm:$0xff]  }
 0x3e8   :  { %v13627_v16 = vld [vmem:[#allocation6 + $0xd80] ss:$40 sps:$4 sm:$0xff]  }
 0x3e9   :  { %9320 = vmatpush1.bf16.msra.mxu1 %v13567_v50  ;;  %v13632_v50 = vld [vmem:[#allocation6 + $0x1194] ss:$40 sps:$4 sm:$0xff]  }
 0x3ea   :  { %9367 = vmatpush1.bf16.msra.mxu0 %v13570_v51  ;;  %9321 = vmatprep.subr.bf16.mxu1 %v13575_v55  ;;  %v13630_v51 = vld [vmem:[#allocation6 + $0x1190] ss:$40 sps:$4 sm:$0xff]   ;;  %v13635_v55 = vld [vmem:[#allocation6 + $0xd34] ss:$40 sps:$4 sm:$0xff]  }
 0x3eb   :  { %9368 = vmatprep.subr.bf16.mxu0 %v13578_v18  ;;  %v13638_v18 = vld [vmem:[#allocation6 + $0x24c] ss:$40 sps:$4 sm:$0xff]  }
 0x3ed   :  { %9322 = vmatpush1.bf16.msra.mxu1 %v13573_v33  ;;  %v13633_v33 = vld [vmem:[#allocation6 + $0xd30] ss:$40 sps:$4 sm:$0xff]  }
 0x3ee   :  { %9369 = vmatpush1.bf16.msra.mxu0 %v13576_v27  ;;  %9323 = vmatprep.subr.bf16.mxu1 %v13581_v57  ;;  %v13636_v27 = vld [vmem:[#allocation6 + $0x248] ss:$40 sps:$4 sm:$0xff]   ;;  %v13641_v57 = vld [vmem:[#allocation6 + $0xce4] ss:$40 sps:$4 sm:$0xff]  }
 0x3ef   :  { %9370 = vmatprep.subr.bf16.mxu0 %v13584_v40  ;;  %v13644_v40 = vld [vmem:[#allocation6 + $0x1fc] ss:$40 sps:$4 sm:$0xff]  }
 0x3f1   :  { %9324 = vmatpush1.bf16.msra.mxu1 %v13579_v1 }
 0x3f2   :  { %9371 = vmatpush1.bf16.msra.mxu0 %v13582_v37  ;;  %9325 = vmatprep.subr.bf16.mxu1 %v13587_v61  ;;  %v13639_v37 = vld [vmem:[#allocation6 + $0xce0] ss:$40 sps:$4 sm:$0xff]  }
 0x3f3   :  { %9372 = vmatprep.subr.bf16.mxu0 %v13590_v4  ;;  %v13642_v61 = vld [vmem:[#allocation6 + $0x1f8] ss:$40 sps:$4 sm:$0xff]   ;;  %v13647_v4 = vld [vmem:[#allocation6 + $0xc94] ss:$40 sps:$4 sm:$0xff]  }
 0x3f5   :  { %9326 = vmatpush1.bf16.msra.mxu1 %v13585_v44 }
 0x3f6   :  { %9373 = vmatpush2.bf16.msra.mxu0 %v13588_v62  ;;  %9327 = vmatprep.subr.bf16.mxu1 %v13593_v63  ;;  %v13650_v62 = vld [vmem:[#allocation6 + $0x1ac] ss:$40 sps:$4 sm:$0xff]  }
 0x3f7   :  { %9374 = vmatprep.subr.bf16.mxu0 %v13596_v0  ;;  %v13645_v0 = vld [vmem:[#allocation6 + $0xc90] ss:$40 sps:$4 sm:$0xff]  }
 0x3f9   :  { %9328 = vmatpush1.bf16.msra.mxu1 %v13591_v5  ;;  %v13648_v5 = vld [vmem:[#allocation6 + $0x1a8] ss:$40 sps:$4 sm:$0xff]  }
 0x3fa   :  { %9375 = vmatpush2.bf16.msra.mxu0 %v13594_v8  ;;  %9329 = vmatprep.subr.bf16.mxu1 %v13599_v12  ;;  %v13653_v8 = vld [vmem:[#allocation6 + $0x1644] ss:$40 sps:$4 sm:$0xff]   ;;  %v4784_v12 = vrot.slane %v14689_v24, %v611_v58 }
 0x3fb   :  { %9376 = vmatprep.subr.bf16.mxu0 %v13602_v7 }
 0x3fd   :  { %9330 = vmatpush1.bf16.msra.mxu1 %v13597_v48  ;;  %v13656_v48 = vld [vmem:[#allocation6 + $0x15c] ss:$40 sps:$4 sm:$0xff]  }
 0x3fe   :  { %9377 = vmatpush2.bf16.msra.mxu0 %v13600_v10  ;;  %9331 = vmatprep.subr.bf16.mxu1 %v13605_v56  ;;  %v4788_v10 = vrot.slane %v14689_v24, %v615_v31  ;;  %v13651_v56 = vld [vmem:[#allocation6 + $0x1640] ss:$40 sps:$4 sm:$0xff]   ;;  %v13657_v31 = vld [vmem:[#allocation6 + $0x15f0] ss:$40 sps:$4 sm:$0xff]  }
 0x3ff   :  { %9378 = vmatprep.subr.bf16.mxu0 %v13608_v15  ;;  %v13654_v15 = vld [vmem:[#allocation6 + $0x158] ss:$40 sps:$4 sm:$0xff]  }
 0x400   :  { %v9065_v58 = vadd.f32 %v14719_v14, %v4788_v10  ;;  %v13707_v10 = vld [vmem:[#allocation6 + $0x1874] ss:$40 sps:$4 sm:$0xff]  }
 0x401   :  { %9332 = vmatpush2.bf16.msra.mxu1 %v13603_v2  ;;  %v13659_v2 = vld [vmem:[#allocation6 + $0x15f4] ss:$40 sps:$4 sm:$0xff]  }
 0x402   :  { %9379 = vmatpush2.bf16.msra.mxu0 %v13606_v21  ;;  %9333 = vmatprep.subr.bf16.mxu1 %v13611_v22  ;;  %v9063_v21 = vadd.f32 %v14715_v11, %v4784_v12  ;;  %v13662_v22 = vld [vmem:[#allocation6 + $0x10c] ss:$40 sps:$4 sm:$0xff]   ;;  %v13668_v11 = vld [vmem:[#allocation6 + $0xbc] ss:$40 sps:$4 sm:$0xff]  }
 0x403   :  { %9380 = vmatprep.subr.bf16.mxu0 %v13614_v23  ;;  %v13704_v12 = vld [vmem:[#allocation6 + $0x3dc] ss:$40 sps:$4 sm:$0xff]  }
 0x405   :  { %9334 = vmatpush2.bf16.msra.mxu1 %v13609_v13 }
 0x406   :  { %9381 = vmatpush2.bf16.msra.mxu0 %v13612_v38  ;;  %9335 = vmatprep.subr.bf16.mxu1 %v13617_v9  ;;  %v13660_v38 = vld [vmem:[#allocation6 + $0x108] ss:$40 sps:$4 sm:$0xff]   ;;  %v13665_v9 = vld [vmem:[#allocation6 + $0x15a4] ss:$40 sps:$4 sm:$0xff]  }
 0x407   :  { %9382 = vmatprep.subr.bf16.mxu0 %v13620_v30 }
 0x409   :  { %9336 = vmatpush2.bf16.msra.mxu1 %v13615_v47 }
 0x40a   :  { %9383 = vmatpush2.bf16.msra.mxu0 %v13618_v28  ;;  %9337 = vmatprep.subr.bf16.mxu1 %v13623_v34  ;;  %v13663_v34 = vld [vmem:[#allocation6 + $0x15a0] ss:$40 sps:$4 sm:$0xff]  }
 0x40b   :  { %9384 = vmatprep.subr.bf16.mxu0 %v13626_v54 }
 0x40d   :  { %9338 = vmatpush2.bf16.msra.mxu1 %v13621_v45  ;;  %v13666_v45 = vld [vmem:[#allocation6 + $0xb8] ss:$40 sps:$4 sm:$0xff]  }
 0x40e   :  { %9385 = vmatpush2.bf16.msra.mxu0 %v13624_v46  ;;  %9339 = vmatprep.subr.bf16.mxu1 %v13629_v6  ;;  %v13671_v46 = vld [vmem:[#allocation6 + $0x1554] ss:$40 sps:$4 sm:$0xff]  }
 0x40f   :  { %9386 = vmatprep.subr.bf16.mxu0 %v13632_v50  ;;  %v13674_v6 = vld [vmem:[#allocation6 + $0x6c] ss:$40 sps:$4 sm:$0xff]   ;;  %v13669_v50 = vld [vmem:[#allocation6 + $0x1550] ss:$40 sps:$4 sm:$0xff]  }
 0x411   :  { %9340 = vmatpush2.bf16.msra.mxu1 %v13627_v16  ;;  %v13672_v16 = vld [vmem:[#allocation6 + $0x68] ss:$40 sps:$4 sm:$0xff]  }
 0x412   :  { %9387 = vmatpush2.bf16.msra.mxu0 %v13630_v51  ;;  %9341 = vmatprep.subr.bf16.mxu1 %v13635_v55  ;;  %v13677_v51 = vld [vmem:[#allocation6 + $0x1504] ss:$40 sps:$4 sm:$0xff]  }
 0x413   :  { %9438 = vmatprep.subr.bf16.mxu0 %v13638_v18  ;;  %v13680_v55 = vld [vmem:[#allocation6 + $0x1c] ss:$40 sps:$4 sm:$0xff]   ;;  %v13675_v18 = vld [vmem:[#allocation6 + $0x1500] ss:$40 sps:$4 sm:$0xff]  }
 0x415   :  { %v9144_v1 = vpop.f32.mrf.mxu0  ;;  %9342 = vmatpush2.bf16.msra.mxu1 %v13633_v33  ;;  %9389 = vmatmul.mubr.bf16.vlgmr.msra.gmra.mxu0 %v14658_v36  ;;  %v13678_v33 = vld [vmem:[#allocation6 + $0x18] ss:$40 sps:$4 sm:$0xff]  }
 0x416   :  { %9439 = vmatpush1.bf16.msra.mxu0 %v13636_v27  ;;  %9470 = vmatprep.mubr.bf16.mxu0 %v14594_v19  ;;  %v13683_v27 = vld [vmem:[#allocation6 + $0x14b4] ss:$40 sps:$4 sm:$0xff]  }
 0x417   :  { %v9146_v44 = vpop.f32.mrf.mxu0  ;;  %9343 = vmatprep.subr.bf16.mxu1 %v13641_v57  ;;  %9440 = vmatprep.subr.bf16.mxu0 %v13644_v40  ;;  %v13686_v57 = vld [vmem:[#allocation6 + $0x4cc] ss:$40 sps:$4 sm:$0xff]   ;;  %v13681_v40 = vld [vmem:[#allocation6 + $0x14b0] ss:$40 sps:$4 sm:$0xff]  }
 0x419   :  { %v9148_v63 = vpop.f32.mrf.mxu0  ;;  %9344 = vmatpush2.bf16.msra.mxu1 %v13639_v37  ;;  %v13689_v37 = vld [vmem:[#allocation6 + $0x1464] ss:$40 sps:$4 sm:$0xff]  }
 0x41a   :  { %9441 = vmatpush1.bf16.msra.mxu0 %v13642_v61  ;;  %9345 = vmatprep.subr.bf16.mxu1 %v13647_v4  ;;  %v13692_v61 = vld [vmem:[#allocation6 + $0x47c] ss:$40 sps:$4 sm:$0xff]   ;;  %v13687_v4 = vld [vmem:[#allocation6 + $0x1460] ss:$40 sps:$4 sm:$0xff]   ;;  %v13698_v63 = vld [vmem:[#allocation6 + $0x42c] ss:$40 sps:$4 sm:$0xff]  }
 0x41b   :  { %v9149_v7 = vpop.f32.mrf.mxu0  ;;  %9442 = vmatprep.subr.bf16.mxu0 %v13650_v62  ;;  %v13695_v62 = vld [vmem:[#allocation6 + $0x1414] ss:$40 sps:$4 sm:$0xff]  }
 0x41c   :  { %v13699_v7 = vld [vmem:[#allocation6 + $0x18c0] ss:$40 sps:$4 sm:$0xff]  }
 0x41d   :  { %9346 = vmatpush2.bf16.msra.mxu1 %v13645_v0  ;;  %v13693_v0 = vld [vmem:[#allocation6 + $0x1410] ss:$40 sps:$4 sm:$0xff]  }
 0x41e   :  { %9443 = vmatpush1.bf16.msra.mxu0 %v13648_v5  ;;  %9397 = vmatprep.subr.bf16.mxu1 %v13653_v8  ;;  %v13696_v5 = vld [vmem:[#allocation6 + $0x428] ss:$40 sps:$4 sm:$0xff]   ;;  %v13701_v8 = vld [vmem:[#allocation6 + $0x18c4] ss:$40 sps:$4 sm:$0xff]  }
 0x41f   :  { %9444 = vmatprep.subr.bf16.mxu0 %v13656_v48  ;;  %v13702_v48 = vld [vmem:[#allocation6 + $0x3d8] ss:$40 sps:$4 sm:$0xff]  }
 0x420   :  { %v9103_v23 = vpop.f32.mrf.mxu1  ;;  %9348 = vmatmul.mubr.bf16.vlgmr.msra.gmra.mxu1 %v14644_v29 }
 0x421   :  { %v9104_v13 = vadd.f32 %v9103_v23, %v9063_v21  ;;  %9398 = vmatpush1.bf16.msra.mxu1 %v13651_v56  ;;  %9429 = vmatprep.mubr.bf16.mxu1 %v14678_v60  ;;  %v13710_v56 = vld [vmem:[#allocation6 + $0x38c] ss:$40 sps:$4 sm:$0xff]   ;;  %v13711_v23 = vld [vmem:[#allocation6 + $0x1820] ss:$40 sps:$4 sm:$0xff]  }
 0x422   :  { %v9105_v24 = vpop.f32.mrf.mxu1  ;;  %9445 = vmatpush1.bf16.msra.mxu0 %v13654_v15  ;;  %9399 = vmatprep.subr.bf16.mxu1 %v13659_v2  ;;  %v13705_v15 = vld [vmem:[#allocation6 + $0x1870] ss:$40 sps:$4 sm:$0xff]   ;;  %v13713_v21 = vld [vmem:[#allocation6 + $0x1824] ss:$40 sps:$4 sm:$0xff]  }
 0x423   :  { %v9106_v30 = vadd.f32 %v9105_v24, %v9065_v58  ;;  %9446 = vmatprep.subr.bf16.mxu0 %v13662_v22  ;;  %v14741_v47 = vadd.f32 %v9144_v1, %v9104_v13  ;;  %v13684_v1 = vld [vmem:[#allocation6 + $0x4c8] ss:$40 sps:$4 sm:$0xff]   ;;  %v13716_v22 = vld [vmem:[#allocation6 + $0x33c] ss:$40 sps:$4 sm:$0xff]   ;;  %v13714_v58 = vld [vmem:[#allocation6 + $0x338] ss:$40 sps:$4 sm:$0xff]  }
 0x424   :  { %v9107_v28 = vpop.f32.mrf.mxu1  ;;  %v13708_v2 = vld [vmem:[#allocation6 + $0x388] ss:$40 sps:$4 sm:$0xff]   ;;  %v13719_v13 = vld [vmem:[#allocation6 + $0x17d4] ss:$40 sps:$4 sm:$0xff]  }
 0x425   :  { %9400 = vmatpush1.bf16.msra.mxu1 %v13657_v31  ;;  %v14743_v54 = vadd.f32 %v9146_v44, %v9106_v30  ;;  %v13690_v44 = vld [vmem:[#allocation6 + $0x478] ss:$40 sps:$4 sm:$0xff]   ;;  %v13722_v31 = vld [vmem:[#allocation6 + $0x2ec] ss:$40 sps:$4 sm:$0xff]   ;;  %v13728_v30 = vld [vmem:[#allocation6 + $0x29c] ss:$40 sps:$4 sm:$0xff]  }
 0x426   :  { %v9108_v14 = vpop.f32.mrf.mxu1  ;;  %9447 = vmatpush1.bf16.msra.mxu0 %v13660_v38  ;;  %9401 = vmatprep.subr.bf16.mxu1 %v13665_v9  ;;  %v13717_v24 = vld [vmem:[#allocation6 + $0x17d0] ss:$40 sps:$4 sm:$0xff]   ;;  %v13725_v9 = vld [vmem:[#allocation6 + $0x1784] ss:$40 sps:$4 sm:$0xff]  }
 0x427   :  { %9448 = vmatprep.subr.bf16.mxu0 %v13668_v11  ;;  %v13720_v38 = vld [vmem:[#allocation6 + $0x2e8] ss:$40 sps:$4 sm:$0xff]   ;;  %v13726_v28 = vld [vmem:[#allocation6 + $0x298] ss:$40 sps:$4 sm:$0xff]   ;;  %v13734_v14 = vld [vmem:[#allocation6 + $0xc4c] ss:$40 sps:$4 sm:$0xff]  }
 0x428   :  { %v13723_v11 = vld [vmem:[#allocation6 + $0x1780] ss:$40 sps:$4 sm:$0xff]  }
 0x429   :  { %9402 = vmatpush1.bf16.msra.mxu1 %v13663_v34  ;;  %v13731_v34 = vld [vmem:[#allocation6 + $0x1734] ss:$40 sps:$4 sm:$0xff]  }
 0x42a   :  { %9449 = vmatpush1.bf16.msra.mxu0 %v13666_v45  ;;  %9403 = vmatprep.subr.bf16.mxu1 %v13671_v46  ;;  %v13729_v45 = vld [vmem:[#allocation6 + $0x1730] ss:$40 sps:$4 sm:$0xff]  }
 0x42b   :  { %9450 = vmatprep.subr.bf16.mxu0 %v13674_v6  ;;  %v13732_v46 = vld [vmem:[#allocation6 + $0xc48] ss:$40 sps:$4 sm:$0xff]   ;;  %v13737_v6 = vld [vmem:[#allocation6 + $0x16e4] ss:$40 sps:$4 sm:$0xff]  }
 0x42d   :  { %9404 = vmatpush1.bf16.msra.mxu1 %v13669_v50  ;;  %v13740_v50 = vld [vmem:[#allocation6 + $0xbfc] ss:$40 sps:$4 sm:$0xff]  }
 0x42e   :  { %9451 = vmatpush1.bf16.msra.mxu0 %v13672_v16  ;;  %9405 = vmatprep.subr.bf16.mxu1 %v13677_v51  ;;  %v13735_v51 = vld [vmem:[#allocation6 + $0x16e0] ss:$40 sps:$4 sm:$0xff]  }
 0x42f   :  { %9452 = vmatprep.subr.bf16.mxu0 %v13680_v55  ;;  %v13738_v55 = vld [vmem:[#allocation6 + $0xbf8] ss:$40 sps:$4 sm:$0xff]  }
 0x431   :  { %9406 = vmatpush1.bf16.msra.mxu1 %v13675_v18  ;;  %v13743_v18 = vld [vmem:[#allocation6 + $0x1694] ss:$40 sps:$4 sm:$0xff]  }
 0x432   :  { %9453 = vmatpush1.bf16.msra.mxu0 %v13678_v33  ;;  %9407 = vmatprep.subr.bf16.mxu1 %v13683_v27  ;;  %v13746_v27 = vld [vmem:[#allocation6 + $0xbac] ss:$40 sps:$4 sm:$0xff]  }
 0x433   :  { %9454 = vmatprep.subr.bf16.mxu0 %v13686_v57 }
 0x435   :  { %9408 = vmatpush1.bf16.msra.mxu1 %v13681_v40  ;;  %v13741_v40 = vld [vmem:[#allocation6 + $0x1690] ss:$40 sps:$4 sm:$0xff]  }
 0x436   :  { %9455 = vmatpush2.bf16.msra.mxu0 %v13684_v1  ;;  %9409 = vmatprep.subr.bf16.mxu1 %v13689_v37  ;;  %v13744_v1 = vld [vmem:[#allocation6 + $0xba8] ss:$40 sps:$4 sm:$0xff]   ;;  %v13749_v37 = vld [vmem:[#allocation6 + $0x74c] ss:$40 sps:$4 sm:$0xff]  }
 0x437   :  { %9456 = vmatprep.subr.bf16.mxu0 %v13692_v61 }
 0x439   :  { %9410 = vmatpush1.bf16.msra.mxu1 %v13687_v4  ;;  %v13752_v4 = vld [vmem:[#allocation6 + $0xb5c] ss:$40 sps:$4 sm:$0xff]  }
 0x43a   :  { %9457 = vmatpush2.bf16.msra.mxu0 %v13690_v44  ;;  %9411 = vmatprep.subr.bf16.mxu1 %v13695_v62  ;;  %v13747_v44 = vld [vmem:[#allocation6 + $0x748] ss:$40 sps:$4 sm:$0xff]   ;;  %v13750_v62 = vld [vmem:[#allocation6 + $0xb58] ss:$40 sps:$4 sm:$0xff]  }
 0x43b   :  { %9458 = vmatprep.subr.bf16.mxu0 %v13698_v63  ;;  %v13755_v63 = vld [vmem:[#allocation6 + $0x6fc] ss:$40 sps:$4 sm:$0xff]  }
 0x43d   :  { %9412 = vmatpush1.bf16.msra.mxu1 %v13693_v0  ;;  %v13758_v0 = vld [vmem:[#allocation6 + $0xb0c] ss:$40 sps:$4 sm:$0xff]  }
 0x43e   :  { %9459 = vmatpush2.bf16.msra.mxu0 %v13696_v5  ;;  %9413 = vmatprep.subr.bf16.mxu1 %v13701_v8 }
 0x43f   :  { %9460 = vmatprep.subr.bf16.mxu0 %v13704_v12  ;;  %v13753_v12 = vld [vmem:[#allocation6 + $0x6f8] ss:$40 sps:$4 sm:$0xff]  }
 0x441   :  { %9414 = vmatpush2.bf16.msra.mxu1 %v13699_v7 }
 0x442   :  { %9461 = vmatpush2.bf16.msra.mxu0 %v13702_v48  ;;  %9415 = vmatprep.subr.bf16.mxu1 %v13707_v10  ;;  %v13756_v48 = vld [vmem:[#allocation6 + $0xb08] ss:$40 sps:$4 sm:$0xff]   ;;  %v13761_v10 = vld [vmem:[#allocation6 + $0x6ac] ss:$40 sps:$4 sm:$0xff]  }
 0x443   :  { %9462 = vmatprep.subr.bf16.mxu0 %v13710_v56 }
 0x445   :  { %9416 = vmatpush2.bf16.msra.mxu1 %v13705_v15 }
 0x446   :  { %9463 = vmatpush2.bf16.msra.mxu0 %v13708_v2  ;;  %9417 = vmatprep.subr.bf16.mxu1 %v13713_v21  ;;  %v13764_v2 = vld [vmem:[#allocation6 + $0xabc] ss:$40 sps:$4 sm:$0xff]  }
 0x447   :  { %9464 = vmatprep.subr.bf16.mxu0 %v13716_v22 }
 0x449   :  { %9418 = vmatpush2.bf16.msra.mxu1 %v13711_v23 }
 0x44a   :  { %9465 = vmatpush2.bf16.msra.mxu0 %v13714_v58  ;;  %9419 = vmatprep.subr.bf16.mxu1 %v13719_v13  ;;  %v13762_v58 = vld [vmem:[#allocation6 + $0xab8] ss:$40 sps:$4 sm:$0xff]   ;;  %v13767_v13 = vld [vmem:[#allocation6 + $0x65c] ss:$40 sps:$4 sm:$0xff]  }
 0x44b   :  { %9466 = vmatprep.subr.bf16.mxu0 %v13722_v31  ;;  %v13770_v31 = vld [vmem:[#allocation6 + $0xa6c] ss:$40 sps:$4 sm:$0xff]  }
 0x44d   :  { %9420 = vmatpush2.bf16.msra.mxu1 %v13717_v24  ;;  %v13765_v24 = vld [vmem:[#allocation6 + $0x658] ss:$40 sps:$4 sm:$0xff]  }
 0x44e   :  { %9467 = vmatpush2.bf16.msra.mxu0 %v13720_v38  ;;  %9421 = vmatprep.subr.bf16.mxu1 %v13725_v9  ;;  %v13768_v38 = vld [vmem:[#allocation6 + $0xa68] ss:$40 sps:$4 sm:$0xff]   ;;  %v13776_v9 = vld [vmem:[#allocation6 + $0xa1c] ss:$40 sps:$4 sm:$0xff]  }
 0x44f   :  { %9468 = vmatprep.subr.bf16.mxu0 %v13728_v30  ;;  %v13771_v30 = vld [vmem:[#allocation6 + $0x608] ss:$40 sps:$4 sm:$0xff]  }
 0x451   :  { %9422 = vmatpush2.bf16.msra.mxu1 %v13723_v11  ;;  %v13774_v11 = vld [vmem:[#allocation6 + $0xa18] ss:$40 sps:$4 sm:$0xff]  }
 0x452   :  { %9469 = vmatpush2.bf16.msra.mxu0 %v13726_v28  ;;  %9423 = vmatprep.subr.bf16.mxu1 %v13731_v34  ;;  %v13779_v28 = vld [vmem:[#allocation6 + $0x5bc] ss:$40 sps:$4 sm:$0xff]   ;;  %v13782_v34 = vld [vmem:[#allocation6 + $0xecc] ss:$40 sps:$4 sm:$0xff]  }
 0x453   :  { %9520 = vmatprep.subr.bf16.mxu0 %v13734_v14  ;;  %v13777_v14 = vld [vmem:[#allocation6 + $0x5b8] ss:$40 sps:$4 sm:$0xff]  }
 0x455   :  { %v9226_v16 = vpop.f32.mrf.mxu0  ;;  %9424 = vmatpush2.bf16.msra.mxu1 %v13729_v45  ;;  %9471 = vmatmul.mubr.bf16.vlgmr.msra.gmra.mxu0 %v14620_v52  ;;  %v13780_v45 = vld [vmem:[#allocation6 + $0xec8] ss:$40 sps:$4 sm:$0xff]  }
 0x456   :  { %9521 = vmatpush1.bf16.msra.mxu0 %v13732_v46  ;;  %9552 = vmatprep.mubr.bf16.mxu0 %v14622_v20  ;;  %v13785_v46 = vld [vmem:[#allocation6 + $0x56c] ss:$40 sps:$4 sm:$0xff]  }
 0x457   :  { %v9228_v33 = vpop.f32.mrf.mxu0  ;;  %9425 = vmatprep.subr.bf16.mxu1 %v13737_v6  ;;  %9522 = vmatprep.subr.bf16.mxu0 %v13740_v50  ;;  %v13788_v6 = vld [vmem:[#allocation6 + $0xe7c] ss:$40 sps:$4 sm:$0xff]   ;;  %v13783_v50 = vld [vmem:[#allocation6 + $0x568] ss:$40 sps:$4 sm:$0xff]  }
 0x459   :  { %v9230_v57 = vpop.f32.mrf.mxu0  ;;  %9426 = vmatpush2.bf16.msra.mxu1 %v13735_v51  ;;  %v13791_v51 = vld [vmem:[#allocation6 + $0x51c] ss:$40 sps:$4 sm:$0xff]  }
 0x45a   :  { %9523 = vmatpush1.bf16.msra.mxu0 %v13738_v55  ;;  %9427 = vmatprep.subr.bf16.mxu1 %v13743_v18  ;;  %v13794_v55 = vld [vmem:[#allocation6 + $0xe2c] ss:$40 sps:$4 sm:$0xff]   ;;  %v13789_v18 = vld [vmem:[#allocation6 + $0x518] ss:$40 sps:$4 sm:$0xff]   ;;  %v13800_v57 = vld [vmem:[#allocation6 + $0xddc] ss:$40 sps:$4 sm:$0xff]  }
 0x45b   :  { %v9231_v61 = vpop.f32.mrf.mxu0  ;;  %9524 = vmatprep.subr.bf16.mxu0 %v13746_v27  ;;  %v13797_v27 = vld [vmem:[#allocation6 + $0x9cc] ss:$40 sps:$4 sm:$0xff]  }
 0x45c   :  { %v13806_v61 = vld [vmem:[#allocation6 + $0xd8c] ss:$40 sps:$4 sm:$0xff]  }
 0x45d   :  { %9428 = vmatpush2.bf16.msra.mxu1 %v13741_v40  ;;  %v13795_v40 = vld [vmem:[#allocation6 + $0x9c8] ss:$40 sps:$4 sm:$0xff]  }
 0x45e   :  { %9525 = vmatpush1.bf16.msra.mxu0 %v13744_v1  ;;  %9479 = vmatprep.subr.bf16.mxu1 %v13749_v37  ;;  %v13798_v1 = vld [vmem:[#allocation6 + $0xdd8] ss:$40 sps:$4 sm:$0xff]   ;;  %v13803_v37 = vld [vmem:[#allocation6 + $0x97c] ss:$40 sps:$4 sm:$0xff]  }
 0x45f   :  { %9526 = vmatprep.subr.bf16.mxu0 %v13752_v4  ;;  %v13801_v4 = vld [vmem:[#allocation6 + $0x978] ss:$40 sps:$4 sm:$0xff]  }
 0x460   :  { %v9185_v5 = vpop.f32.mrf.mxu1  ;;  %9430 = vmatmul.mubr.bf16.vlgmr.msra.gmra.mxu1 %v14680_v17 }
 0x461   :  { %v9186_v8 = vadd.f32 %v9185_v5, %v14741_v47  ;;  %9480 = vmatpush1.bf16.msra.mxu1 %v13747_v44  ;;  %9511 = vmatprep.mubr.bf16.mxu1 %v14610_v26  ;;  %v13759_v47 = vld [vmem:[#allocation6 + $0x6a8] ss:$40 sps:$4 sm:$0xff]   ;;  %v13810_v5 = vld [vmem:[#allocation6 + $0xd38] ss:$40 sps:$4 sm:$0xff]  }
 0x462   :  { %v9187_v7 = vpop.f32.mrf.mxu1  ;;  %9527 = vmatpush1.bf16.msra.mxu0 %v13750_v62  ;;  %9481 = vmatprep.subr.bf16.mxu1 %v13755_v63  ;;  %v13804_v44 = vld [vmem:[#allocation6 + $0xd88] ss:$40 sps:$4 sm:$0xff]   ;;  %v13809_v62 = vld [vmem:[#allocation6 + $0x92c] ss:$40 sps:$4 sm:$0xff]   ;;  %v13812_v63 = vld [vmem:[#allocation6 + $0xd3c] ss:$40 sps:$4 sm:$0xff]  }
 0x463   :  { %v14750_v56 = vadd.f32 %v9226_v16, %v9186_v8  ;;  %v9188_v15 = vadd.f32 %v9187_v7, %v14743_v54  ;;  %9528 = vmatprep.subr.bf16.mxu0 %v13758_v0  ;;  %v13773_v54 = vld [vmem:[#allocation6 + $0x60c] ss:$40 sps:$4 sm:$0xff]   ;;  %v13786_v16 = vld [vmem:[#allocation6 + $0xe78] ss:$40 sps:$4 sm:$0xff]   ;;  %v13807_v0 = vld [vmem:[#allocation6 + $0x928] ss:$40 sps:$4 sm:$0xff]  }
 0x464   :  { %v9189_v21 = vpop.f32.mrf.mxu1  ;;  %v13815_v8 = vld [vmem:[#allocation6 + $0x8dc] ss:$40 sps:$4 sm:$0xff]   ;;  %v13813_v7 = vld [vmem:[#allocation6 + $0x8d8] ss:$40 sps:$4 sm:$0xff]  }
 0x465   :  { %v14753_v22 = vadd.f32 %v9228_v33, %v9188_v15  ;;  %9482 = vmatpush1.bf16.msra.mxu1 %v13753_v12  ;;  %v13792_v33 = vld [vmem:[#allocation6 + $0xe28] ss:$40 sps:$4 sm:$0xff]   ;;  %v13818_v12 = vld [vmem:[#allocation6 + $0xcec] ss:$40 sps:$4 sm:$0xff]   ;;  %v13824_v15 = vld [vmem:[#allocation6 + $0xc9c] ss:$40 sps:$4 sm:$0xff]  }
 0x466   :  { %v9190_v23 = vpop.f32.mrf.mxu1  ;;  %9529 = vmatpush1.bf16.msra.mxu0 %v13756_v48  ;;  %9483 = vmatprep.subr.bf16.mxu1 %v13761_v10  ;;  %v13816_v48 = vld [vmem:[#allocation6 + $0xce8] ss:$40 sps:$4 sm:$0xff]   ;;  %v13821_v10 = vld [vmem:[#allocation6 + $0x88c] ss:$40 sps:$4 sm:$0xff]   ;;  %v13822_v21 = vld [vmem:[#allocation6 + $0xc98] ss:$40 sps:$4 sm:$0xff]  }
 0x467   :  { %9530 = vmatprep.subr.bf16.mxu0 %v13764_v2  ;;  %v13819_v2 = vld [vmem:[#allocation6 + $0x888] ss:$40 sps:$4 sm:$0xff]   ;;  %v13830_v23 = vld [vmem:[#allocation6 + $0x164c] ss:$40 sps:$4 sm:$0xff]  }
 0x469   :  { %9484 = vmatpush1.bf16.msra.mxu1 %v13759_v47  ;;  %v13827_v47 = vld [vmem:[#allocation6 + $0x83c] ss:$40 sps:$4 sm:$0xff]  }
 0x46a   :  { %9531 = vmatpush1.bf16.msra.mxu0 %v13762_v58  ;;  %9485 = vmatprep.subr.bf16.mxu1 %v13767_v13  ;;  %v13825_v58 = vld [vmem:[#allocation6 + $0x838] ss:$40 sps:$4 sm:$0xff]   ;;  %v13828_v13 = vld [vmem:[#allocation6 + $0x1648] ss:$40 sps:$4 sm:$0xff]  }
 0x46b   :  { %9532 = vmatprep.subr.bf16.mxu0 %v13770_v31  ;;  %v13833_v31 = vld [vmem:[#allocation6 + $0x7ec] ss:$40 sps:$4 sm:$0xff]  }
 0x46d   :  { %9486 = vmatpush1.bf16.msra.mxu1 %v13765_v24  ;;  %v13836_v24 = vld [vmem:[#allocation6 + $0x15fc] ss:$40 sps:$4 sm:$0xff]  }
 0x46e   :  { %9533 = vmatpush1.bf16.msra.mxu0 %v13768_v38  ;;  %9487 = vmatprep.subr.bf16.mxu1 %v13773_v54  ;;  %v13831_v54 = vld [vmem:[#allocation6 + $0x7e8] ss:$40 sps:$4 sm:$0xff]  }
 0x46f   :  { %9534 = vmatprep.subr.bf16.mxu0 %v13776_v9  ;;  %v13834_v9 = vld [vmem:[#allocation6 + $0x15f8] ss:$40 sps:$4 sm:$0xff]  }
 0x471   :  { %9488 = vmatpush1.bf16.msra.mxu1 %v13771_v30  ;;  %v13839_v30 = vld [vmem:[#allocation6 + $0x79c] ss:$40 sps:$4 sm:$0xff]  }
 0x472   :  { %9535 = vmatpush1.bf16.msra.mxu0 %v13774_v11  ;;  %9489 = vmatprep.subr.bf16.mxu1 %v13779_v28  ;;  %v13842_v28 = vld [vmem:[#allocation6 + $0x15ac] ss:$40 sps:$4 sm:$0xff]  }
 0x473   :  { %9536 = vmatprep.subr.bf16.mxu0 %v13782_v34 }
 0x475   :  { %9490 = vmatpush1.bf16.msra.mxu1 %v13777_v14  ;;  %v13837_v14 = vld [vmem:[#allocation6 + $0x798] ss:$40 sps:$4 sm:$0xff]  }
 0x476   :  { %9537 = vmatpush2.bf16.msra.mxu0 %v13780_v45  ;;  %9491 = vmatprep.subr.bf16.mxu1 %v13785_v46  ;;  %v13840_v45 = vld [vmem:[#allocation6 + $0x15a8] ss:$40 sps:$4 sm:$0xff]   ;;  %v13845_v46 = vld [vmem:[#allocation6 + $0x114c] ss:$40 sps:$4 sm:$0xff]  }
 0x477   :  { %9538 = vmatprep.subr.bf16.mxu0 %v13788_v6 }
 0x479   :  { %9492 = vmatpush1.bf16.msra.mxu1 %v13783_v50  ;;  %v13848_v50 = vld [vmem:[#allocation6 + $0x155c] ss:$40 sps:$4 sm:$0xff]  }
 0x47a   :  { %9539 = vmatpush2.bf16.msra.mxu0 %v13786_v16  ;;  %9493 = vmatprep.subr.bf16.mxu1 %v13791_v51  ;;  %v14757_v16 = vld [vmem:[#allocation7] sm:$0xff] }
 0x47b   :  { %9540 = vmatprep.subr.bf16.mxu0 %v13794_v55  ;;  %v4792_v51 = vrot.slane %v14757_v16, %v619_v41  ;;  %v13843_v55 = vld [vmem:[#allocation6 + $0x1148] ss:$40 sps:$4 sm:$0xff]  }
 0x47d   :  { %9494 = vmatpush1.bf16.msra.mxu1 %v13789_v18  ;;  %v13846_v18 = vld [vmem:[#allocation6 + $0x1558] ss:$40 sps:$4 sm:$0xff]  }
 0x47e   :  { %9541 = vmatpush2.bf16.msra.mxu0 %v13792_v33  ;;  %9495 = vmatprep.subr.bf16.mxu1 %v13797_v27  ;;  %v13851_v33 = vld [vmem:[#allocation6 + $0x10fc] ss:$40 sps:$4 sm:$0xff]   ;;  %v4796_v27 = vrot.slane %v14757_v16, %v623_v42 }
 0x47f   :  { %9542 = vmatprep.subr.bf16.mxu0 %v13800_v57  ;;  %v13854_v57 = vld [vmem:[#allocation6 + $0x150c] ss:$40 sps:$4 sm:$0xff]  }
 0x481   :  { %9496 = vmatpush2.bf16.msra.mxu1 %v13795_v40 }
 0x482   :  { %9543 = vmatpush2.bf16.msra.mxu0 %v13798_v1  ;;  %9497 = vmatprep.subr.bf16.mxu1 %v13803_v37  ;;  %v13849_v37 = vld [vmem:[#allocation6 + $0x10f8] ss:$40 sps:$4 sm:$0xff]  }
 0x483   :  { %9544 = vmatprep.subr.bf16.mxu0 %v13806_v61  ;;  %v13852_v61 = vld [vmem:[#allocation6 + $0x1508] ss:$40 sps:$4 sm:$0xff]  }
 0x485   :  { %9498 = vmatpush2.bf16.msra.mxu1 %v13801_v4  ;;  %v13857_v4 = vld [vmem:[#allocation6 + $0x10ac] ss:$40 sps:$4 sm:$0xff]  }
 0x486   :  { %9545 = vmatpush2.bf16.msra.mxu0 %v13804_v44  ;;  %9499 = vmatprep.subr.bf16.mxu1 %v13809_v62  ;;  %v13860_v62 = vld [vmem:[#allocation6 + $0x14bc] ss:$40 sps:$4 sm:$0xff]  }
 0x487   :  { %9546 = vmatprep.subr.bf16.mxu0 %v13812_v63 }
 0x489   :  { %9500 = vmatpush2.bf16.msra.mxu1 %v13807_v0  ;;  %v13855_v0 = vld [vmem:[#allocation6 + $0x10a8] ss:$40 sps:$4 sm:$0xff]  }
 0x48a   :  { %9547 = vmatpush2.bf16.msra.mxu0 %v13810_v5  ;;  %9501 = vmatprep.subr.bf16.mxu1 %v13815_v8 }
 0x48b   :  { %9548 = vmatprep.subr.bf16.mxu0 %v13818_v12  ;;  %v13858_v12 = vld [vmem:[#allocation6 + $0x14b8] ss:$40 sps:$4 sm:$0xff]  }
 0x48d   :  { %9502 = vmatpush2.bf16.msra.mxu1 %v13813_v7  ;;  %v13863_v7 = vld [vmem:[#allocation6 + $0x105c] ss:$40 sps:$4 sm:$0xff]  }
 0x48e   :  { %9549 = vmatpush2.bf16.msra.mxu0 %v13816_v48  ;;  %9503 = vmatprep.subr.bf16.mxu1 %v13821_v10  ;;  %v13866_v48 = vld [vmem:[#allocation6 + $0x146c] ss:$40 sps:$4 sm:$0xff]   ;;  %v13861_v10 = vld [vmem:[#allocation6 + $0x1058] ss:$40 sps:$4 sm:$0xff]  }
 0x48f   :  { %9550 = vmatprep.subr.bf16.mxu0 %v13824_v15  ;;  %v13864_v15 = vld [vmem:[#allocation6 + $0x1468] ss:$40 sps:$4 sm:$0xff]  }
 0x491   :  { %9504 = vmatpush2.bf16.msra.mxu1 %v13819_v2  ;;  %v13869_v2 = vld [vmem:[#allocation6 + $0x100c] ss:$40 sps:$4 sm:$0xff]  }
 0x492   :  { %9551 = vmatpush2.bf16.msra.mxu0 %v13822_v21  ;;  %9505 = vmatprep.subr.bf16.mxu1 %v13827_v47  ;;  %v13872_v21 = vld [vmem:[#allocation6 + $0x141c] ss:$40 sps:$4 sm:$0xff]   ;;  %v13867_v47 = vld [vmem:[#allocation6 + $0x1008] ss:$40 sps:$4 sm:$0xff]  }
 0x493   :  { %9602 = vmatprep.subr.bf16.mxu0 %v13830_v23  ;;  %v13870_v23 = vld [vmem:[#allocation6 + $0x1418] ss:$40 sps:$4 sm:$0xff]  }
 0x495   :  { %v9308_v38 = vpop.f32.mrf.mxu0  ;;  %9506 = vmatpush2.bf16.msra.mxu1 %v13825_v58  ;;  %9553 = vmatmul.mubr.bf16.vlgmr.msra.gmra.mxu0 %v14644_v29  ;;  %v13875_v58 = vld [vmem:[#allocation6 + $0xfbc] ss:$40 sps:$4 sm:$0xff]  }
 0x496   :  { %9603 = vmatpush1.bf16.msra.mxu0 %v13828_v13  ;;  %9634 = vmatprep.mubr.bf16.mxu0 %v14678_v60  ;;  %v13878_v13 = vld [vmem:[#allocation6 + $0x18cc] ss:$40 sps:$4 sm:$0xff]  }
 0x497   :  { %v9310_v11 = vpop.f32.mrf.mxu0  ;;  %9507 = vmatprep.subr.bf16.mxu1 %v13833_v31  ;;  %9604 = vmatprep.subr.bf16.mxu0 %v13836_v24  ;;  %v13873_v31 = vld [vmem:[#allocation6 + $0xfb8] ss:$40 sps:$4 sm:$0xff]   ;;  %v13876_v24 = vld [vmem:[#allocation6 + $0x18c8] ss:$40 sps:$4 sm:$0xff]  }
 0x499   :  { %v9312_v34 = vpop.f32.mrf.mxu0  ;;  %9508 = vmatpush2.bf16.msra.mxu1 %v13831_v54  ;;  %v13884_v54 = vld [vmem:[#allocation6 + $0x187c] ss:$40 sps:$4 sm:$0xff]  }
 0x49a   :  { %9605 = vmatpush1.bf16.msra.mxu0 %v13834_v9  ;;  %9509 = vmatprep.subr.bf16.mxu1 %v13839_v30  ;;  %v13879_v9 = vld [vmem:[#allocation6 + $0xf68] ss:$40 sps:$4 sm:$0xff]   ;;  %v13882_v30 = vld [vmem:[#allocation6 + $0x1878] ss:$40 sps:$4 sm:$0xff]  }
 0x49b   :  { %v9313_v6 = vpop.f32.mrf.mxu0  ;;  %9606 = vmatprep.subr.bf16.mxu0 %v13842_v28  ;;  %v13890_v28 = vld [vmem:[#allocation6 + $0x182c] ss:$40 sps:$4 sm:$0xff]   ;;  %v13885_v34 = vld [vmem:[#allocation6 + $0xf18] ss:$40 sps:$4 sm:$0xff]  }
 0x49c   :  { %v13891_v6 = vld [vmem:[#allocation6 + $0x13c8] ss:$40 sps:$4 sm:$0xff]  }
 0x49d   :  { %9510 = vmatpush2.bf16.msra.mxu1 %v13837_v14  ;;  %v13888_v14 = vld [vmem:[#allocation6 + $0x1828] ss:$40 sps:$4 sm:$0xff]  }
 0x49e   :  { %9607 = vmatpush1.bf16.msra.mxu0 %v13840_v45  ;;  %9561 = vmatprep.subr.bf16.mxu1 %v13845_v46  ;;  %v13893_v45 = vld [vmem:[#allocation6 + $0x13cc] ss:$40 sps:$4 sm:$0xff]   ;;  %v13896_v46 = vld [vmem:[#allocation6 + $0x17dc] ss:$40 sps:$4 sm:$0xff]  }
 0x49f   :  { %9608 = vmatprep.subr.bf16.mxu0 %v13848_v50  ;;  %v13894_v50 = vld [vmem:[#allocation6 + $0x17d8] ss:$40 sps:$4 sm:$0xff]  }
 0x4a0   :  { %v9267_v40 = vpop.f32.mrf.mxu1  ;;  %9512 = vmatmul.mubr.bf16.vlgmr.msra.gmra.mxu1 %v14629_v53 }
 0x4a1   :  { %v9268_v1 = vadd.f32 %v9267_v40, %v4792_v51  ;;  %9562 = vmatpush1.bf16.msra.mxu1 %v13843_v55  ;;  %9593 = vmatprep.mubr.bf16.mxu1 %v14647_v43  ;;  %v13899_v51 = vld [vmem:[#allocation6 + $0x137c] ss:$40 sps:$4 sm:$0xff]   ;;  %v13902_v55 = vld [vmem:[#allocation6 + $0x178c] ss:$40 sps:$4 sm:$0xff]   ;;  %v13903_v40 = vld [vmem:[#allocation6 + $0x1328] ss:$40 sps:$4 sm:$0xff]  }
 0x4a2   :  { %v9269_v41 = vpop.f32.mrf.mxu1  ;;  %9609 = vmatpush1.bf16.msra.mxu0 %v13846_v18  ;;  %9563 = vmatprep.subr.bf16.mxu1 %v13851_v33  ;;  %v13897_v18 = vld [vmem:[#allocation6 + $0x1378] ss:$40 sps:$4 sm:$0xff]   ;;  %v13900_v33 = vld [vmem:[#allocation6 + $0x1788] ss:$40 sps:$4 sm:$0xff]  }
 0x4a3   :  { %v9270_v44 = vadd.f32 %v9269_v41, %v4796_v27  ;;  %9610 = vmatprep.subr.bf16.mxu0 %v13854_v57  ;;  %v14767_v63 = vadd.f32 %v9308_v38, %v9268_v1  ;;  %v13881_v38 = vld [vmem:[#allocation6 + $0xf6c] ss:$40 sps:$4 sm:$0xff]   ;;  %v13908_v57 = vld [vmem:[#allocation6 + $0x173c] ss:$40 sps:$4 sm:$0xff]   ;;  %v13906_v1 = vld [vmem:[#allocation6 + $0x1738] ss:$40 sps:$4 sm:$0xff]  }
 0x4a4   :  { %v9271_v42 = vpop.f32.mrf.mxu1  ;;  %v13905_v27 = vld [vmem:[#allocation6 + $0x132c] ss:$40 sps:$4 sm:$0xff]  }
 0x4a5   :  { %9564 = vmatpush1.bf16.msra.mxu1 %v13849_v37  ;;  %v14769_v5 = vadd.f32 %v9310_v11, %v9270_v44  ;;  %v13887_v11 = vld [vmem:[#allocation6 + $0xf1c] ss:$40 sps:$4 sm:$0xff]   ;;  %v13914_v41 = vld [vmem:[#allocation6 + $0x16ec] ss:$40 sps:$4 sm:$0xff]   ;;  %v13915_v42 = vld [vmem:[#allocation6 + $0x1288] ss:$40 sps:$4 sm:$0xff]  }
 0x4a6   :  { %v9272_v8 = vpop.f32.mrf.mxu1  ;;  %9611 = vmatpush1.bf16.msra.mxu0 %v13852_v61  ;;  %9565 = vmatprep.subr.bf16.mxu1 %v13857_v4  ;;  %v13911_v37 = vld [vmem:[#allocation6 + $0x12dc] ss:$40 sps:$4 sm:$0xff]   ;;  %v13909_v61 = vld [vmem:[#allocation6 + $0x12d8] ss:$40 sps:$4 sm:$0xff]   ;;  %v13912_v4 = vld [vmem:[#allocation6 + $0x16e8] ss:$40 sps:$4 sm:$0xff]  }
 0x4a7   :  { %9612 = vmatprep.subr.bf16.mxu0 %v13860_v62  ;;  %v13917_v44 = vld [vmem:[#allocation6 + $0x128c] ss:$40 sps:$4 sm:$0xff]   ;;  %v13920_v62 = vld [vmem:[#allocation6 + $0x169c] ss:$40 sps:$4 sm:$0xff]  }
 0x4a8   :  { %v13923_v8 = vld [vmem:[#allocation6 + $0x123c] ss:$40 sps:$4 sm:$0xff]  }
 0x4a9   :  { %9566 = vmatpush1.bf16.msra.mxu1 %v13855_v0  ;;  %v13918_v0 = vld [vmem:[#allocation6 + $0x1698] ss:$40 sps:$4 sm:$0xff]  }
 0x4aa   :  { %9613 = vmatpush1.bf16.msra.mxu0 %v13858_v12  ;;  %9567 = vmatprep.subr.bf16.mxu1 %v13863_v7  ;;  %v13926_v12 = vld [vmem:[#allocation6 + $0x754] ss:$40 sps:$4 sm:$0xff]   ;;  %v13921_v7 = vld [vmem:[#allocation6 + $0x1238] ss:$40 sps:$4 sm:$0xff]  }
 0x4ab   :  { %9614 = vmatprep.subr.bf16.mxu0 %v13866_v48  ;;  %v13924_v48 = vld [vmem:[#allocation6 + $0x750] ss:$40 sps:$4 sm:$0xff]  }
 0x4ad   :  { %9568 = vmatpush1.bf16.msra.mxu1 %v13861_v10  ;;  %v13929_v10 = vld [vmem:[#allocation6 + $0x11ec] ss:$40 sps:$4 sm:$0xff]  }
 0x4ae   :  { %9615 = vmatpush1.bf16.msra.mxu0 %v13864_v15  ;;  %9569 = vmatprep.subr.bf16.mxu1 %v13869_v2  ;;  %v13932_v15 = vld [vmem:[#allocation6 + $0x704] ss:$40 sps:$4 sm:$0xff]  }
 0x4af   :  { %9616 = vmatprep.subr.bf16.mxu0 %v13872_v21  ;;  %v13927_v21 = vld [vmem:[#allocation6 + $0x11e8] ss:$40 sps:$4 sm:$0xff]  }
 0x4b1   :  { %9570 = vmatpush1.bf16.msra.mxu1 %v13867_v47  ;;  %v13930_v47 = vld [vmem:[#allocation6 + $0x700] ss:$40 sps:$4 sm:$0xff]  }
 0x4b2   :  { %9617 = vmatpush1.bf16.msra.mxu0 %v13870_v23  ;;  %9571 = vmatprep.subr.bf16.mxu1 %v13875_v58  ;;  %v13935_v23 = vld [vmem:[#allocation6 + $0x119c] ss:$40 sps:$4 sm:$0xff]  }
 0x4b3   :  { %9618 = vmatprep.subr.bf16.mxu0 %v13878_v13  ;;  %v13938_v13 = vld [vmem:[#allocation6 + $0x6b4] ss:$40 sps:$4 sm:$0xff]  }
 0x4b5   :  { %9572 = vmatpush1.bf16.msra.mxu1 %v13873_v31 }
 0x4b6   :  { %9619 = vmatpush2.bf16.msra.mxu0 %v13876_v24  ;;  %9573 = vmatprep.subr.bf16.mxu1 %v13881_v38  ;;  %v13933_v24 = vld [vmem:[#allocation6 + $0x1198] ss:$40 sps:$4 sm:$0xff]  }
 0x4b7   :  { %9620 = vmatprep.subr.bf16.mxu0 %v13884_v54  ;;  %v13936_v38 = vld [vmem:[#allocation6 + $0x6b0] ss:$40 sps:$4 sm:$0xff]   ;;  %v13941_v54 = vld [vmem:[#allocation6 + $0x254] ss:$40 sps:$4 sm:$0xff]  }
 0x4b9   :  { %9574 = vmatpush1.bf16.msra.mxu1 %v13879_v9 }
 0x4ba   :  { %9621 = vmatpush2.bf16.msra.mxu0 %v13882_v30  ;;  %9575 = vmatprep.subr.bf16.mxu1 %v13887_v11  ;;  %v13944_v30 = vld [vmem:[#allocation6 + $0x664] ss:$40 sps:$4 sm:$0xff]   ;;  %v13939_v11 = vld [vmem:[#allocation6 + $0x250] ss:$40 sps:$4 sm:$0xff]  }
 0x4bb   :  { %9622 = vmatprep.subr.bf16.mxu0 %v13890_v28  ;;  %v13947_v28 = vld [vmem:[#allocation6 + $0x204] ss:$40 sps:$4 sm:$0xff]  }
 0x4bd   :  { %9576 = vmatpush1.bf16.msra.mxu1 %v13885_v34  ;;  %v13950_v34 = vld [vmem:[#allocation6 + $0x614] ss:$40 sps:$4 sm:$0xff]  }
 0x4be   :  { %9623 = vmatpush2.bf16.msra.mxu0 %v13888_v14  ;;  %9577 = vmatprep.subr.bf16.mxu1 %v13893_v45 }
 0x4bf   :  { %9624 = vmatprep.subr.bf16.mxu0 %v13896_v46  ;;  %v13945_v46 = vld [vmem:[#allocation6 + $0x200] ss:$40 sps:$4 sm:$0xff]  }
 0x4c1   :  { %9578 = vmatpush2.bf16.msra.mxu1 %v13891_v6 }
 0x4c2   :  { %9625 = vmatpush2.bf16.msra.mxu0 %v13894_v50  ;;  %9579 = vmatprep.subr.bf16.mxu1 %v13899_v51  ;;  %v13948_v50 = vld [vmem:[#allocation6 + $0x610] ss:$40 sps:$4 sm:$0xff]   ;;  %v13953_v51 = vld [vmem:[#allocation6 + $0x1b4] ss:$40 sps:$4 sm:$0xff]  }
 0x4c3   :  { %9626 = vmatprep.subr.bf16.mxu0 %v13902_v55 }
 0x4c5   :  { %9580 = vmatpush2.bf16.msra.mxu1 %v13897_v18  ;;  %v13956_v18 = vld [vmem:[#allocation6 + $0x5c4] ss:$40 sps:$4 sm:$0xff]  }
 0x4c6   :  { %9627 = vmatpush2.bf16.msra.mxu0 %v13900_v33  ;;  %9581 = vmatprep.subr.bf16.mxu1 %v13905_v27 }
 0x4c7   :  { %9628 = vmatprep.subr.bf16.mxu0 %v13908_v57  ;;  %v13951_v57 = vld [vmem:[#allocation6 + $0x1b0] ss:$40 sps:$4 sm:$0xff]  }
 0x4c9   :  { %9582 = vmatpush2.bf16.msra.mxu1 %v13903_v40 }
 0x4ca   :  { %9629 = vmatpush2.bf16.msra.mxu0 %v13906_v1  ;;  %9583 = vmatprep.subr.bf16.mxu1 %v13911_v37  ;;  %v13959_v1 = vld [vmem:[#allocation6 + $0x164] ss:$40 sps:$4 sm:$0xff]   ;;  %v13962_v37 = vld [vmem:[#allocation6 + $0x574] ss:$40 sps:$4 sm:$0xff]  }
 0x4cb   :  { %9630 = vmatprep.subr.bf16.mxu0 %v13914_v41  ;;  %v13957_v41 = vld [vmem:[#allocation6 + $0x160] ss:$40 sps:$4 sm:$0xff]  }
 0x4cd   :  { %9584 = vmatpush2.bf16.msra.mxu1 %v13909_v61  ;;  %v13965_v61 = vld [vmem:[#allocation6 + $0x114] ss:$40 sps:$4 sm:$0xff]  }
 0x4ce   :  { %9631 = vmatpush2.bf16.msra.mxu0 %v13912_v4  ;;  %9585 = vmatprep.subr.bf16.mxu1 %v13917_v44  ;;  %v13968_v4 = vld [vmem:[#allocation6 + $0x524] ss:$40 sps:$4 sm:$0xff]   ;;  %v13963_v44 = vld [vmem:[#allocation6 + $0x110] ss:$40 sps:$4 sm:$0xff]  }
 0x4cf   :  { %9632 = vmatprep.subr.bf16.mxu0 %v13920_v62  ;;  %v13966_v62 = vld [vmem:[#allocation6 + $0x520] ss:$40 sps:$4 sm:$0xff]  }
 0x4d1   :  { %9586 = vmatpush2.bf16.msra.mxu1 %v13915_v42  ;;  %v13971_v42 = vld [vmem:[#allocation6 + $0xc4] ss:$40 sps:$4 sm:$0xff]  }
 0x4d2   :  { %9633 = vmatpush2.bf16.msra.mxu0 %v13918_v0  ;;  %9587 = vmatprep.subr.bf16.mxu1 %v13923_v8  ;;  %v13974_v0 = vld [vmem:[#allocation6 + $0x9d4] ss:$40 sps:$4 sm:$0xff]   ;;  %v13969_v8 = vld [vmem:[#allocation6 + $0xc0] ss:$40 sps:$4 sm:$0xff]  }
 0x4d3   :  { %9684 = vmatprep.subr.bf16.mxu0 %v13926_v12  ;;  %v13972_v12 = vld [vmem:[#allocation6 + $0x9d0] ss:$40 sps:$4 sm:$0xff]  }
 0x4d5   :  { %v9390_v2 = vpop.f32.mrf.mxu0  ;;  %9588 = vmatpush2.bf16.msra.mxu1 %v13921_v7  ;;  %9635 = vmatmul.mubr.bf16.vlgmr.msra.gmra.mxu0 %v14680_v17  ;;  %v13977_v7 = vld [vmem:[#allocation6 + $0x74] ss:$40 sps:$4 sm:$0xff]  }
 0x4d6   :  { %9685 = vmatpush1.bf16.msra.mxu0 %v13924_v48  ;;  %9716 = vmatprep.mubr.bf16.mxu0 %v14610_v26  ;;  %v13942_v26 = vld [vmem:[#allocation6 + $0x660] ss:$40 sps:$4 sm:$0xff]   ;;  %v13980_v48 = vld [vmem:[#allocation6 + $0x984] ss:$40 sps:$4 sm:$0xff]  }
 0x4d7   :  { %v9392_v58 = vpop.f32.mrf.mxu0  ;;  %9589 = vmatprep.subr.bf16.mxu1 %v13929_v10  ;;  %9686 = vmatprep.subr.bf16.mxu0 %v13932_v15  ;;  %v13975_v10 = vld [vmem:[#allocation6 + $0x70] ss:$40 sps:$4 sm:$0xff]   ;;  %v13978_v15 = vld [vmem:[#allocation6 + $0x980] ss:$40 sps:$4 sm:$0xff]  }
 0x4d9   :  { %v9394_v31 = vpop.f32.mrf.mxu0  ;;  %9590 = vmatpush2.bf16.msra.mxu1 %v13927_v21  ;;  %v13986_v21 = vld [vmem:[#allocation6 + $0x934] ss:$40 sps:$4 sm:$0xff]  }
 0x4da   :  { %9687 = vmatpush1.bf16.msra.mxu0 %v13930_v47  ;;  %9591 = vmatprep.subr.bf16.mxu1 %v13935_v23  ;;  %v13981_v47 = vld [vmem:[#allocation6 + $0x20] ss:$40 sps:$4 sm:$0xff]   ;;  %v13984_v23 = vld [vmem:[#allocation6 + $0x930] ss:$40 sps:$4 sm:$0xff]  }
 0x4db   :  { %v9395_v9 = vpop.f32.mrf.mxu0  ;;  %9688 = vmatprep.subr.bf16.mxu0 %v13938_v13  ;;  %v13992_v13 = vld [vmem:[#allocation6 + $0x8e4] ss:$40 sps:$4 sm:$0xff]   ;;  %v13987_v31 = vld [vmem:[#allocation6 + $0x4d0] ss:$40 sps:$4 sm:$0xff]  }
 0x4dc   :  { %v13993_v9 = vld [vmem:[#allocation6 + $0x480] ss:$40 sps:$4 sm:$0xff]  }
 0x4dd   :  { %9592 = vmatpush2.bf16.msra.mxu1 %v13933_v24  ;;  %v13990_v24 = vld [vmem:[#allocation6 + $0x8e0] ss:$40 sps:$4 sm:$0xff]  }
 0x4de   :  { %9689 = vmatpush1.bf16.msra.mxu0 %v13936_v38  ;;  %9643 = vmatprep.subr.bf16.mxu1 %v13941_v54  ;;  %v13995_v38 = vld [vmem:[#allocation6 + $0x484] ss:$40 sps:$4 sm:$0xff]   ;;  %v13998_v54 = vld [vmem:[#allocation6 + $0x894] ss:$40 sps:$4 sm:$0xff]  }
 0x4df   :  { %9690 = vmatprep.subr.bf16.mxu0 %v13944_v30  ;;  %v13996_v30 = vld [vmem:[#allocation6 + $0x890] ss:$40 sps:$4 sm:$0xff]  }
 0x4e0   :  { %v9349_v14 = vpop.f32.mrf.mxu1  ;;  %9594 = vmatmul.mubr.bf16.vlgmr.msra.gmra.mxu1 %v14658_v36 }
 0x4e1   :  { %v9350_v45 = vadd.f32 %v9349_v14, %v14767_v63  ;;  %9644 = vmatpush1.bf16.msra.mxu1 %v13939_v11  ;;  %9675 = vmatprep.mubr.bf16.mxu1 %v14594_v19  ;;  %v13954_v19 = vld [vmem:[#allocation6 + $0x5c0] ss:$40 sps:$4 sm:$0xff]   ;;  %v14001_v11 = vld [vmem:[#allocation6 + $0x434] ss:$40 sps:$4 sm:$0xff]   ;;  %v14007_v14 = vld [vmem:[#allocation6 + $0x3e4] ss:$40 sps:$4 sm:$0xff]  }
 0x4e2   :  { %v9351_v6 = vpop.f32.mrf.mxu1  ;;  %9691 = vmatpush1.bf16.msra.mxu0 %v13942_v26  ;;  %9645 = vmatprep.subr.bf16.mxu1 %v13947_v28  ;;  %v14004_v26 = vld [vmem:[#allocation6 + $0x844] ss:$40 sps:$4 sm:$0xff]   ;;  %v13999_v28 = vld [vmem:[#allocation6 + $0x430] ss:$40 sps:$4 sm:$0xff]  }
 0x4e3   :  { %v9352_v55 = vadd.f32 %v9351_v6, %v14769_v5  ;;  %9692 = vmatprep.subr.bf16.mxu0 %v13950_v34  ;;  %v14777_v33 = vadd.f32 %v9390_v2, %v9350_v45  ;;  %v13960_v5 = vld [vmem:[#allocation6 + $0x570] ss:$40 sps:$4 sm:$0xff]   ;;  %v13983_v2 = vld [vmem:[#allocation6 + $0x24] ss:$40 sps:$4 sm:$0xff]   ;;  %v14002_v34 = vld [vmem:[#allocation6 + $0x840] ss:$40 sps:$4 sm:$0xff]  }
 0x4e4   :  { %v9353_v27 = vpop.f32.mrf.mxu1  ;;  %v14010_v45 = vld [vmem:[#allocation6 + $0x7f4] ss:$40 sps:$4 sm:$0xff]   ;;  %v14008_v6 = vld [vmem:[#allocation6 + $0x7f0] ss:$40 sps:$4 sm:$0xff]  }
 0x4e5   :  { %9646 = vmatpush1.bf16.msra.mxu1 %v13945_v46  ;;  %v14779_v40 = vadd.f32 %v9392_v58, %v9352_v55  ;;  %v13989_v58 = vld [vmem:[#allocation6 + $0x4d4] ss:$40 sps:$4 sm:$0xff]   ;;  %v14005_v46 = vld [vmem:[#allocation6 + $0x3e0] ss:$40 sps:$4 sm:$0xff]   ;;  %v14011_v55 = vld [vmem:[#allocation6 + $0x390] ss:$40 sps:$4 sm:$0xff]  }
 0x4e6   :  { %v9354_v63 = vpop.f32.mrf.mxu1  ;;  %9693 = vmatpush1.bf16.msra.mxu0 %v13948_v50  ;;  %9647 = vmatprep.subr.bf16.mxu1 %v13953_v51  ;;  %v14013_v50 = vld [vmem:[#allocation6 + $0x394] ss:$40 sps:$4 sm:$0xff]   ;;  %v14016_v51 = vld [vmem:[#allocation6 + $0x7a4] ss:$40 sps:$4 sm:$0xff]  }
 0x4e7   :  { %9694 = vmatprep.subr.bf16.mxu0 %v13956_v18  ;;  %v14014_v18 = vld [vmem:[#allocation6 + $0x7a0] ss:$40 sps:$4 sm:$0xff]   ;;  %v14019_v27 = vld [vmem:[#allocation6 + $0x344] ss:$40 sps:$4 sm:$0xff]  }
 0x4e8   :  { %v14017_v63 = vld [vmem:[#allocation6 + $0x340] ss:$40 sps:$4 sm:$0xff]  }
 0x4e9   :  { %9648 = vmatpush1.bf16.msra.mxu1 %v13951_v57  ;;  %v14022_v57 = vld [vmem:[#allocation6 + $0x1154] ss:$40 sps:$4 sm:$0xff]  }
 0x4ea   :  { %9695 = vmatpush1.bf16.msra.mxu0 %v13954_v19  ;;  %9649 = vmatprep.subr.bf16.mxu1 %v13959_v1  ;;  %v14020_v19 = vld [vmem:[#allocation6 + $0x1150] ss:$40 sps:$4 sm:$0xff]   ;;  %v14025_v1 = vld [vmem:[#allocation6 + $0x2f4] ss:$40 sps:$4 sm:$0xff]  }
 0x4eb   :  { %9696 = vmatprep.subr.bf16.mxu0 %v13962_v37  ;;  %v14028_v37 = vld [vmem:[#allocation6 + $0x1104] ss:$40 sps:$4 sm:$0xff]  }
 0x4ed   :  { %9650 = vmatpush1.bf16.msra.mxu1 %v13957_v41 }
 0x4ee   :  { %9697 = vmatpush1.bf16.msra.mxu0 %v13960_v5  ;;  %9651 = vmatprep.subr.bf16.mxu1 %v13965_v61  ;;  %v14023_v5 = vld [vmem:[#allocation6 + $0x2f0] ss:$40 sps:$4 sm:$0xff]   ;;  %v14026_v61 = vld [vmem:[#allocation6 + $0x1100] ss:$40 sps:$4 sm:$0xff]  }
 0x4ef   :  { %9698 = vmatprep.subr.bf16.mxu0 %v13968_v4  ;;  %v14031_v4 = vld [vmem:[#allocation6 + $0x2a4] ss:$40 sps:$4 sm:$0xff]  }
 0x4f1   :  { %9652 = vmatpush1.bf16.msra.mxu1 %v13963_v44 }
 0x4f2   :  { %9699 = vmatpush1.bf16.msra.mxu0 %v13966_v62  ;;  %9653 = vmatprep.subr.bf16.mxu1 %v13971_v42  ;;  %v14034_v62 = vld [vmem:[#allocation6 + $0x10b4] ss:$40 sps:$4 sm:$0xff]  }
 0x4f3   :  { %9700 = vmatprep.subr.bf16.mxu0 %v13974_v0  ;;  %v14029_v0 = vld [vmem:[#allocation6 + $0x2a0] ss:$40 sps:$4 sm:$0xff]  }
 0x4f5   :  { %9654 = vmatpush1.bf16.msra.mxu1 %v13969_v8  ;;  %v14032_v8 = vld [vmem:[#allocation6 + $0x10b0] ss:$40 sps:$4 sm:$0xff]  }
 0x4f6   :  { %9701 = vmatpush2.bf16.msra.mxu0 %v13972_v12  ;;  %9655 = vmatprep.subr.bf16.mxu1 %v13977_v7  ;;  %v14037_v12 = vld [vmem:[#allocation6 + $0xc54] ss:$40 sps:$4 sm:$0xff]  }
 0x4f7   :  { %9702 = vmatprep.subr.bf16.mxu0 %v13980_v48  ;;  %v14035_v48 = vld [vmem:[#allocation6 + $0xc50] ss:$40 sps:$4 sm:$0xff]  }
 0x4f9   :  { %9656 = vmatpush1.bf16.msra.mxu1 %v13975_v10  ;;  %v14043_v10 = vld [vmem:[#allocation6 + $0xc04] ss:$40 sps:$4 sm:$0xff]  }
 0x4fa   :  { %9703 = vmatpush2.bf16.msra.mxu0 %v13978_v15  ;;  %9657 = vmatprep.subr.bf16.mxu1 %v13983_v2  ;;  %v14046_v15 = vld [vmem:[#allocation6 + $0x1014] ss:$40 sps:$4 sm:$0xff]  }
 0x4fb   :  { %9704 = vmatprep.subr.bf16.mxu0 %v13986_v21 }
 0x4fd   :  { %9658 = vmatpush1.bf16.msra.mxu1 %v13981_v47  ;;  %v14041_v47 = vld [vmem:[#allocation6 + $0xc00] ss:$40 sps:$4 sm:$0xff]  }
 0x4fe   :  { %9705 = vmatpush2.bf16.msra.mxu0 %v13984_v23  ;;  %9659 = vmatprep.subr.bf16.mxu1 %v13989_v58  ;;  %v14044_v58 = vld [vmem:[#allocation6 + $0x1010] ss:$40 sps:$4 sm:$0xff]  }
 0x4ff   :  { %9706 = vmatprep.subr.bf16.mxu0 %v13992_v13  ;;  %v14049_v13 = vld [vmem:[#allocation6 + $0xbb4] ss:$40 sps:$4 sm:$0xff]  }
 0x501   :  { %9660 = vmatpush2.bf16.msra.mxu1 %v13987_v31 }
 0x502   :  { %9707 = vmatpush2.bf16.msra.mxu0 %v13990_v24  ;;  %9661 = vmatprep.subr.bf16.mxu1 %v13995_v38  ;;  %v14052_v24 = vld [vmem:[#allocation6 + $0xfc4] ss:$40 sps:$4 sm:$0xff]  }
 0x503   :  { %9708 = vmatprep.subr.bf16.mxu0 %v13998_v54 }
 0x505   :  { %9662 = vmatpush2.bf16.msra.mxu1 %v13993_v9  ;;  %v14055_v9 = vld [vmem:[#allocation6 + $0xb64] ss:$40 sps:$4 sm:$0xff]  }
 0x506   :  { %9709 = vmatpush2.bf16.msra.mxu0 %v13996_v30  ;;  %9663 = vmatprep.subr.bf16.mxu1 %v14001_v11  ;;  %v14053_v30 = vld [vmem:[#allocation6 + $0xb60] ss:$40 sps:$4 sm:$0xff]   ;;  %v14056_v11 = vld [vmem:[#allocation6 + $0xf70] ss:$40 sps:$4 sm:$0xff]  }
 0x507   :  { %9710 = vmatprep.subr.bf16.mxu0 %v14004_v26  ;;  %v14061_v26 = vld [vmem:[#allocation6 + $0xb14] ss:$40 sps:$4 sm:$0xff]  }
 0x509   :  { %9664 = vmatpush2.bf16.msra.mxu1 %v13999_v28  ;;  %v14059_v28 = vld [vmem:[#allocation6 + $0xb10] ss:$40 sps:$4 sm:$0xff]  }
 0x50a   :  { %9711 = vmatpush2.bf16.msra.mxu0 %v14002_v34  ;;  %9665 = vmatprep.subr.bf16.mxu1 %v14007_v14  ;;  %v14062_v34 = vld [vmem:[#allocation6 + $0xf20] ss:$40 sps:$4 sm:$0xff]   ;;  %v14067_v14 = vld [vmem:[#allocation6 + $0xac4] ss:$40 sps:$4 sm:$0xff]  }
 0x50b   :  { %9712 = vmatprep.subr.bf16.mxu0 %v14010_v45  ;;  %v14070_v45 = vld [vmem:[#allocation6 + $0x13d4] ss:$40 sps:$4 sm:$0xff]  }
 0x50d   :  { %9666 = vmatpush2.bf16.msra.mxu1 %v14005_v46  ;;  %v14065_v46 = vld [vmem:[#allocation6 + $0xac0] ss:$40 sps:$4 sm:$0xff]  }
 0x50e   :  { %9713 = vmatpush2.bf16.msra.mxu0 %v14008_v6  ;;  %9667 = vmatprep.subr.bf16.mxu1 %v14013_v50  ;;  %v14068_v6 = vld [vmem:[#allocation6 + $0x13d0] ss:$40 sps:$4 sm:$0xff]   ;;  %v14073_v50 = vld [vmem:[#allocation6 + $0xa74] ss:$40 sps:$4 sm:$0xff]  }
 0x50f   :  { %9714 = vmatprep.subr.bf16.mxu0 %v14016_v51  ;;  %v14076_v51 = vld [vmem:[#allocation6 + $0x1384] ss:$40 sps:$4 sm:$0xff]  }
 0x511   :  { %9668 = vmatpush2.bf16.msra.mxu1 %v14011_v55  ;;  %v14071_v55 = vld [vmem:[#allocation6 + $0xa70] ss:$40 sps:$4 sm:$0xff]  }
 0x512   :  { %9715 = vmatpush2.bf16.msra.mxu0 %v14014_v18  ;;  %9669 = vmatprep.subr.bf16.mxu1 %v14019_v27  ;;  %v14074_v18 = vld [vmem:[#allocation6 + $0x1380] ss:$40 sps:$4 sm:$0xff]   ;;  %v14079_v27 = vld [vmem:[#allocation6 + $0xa24] ss:$40 sps:$4 sm:$0xff]  }
 0x513   :  { %9766 = vmatprep.subr.bf16.mxu0 %v14022_v57  ;;  %v14082_v57 = vld [vmem:[#allocation6 + $0x1334] ss:$40 sps:$4 sm:$0xff]  }
 0x515   :  { %v14781_v41 = vpop.f32.mrf.mxu0  ;;  %9670 = vmatpush2.bf16.msra.mxu1 %v14017_v63  ;;  %9717 = vmatmul.mubr.bf16.vlgmr.msra.gmra.mxu0 %v14629_v53  ;;  %v14040_v53 = vld [vmem:[#allocation6 + $0x1064] ss:$40 sps:$4 sm:$0xff]   ;;  %v14077_v63 = vld [vmem:[#allocation6 + $0xa20] ss:$40 sps:$4 sm:$0xff]  }
 0x516   :  { %9767 = vmatpush1.bf16.msra.mxu0 %v14020_v19  ;;  %9798 = vmatprep.mubr.bf16.mxu0 %v14647_v43  ;;  %v14038_v43 = vld [vmem:[#allocation6 + $0x1060] ss:$40 sps:$4 sm:$0xff]   ;;  %v14080_v19 = vld [vmem:[#allocation6 + $0x1330] ss:$40 sps:$4 sm:$0xff]  }
 0x517   :  { %v14785_v44 = vpop.f32.mrf.mxu0  ;;  %9671 = vmatprep.subr.bf16.mxu1 %v14025_v1  ;;  %9768 = vmatprep.subr.bf16.mxu0 %v14028_v37  ;;  %v14085_v1 = vld [vmem:[#allocation6 + $0xed4] ss:$40 sps:$4 sm:$0xff]   ;;  %v14088_v37 = vld [vmem:[#allocation6 + $0x12e4] ss:$40 sps:$4 sm:$0xff]  }
 0x519   :  { %v9476_v42 = vpop.f32.mrf.mxu0  ;;  %9672 = vmatpush2.bf16.msra.mxu1 %v14023_v5  ;;  %v14083_v5 = vld [vmem:[#allocation6 + $0xed0] ss:$40 sps:$4 sm:$0xff]  }
 0x51a   :  { %9769 = vmatpush1.bf16.msra.mxu0 %v14026_v61  ;;  %9673 = vmatprep.subr.bf16.mxu1 %v14031_v4  ;;  %v14086_v61 = vld [vmem:[#allocation6 + $0x12e0] ss:$40 sps:$4 sm:$0xff]   ;;  %v14091_v4 = vld [vmem:[#allocation6 + $0xe84] ss:$40 sps:$4 sm:$0xff]  }
 0x51b   :  { %v9477_v7 = vpop.f32.mrf.mxu0  ;;  %9770 = vmatprep.subr.bf16.mxu0 %v14034_v62  ;;  %v14094_v62 = vld [vmem:[#allocation6 + $0x1294] ss:$40 sps:$4 sm:$0xff]   ;;  %v14089_v42 = vld [vmem:[#allocation6 + $0xe80] ss:$40 sps:$4 sm:$0xff]  }
 0x51c   :  { %v14095_v7 = vld [vmem:[#allocation6 + $0xe30] ss:$40 sps:$4 sm:$0xff]  }
 0x51d   :  { %9674 = vmatpush2.bf16.msra.mxu1 %v14029_v0  ;;  %v14092_v0 = vld [vmem:[#allocation6 + $0x1290] ss:$40 sps:$4 sm:$0xff]  }
 0x51e   :  { %9771 = vmatpush1.bf16.msra.mxu0 %v14032_v8  ;;  %9725 = vmatprep.subr.bf16.mxu1 %v14037_v12  ;;  %v14097_v8 = vld [vmem:[#allocation6 + $0xe34] ss:$40 sps:$4 sm:$0xff]   ;;  %v14100_v12 = vld [vmem:[#allocation6 + $0x1244] ss:$40 sps:$4 sm:$0xff]  }
 0x51f   :  { %9772 = vmatprep.subr.bf16.mxu0 %v14040_v53  ;;  %v14098_v53 = vld [vmem:[#allocation6 + $0x1240] ss:$40 sps:$4 sm:$0xff]  }
 0x520   :  { %v9431_v2 = vpop.f32.mrf.mxu1  ;;  %9676 = vmatmul.mubr.bf16.vlgmr.msra.gmra.mxu1 %v14620_v52  ;;  %v14047_v52 = vld [vmem:[#allocation6 + $0xbb0] ss:$40 sps:$4 sm:$0xff]  }
 0x521   :  { %v14789_v21 = vadd.f32 %v9431_v2, %v14777_v33  ;;  %9726 = vmatpush1.bf16.msra.mxu1 %v14035_v48  ;;  %9757 = vmatprep.mubr.bf16.mxu1 %v14622_v20  ;;  %v14050_v33 = vld [vmem:[#allocation6 + $0xfc0] ss:$40 sps:$4 sm:$0xff]   ;;  %v14058_v20 = vld [vmem:[#allocation6 + $0xf74] ss:$40 sps:$4 sm:$0xff]   ;;  %v14103_v48 = vld [vmem:[#allocation6 + $0xde4] ss:$40 sps:$4 sm:$0xff]  }
 0x522   :  { %v9433_v23 = vpop.f32.mrf.mxu1  ;;  %9773 = vmatpush1.bf16.msra.mxu0 %v14038_v43  ;;  %9727 = vmatprep.subr.bf16.mxu1 %v14043_v10  ;;  %v14106_v43 = vld [vmem:[#allocation6 + $0x11f4] ss:$40 sps:$4 sm:$0xff]   ;;  %v14101_v10 = vld [vmem:[#allocation6 + $0xde0] ss:$40 sps:$4 sm:$0xff]  }
 0x523   :  { %v14793_v31 = vadd.f32 %v9433_v23, %v14779_v40  ;;  %9774 = vmatprep.subr.bf16.mxu0 %v14046_v15  ;;  %v14064_v40 = vld [vmem:[#allocation6 + $0xf24] ss:$40 sps:$4 sm:$0xff]   ;;  %v14104_v15 = vld [vmem:[#allocation6 + $0x11f0] ss:$40 sps:$4 sm:$0xff]   ;;  %v14109_v2 = vld [vmem:[#allocation6 + $0xd94] ss:$40 sps:$4 sm:$0xff]  }
 0x524   :  { %v9435_v38 = vpop.f32.mrf.mxu1  ;;  %v14107_v23 = vld [vmem:[#allocation6 + $0xd90] ss:$40 sps:$4 sm:$0xff]  }
 0x525   :  { %9728 = vmatpush1.bf16.msra.mxu1 %v14041_v47  ;;  %v14112_v47 = vld [vmem:[#allocation6 + $0x11a4] ss:$40 sps:$4 sm:$0xff]   ;;  %v9849_v38 = vmax.f32 %v14727_v49, 0.0  ;;  %v14126_v49 = vld [vmem:[#allocation9 + $0x68] sm:$0xff]  }
 0x526   :  { %v9436_v54 = vpop.f32.mrf.mxu1  ;;  %9775 = vmatpush1.bf16.msra.mxu0 %v14044_v58  ;;  %9729 = vmatprep.subr.bf16.mxu1 %v14049_v13  ;;  %v14110_v58 = vld [vmem:[#allocation6 + $0x11a0] ss:$40 sps:$4 sm:$0xff]   ;;  %v14115_v13 = vld [vmem:[#allocation6 + $0xd44] ss:$40 sps:$4 sm:$0xff]  }
 0x527   :  { %9776 = vmatprep.subr.bf16.mxu0 %v14052_v24  ;;  %v14116_v24 = vld [vmem:[#allocation9 + $0x78] sm:$0xff]  }
 0x528   :  { %v14117_v54 = vld [vmem:[#allocation9 + $0x38] sm:$0xff]  }
 0x529   :  { %9730 = vmatpush1.bf16.msra.mxu1 %v14047_v52  ;;  %v14113_v52 = vld [vmem:[#allocation6 + $0xd40] ss:$40 sps:$4 sm:$0xff]  }
 0x52a   :  { %9777 = vmatpush1.bf16.msra.mxu0 %v14050_v33  ;;  %9731 = vmatprep.subr.bf16.mxu1 %v14055_v9  ;;  %v14120_v33 = vld [vmem:[#allocation6 + $0xcf4] ss:$40 sps:$4 sm:$0xff]  }
 0x52b   :  { %9778 = vmatprep.subr.bf16.mxu0 %v14058_v20  ;;  %v14121_v9 = vld [vmem:[#allocation9 + $0x70] sm:$0xff]   ;;  %v9859_v20 = vpack.c.bf16 %v9849_v38, %v9849_v38 }
 0x52c   :  { %v14161_v38 = vld [vmem:[#allocation9 + $0x170] sm:$0xff]  }
 0x52d   :  { %9732 = vmatpush1.bf16.msra.mxu1 %v14053_v30 }
 0x52e   :  { %9779 = vmatpush1.bf16.msra.mxu0 %v14056_v11  ;;  %9733 = vmatprep.subr.bf16.mxu1 %v14061_v26  ;;  %v14118_v11 = vld [vmem:[#allocation6 + $0xcf0] ss:$40 sps:$4 sm:$0xff]  }
 0x52f   :  { %9780 = vmatprep.subr.bf16.mxu0 %v14064_v40  ;;  %v14122_v26 = vld [vmem:[#allocation9 + $0x30] sm:$0xff]   ;;  %v14125_v40 = vld [vmem:[#allocation6 + $0xca4] ss:$40 sps:$4 sm:$0xff]  }
 0x531   :  { %9734 = vmatpush1.bf16.msra.mxu1 %v14059_v28 }
 0x532   :  { %9781 = vmatpush1.bf16.msra.mxu0 %v14062_v34  ;;  %9735 = vmatprep.subr.bf16.mxu1 %v14067_v14  ;;  %v14123_v14 = vld [vmem:[#allocation6 + $0xca0] ss:$40 sps:$4 sm:$0xff]  }
 0x533   :  { %9782 = vmatprep.subr.bf16.mxu0 %v14070_v45  ;;  %v14127_v45 = vld [vmem:[#allocation9 + $0x28] sm:$0xff]  }
 0x535   :  { %9736 = vmatpush1.bf16.msra.mxu1 %v14065_v46  ;;  %v14130_v46 = vld [vmem:[#allocation6 + $0x1654] ss:$40 sps:$4 sm:$0xff]  }
 0x536   :  { %9783 = vmatpush2.bf16.msra.mxu0 %v14068_v6  ;;  %9737 = vmatprep.subr.bf16.mxu1 %v14073_v50  ;;  %v14131_v50 = vld [vmem:[#allocation9 + $0x60] sm:$0xff]  }
 0x537   :  { %9784 = vmatprep.subr.bf16.mxu0 %v14076_v51  ;;  %v4804_v51 = vrot.slane %v14757_v16, %v631_v39 }
 0x539   :  { %9738 = vmatpush1.bf16.msra.mxu1 %v14071_v55  ;;  %v14128_v55 = vld [vmem:[#allocation6 + $0x1650] ss:$40 sps:$4 sm:$0xff]  }
 0x53a   :  { %9785 = vmatpush2.bf16.msra.mxu0 %v14074_v18  ;;  %9739 = vmatprep.subr.bf16.mxu1 %v14079_v27  ;;  %v14132_v18 = vld [vmem:[#allocation9 + $0x20] sm:$0xff]  }
 0x53b   :  { %9786 = vmatprep.subr.bf16.mxu0 %v14082_v57  ;;  %v14135_v27 = vld [vmem:[#allocation6 + $0x1604] ss:$40 sps:$4 sm:$0xff]  }
 0x53d   :  { %9740 = vmatpush1.bf16.msra.mxu1 %v14077_v63  ;;  %v14136_v63 = vld [vmem:[#allocation9 + $0x58] sm:$0xff]  }
 0x53e   :  { %9787 = vmatpush2.bf16.msra.mxu0 %v14080_v19  ;;  %9741 = vmatprep.subr.bf16.mxu1 %v14085_v1 }
 0x53f   :  { %9788 = vmatprep.subr.bf16.mxu0 %v14088_v37  ;;  %v14140_v37 = vld [vmem:[#allocation6 + $0x15b4] ss:$40 sps:$4 sm:$0xff]  }
 0x541   :  { %9742 = vmatpush2.bf16.msra.mxu1 %v14083_v5 }
 0x542   :  { %9789 = vmatpush2.bf16.msra.mxu0 %v14086_v61  ;;  %9743 = vmatprep.subr.bf16.mxu1 %v14091_v4 }
 0x543   :  { %9790 = vmatprep.subr.bf16.mxu0 %v14094_v62 }
 0x545   :  { %9744 = vmatpush2.bf16.msra.mxu1 %v14089_v42  ;;  %v14145_v42 = vld [vmem:[#allocation6 + $0x1564] ss:$40 sps:$4 sm:$0xff]  }
 0x546   :  { %9791 = vmatpush2.bf16.msra.mxu0 %v14092_v0  ;;  %9745 = vmatprep.subr.bf16.mxu1 %v14097_v8  ;;  %v14146_v0 = vld [vmem:[#allocation9 + $0x48] sm:$0xff]   ;;  %v14143_v8 = vld [vmem:[#allocation6 + $0x1560] ss:$40 sps:$4 sm:$0xff]  }
 0x547   :  { %9792 = vmatprep.subr.bf16.mxu0 %v14100_v12  ;;  %v14147_v12 = vld [vmem:[#allocation9 + $0x8] sm:$0xff]  }
 0x549   :  { %9746 = vmatpush2.bf16.msra.mxu1 %v14095_v7  ;;  %v14150_v7 = vld [vmem:[#allocation6 + $0x1514] ss:$40 sps:$4 sm:$0xff]  }
 0x54a   :  { %9793 = vmatpush2.bf16.msra.mxu0 %v14098_v53  ;;  %9747 = vmatprep.subr.bf16.mxu1 %v14103_v48  ;;  %v14151_v53 = vld [vmem:[#allocation9 + $0x40] sm:$0xff]  }
 0x54b   :  { %9794 = vmatprep.subr.bf16.mxu0 %v14106_v43  ;;  %v14148_v48 = vld [vmem:[#allocation6 + $0x1510] ss:$40 sps:$4 sm:$0xff]  }
 0x54c   :  { %v14152_v43 = vld [vmem:[#allocation9] sm:$0xff]  }
 0x54d   :  { %9748 = vmatpush2.bf16.msra.mxu1 %v14101_v10  ;;  %v14155_v10 = vld [vmem:[#allocation6 + $0x14c4] ss:$40 sps:$4 sm:$0xff]  }
 0x54e   :  { %9795 = vmatpush2.bf16.msra.mxu0 %v14104_v15  ;;  %9749 = vmatprep.subr.bf16.mxu1 %v14109_v2  ;;  %v9848_v15 = vmax.f32 %v14723_v3, 0.0  ;;  %v14156_v2 = vld [vmem:[#allocation9 + $0x178] sm:$0xff]   ;;  %v14162_v3 = vld [vmem:[#allocation9 + $0x130] sm:$0xff]  }
 0x54f   :  { %9796 = vmatprep.subr.bf16.mxu0 %v14112_v47  ;;  %v9853_v47 = vmax.f32 %v14793_v31, 0.0  ;;  %v14166_v31 = vld [vmem:[#allocation9 + $0x168] sm:$0xff]  }
 0x551   :  { %9750 = vmatpush2.bf16.msra.mxu1 %v14107_v23  ;;  %v14153_v23 = vld [vmem:[#allocation6 + $0x14c0] ss:$40 sps:$4 sm:$0xff]  }
 0x552   :  { %9797 = vmatpush2.bf16.msra.mxu0 %v14110_v58  ;;  %9751 = vmatprep.subr.bf16.mxu1 %v14115_v13  ;;  %v14157_v58 = vld [vmem:[#allocation9 + $0x138] sm:$0xff]   ;;  %v9858_v13 = vpack.c.bf16 %v9848_v15, %v9848_v15 }
 0x553   :  { %12107 = vmatprep.subr.bf16.mxu0 %v14116_v24  ;;  %v14160_v24 = vld [vmem:[#allocation6 + $0x1474] ss:$40 sps:$4 sm:$0xff]  }
 0x555   :  { %v9554_v30 = vpop.f32.mrf.mxu0  ;;  %9752 = vmatpush2.bf16.msra.mxu1 %v14113_v52  ;;  %9799 = vmatmul.mubr.bf16.vlgmr.msra.gmra.mxu0 %v14658_v36  ;;  %v4800_v36 = vrot.slane %v14757_v16, %v627_v59  ;;  %v9475_v59 = vadd.f32 %v14785_v44, %v4804_v51  ;;  %v14137_v16 = vld [vmem:[#allocation9 + $0x18] sm:$0xff]   ;;  %v9863_v52 = vpack.c.bf16 %v9853_v47, %v9853_v47  ;;  %v14186_v51 = vld [vmem:[#allocation9 + $0x148] sm:$0xff]  }
 0x556   :  { %12108 = vmatpush3.bf16.msra.mxu0 %v14117_v54  ;;  %10547 = vmatprep.mubr.bf16.mxu0 %v9859_v20  ;;  %v14158_v54 = vld [vmem:[#allocation6 + $0x1470] ss:$40 sps:$4 sm:$0xff]  }
 0x557   :  { %v9556_v28 = vpop.f32.mrf.mxu0  ;;  %9753 = vmatprep.subr.bf16.mxu1 %v14120_v33  ;;  %12109 = vmatprep.subr.bf16.mxu0 %v14121_v9  ;;  %v9473_v57 = vadd.f32 %v14781_v41, %v4800_v36  ;;  %v14141_v41 = vld [vmem:[#allocation9 + $0x50] sm:$0xff]   ;;  %v14165_v33 = vld [vmem:[#allocation6 + $0x1424] ss:$40 sps:$4 sm:$0xff]   ;;  %v14167_v20 = vld [vmem:[#allocation9 + $0x128] sm:$0xff]  }
 0x558   :  { %v14163_v9 = vld [vmem:[#allocation6 + $0x1420] ss:$40 sps:$4 sm:$0xff]   ;;  %v14178_v36 = vld [vmem:[#allocation6 + $0x1830] ss:$40 sps:$4 sm:$0xff]  }
 0x559   :  { %v9558_v34 = vpop.f32.mrf.mxu0  ;;  %9754 = vmatpush2.bf16.msra.mxu1 %v14118_v11  ;;  %v14171_v11 = vld [vmem:[#allocation9 + $0x160] sm:$0xff]  }
 0x55a   :  { %12110 = vmatpush3.bf16.msra.mxu0 %v14122_v26  ;;  %9755 = vmatprep.subr.bf16.mxu1 %v14125_v40  ;;  %v14168_v26 = vld [vmem:[#allocation6 + $0x18d0] ss:$40 sps:$4 sm:$0xff]   ;;  %v14173_v34 = vld [vmem:[#allocation6 + $0x1880] ss:$40 sps:$4 sm:$0xff]  }
 0x55b   :  { %v9559_v6 = vpop.f32.mrf.mxu0  ;;  %12111 = vmatprep.subr.bf16.mxu0 %v14126_v49  ;;  %v14172_v40 = vld [vmem:[#allocation9 + $0x120] sm:$0xff]   ;;  %v14176_v49 = vld [vmem:[#allocation9 + $0x158] sm:$0xff]  }
 0x55c   :  { %v14182_v6 = vld [vmem:[#allocation9 + $0x110] sm:$0xff]  }
 0x55d   :  { %9756 = vmatpush2.bf16.msra.mxu1 %v14123_v14  ;;  %v14177_v14 = vld [vmem:[#allocation9 + $0x118] sm:$0xff]  }
 0x55e   :  { %12112 = vmatpush3.bf16.msra.mxu0 %v14127_v45  ;;  %9807 = vmatprep.subr.bf16.mxu1 %v14130_v46  ;;  %v14180_v45 = vld [vmem:[#allocation6 + $0x1834] ss:$40 sps:$4 sm:$0xff]  }
 0x55f   :  { %12113 = vmatprep.subr.bf16.mxu0 %v14131_v50  ;;  %v14181_v46 = vld [vmem:[#allocation9 + $0x150] sm:$0xff]   ;;  %v14185_v50 = vld [vmem:[#allocation6 + $0x17e4] ss:$40 sps:$4 sm:$0xff]  }
 0x560   :  { %v9513_v19 = vpop.f32.mrf.mxu1  ;;  %9758 = vmatmul.mubr.bf16.vlgmr.msra.gmra.mxu1 %v14644_v29  ;;  %v14138_v29 = vld [vmem:[#allocation6 + $0x15b0] ss:$40 sps:$4 sm:$0xff]  }
 0x561   :  { %v9514_v1 = vadd.f32 %v9513_v19, %v9473_v57  ;;  %9808 = vmatpush1.bf16.msra.mxu1 %v14128_v55  ;;  %9839 = vmatprep.mubr.bf16.mxu1 %v14678_v60  ;;  %v14142_v60 = vld [vmem:[#allocation9 + $0x10] sm:$0xff]   ;;  %v14191_v57 = vld [vmem:[#allocation9 + $0x140] sm:$0xff]  }
 0x562   :  { %v9515_v39 = vpop.f32.mrf.mxu1  ;;  %12114 = vmatpush3.bf16.msra.mxu0 %v14132_v18  ;;  %9809 = vmatprep.subr.bf16.mxu1 %v14135_v27  ;;  %v14183_v55 = vld [vmem:[#allocation6 + $0x17e0] ss:$40 sps:$4 sm:$0xff]   ;;  %v14187_v18 = vld [vmem:[#allocation9 + $0x108] sm:$0xff]  }
 0x563   :  { %v9516_v5 = vadd.f32 %v9515_v39, %v9475_v59  ;;  %12115 = vmatprep.subr.bf16.mxu0 %v14136_v63  ;;  %v14807_v61 = vadd.f32 %v9554_v30, %v9514_v1  ;;  %v14170_v30 = vld [vmem:[#allocation6 + $0x18d4] ss:$40 sps:$4 sm:$0xff]   ;;  %v14188_v63 = vld [vmem:[#allocation6 + $0x1790] ss:$40 sps:$4 sm:$0xff]   ;;  %v14195_v59 = vld [vmem:[#allocation6 + $0x1744] ss:$40 sps:$4 sm:$0xff]  }
 0x564   :  { %v9517_v4 = vpop.f32.mrf.mxu1  ;;  %v14190_v27 = vld [vmem:[#allocation6 + $0x1794] ss:$40 sps:$4 sm:$0xff]   ;;  %v14192_v19 = vld [vmem:[#allocation9 + $0x100] sm:$0xff]   ;;  %v9852_v1 = vmax.f32 %v14789_v21, 0.0  ;;  %v9851_v21 = vmax.f32 %v14753_v22, 0.0 }
 0x565   :  { %9810 = vmatpush1.bf16.msra.mxu1 %v14133_v25  ;;  %v14809_v62 = vadd.f32 %v9556_v28, %v9516_v5  ;;  %v14175_v28 = vld [vmem:[#allocation6 + $0x1884] ss:$40 sps:$4 sm:$0xff]   ;;  %v14193_v25 = vld [vmem:[#allocation6 + $0x1740] ss:$40 sps:$4 sm:$0xff]   ;;  %v14198_v39 = vld [vmem:[#allocation6 + $0x16f4] ss:$40 sps:$4 sm:$0xff]  }
 0x566   :  { %v9518_v44 = vpop.f32.mrf.mxu1  ;;  %12116 = vmatpush3.bf16.msra.mxu0 %v14137_v16  ;;  %9811 = vmatprep.subr.bf16.mxu1 %v14140_v37  ;;  %v9862_v16 = vpack.c.bf16 %v9852_v1, %v9852_v1  ;;  %v14196_v5 = vld [vmem:[#allocation6 + $0x16f0] ss:$40 sps:$4 sm:$0xff]  }
 0x567   :  { %12117 = vmatprep.subr.bf16.mxu0 %v14141_v41  ;;  %v14201_v41 = vld [vmem:[#allocation6 + $0x16a4] ss:$40 sps:$4 sm:$0xff]   ;;  %v14199_v44 = vld [vmem:[#allocation6 + $0x16a0] ss:$40 sps:$4 sm:$0xff]  }
 0x568   :  { %v14240_v1 = vld [vmem:[#allocation9 + $0x260] sm:$0xff]  }
 0x569   :  { %9812 = vmatpush1.bf16.msra.mxu1 %v14138_v29 }
 0x56a   :  { %12118 = vmatpush3.bf16.msra.mxu0 %v14142_v60  ;;  %9813 = vmatprep.subr.bf16.mxu1 %v14145_v42  ;;  %v14202_v60 = vld [vmem:[#allocation9 + $0xf8] sm:$0xff]  }
 0x56b   :  { %12119 = vmatprep.subr.bf16.mxu0 %v14146_v0  ;;  %v14203_v0 = vld [vmem:[#allocation9 + $0xb8] sm:$0xff]  }
 0x56d   :  { %9814 = vmatpush1.bf16.msra.mxu1 %v14143_v8  ;;  %v14204_v8 = vld [vmem:[#allocation9 + $0xf0] sm:$0xff]  }
 0x56e   :  { %12120 = vmatpush3.bf16.msra.mxu0 %v14147_v12  ;;  %9815 = vmatprep.subr.bf16.mxu1 %v14150_v7  ;;  %v9861_v12 = vpack.c.bf16 %v9851_v21, %v9851_v21  ;;  %v14244_v21 = vld [vmem:[#allocation9 + $0x250] sm:$0xff]  }
 0x56f   :  { %12121 = vmatprep.subr.bf16.mxu0 %v14151_v53 }
 0x571   :  { %9816 = vmatpush1.bf16.msra.mxu1 %v14148_v48  ;;  %v14205_v48 = vld [vmem:[#allocation9 + $0xb0] sm:$0xff]  }
 0x572   :  { %12122 = vmatpush3.bf16.msra.mxu0 %v14152_v43  ;;  %9817 = vmatprep.subr.bf16.mxu1 %v14155_v10  ;;  %v14206_v10 = vld [vmem:[#allocation9 + $0xe8] sm:$0xff]  }
 0x573   :  { %12151 = vmatprep.subr.bf16.mxu0 %v14156_v2  ;;  %v14207_v2 = vld [vmem:[#allocation9 + $0xa8] sm:$0xff]  }
 0x575   :  { %9818 = vmatpush1.bf16.msra.mxu1 %v14153_v23  ;;  %10548 = vmatmul.mubr.bf16.vlgmr.msra.gmra.mxu0 %v9858_v13  ;;  %v14208_v23 = vld [vmem:[#allocation9 + $0xe0] sm:$0xff]   ;;  %v14212_v13 = vld [vmem:[#allocation9 + $0xd0] sm:$0xff]  }
 0x576   :  { %12152 = vmatpush3.bf16.msra.mxu0 %v14157_v58  ;;  %10627 = vmatprep.mubr.bf16.mxu0 %v9863_v52  ;;  %v14209_v58 = vld [vmem:[#allocation9 + $0xa0] sm:$0xff]  }
 0x577   :  { %9819 = vmatprep.subr.bf16.mxu1 %v14160_v24  ;;  %12153 = vmatprep.subr.bf16.mxu0 %v14161_v38  ;;  %v14213_v24 = vld [vmem:[#allocation9 + $0x90] sm:$0xff]   ;;  %v14214_v38 = vld [vmem:[#allocation9 + $0xc8] sm:$0xff]  }
 0x579   :  { %9820 = vmatpush1.bf16.msra.mxu1 %v14158_v54  ;;  %v14215_v54 = vld [vmem:[#allocation9 + $0x88] sm:$0xff]  }
 0x57a   :  { %12154 = vmatpush3.bf16.msra.mxu0 %v14162_v3  ;;  %9821 = vmatprep.subr.bf16.mxu1 %v14165_v33  ;;  %v14216_v3 = vld [vmem:[#allocation9 + $0xc0] sm:$0xff]  }
 0x57b   :  { %12155 = vmatprep.subr.bf16.mxu0 %v14166_v31  ;;  %v14217_v31 = vld [vmem:[#allocation9 + $0x80] sm:$0xff]  }
 0x57d   :  { %9822 = vmatpush1.bf16.msra.mxu1 %v14163_v9  ;;  %v9850_v9 = vmax.f32 %v14750_v56, 0.0  ;;  %v14221_v56 = vld [vmem:[#allocation9 + $0x1b0] sm:$0xff]  }
 0x57e   :  { %12156 = vmatpush3.bf16.msra.mxu0 %v14167_v20  ;;  %9823 = vmatprep.subr.bf16.mxu1 %v14170_v30  ;;  %v14218_v20 = vld [vmem:[#allocation9 + $0x1f8] sm:$0xff]  }
 0x57f   :  { %12157 = vmatprep.subr.bf16.mxu0 %v14171_v11  ;;  %v14234_v11 = vld [vmem:[#allocation9 + $0x278] sm:$0xff]  }
 0x581   :  { %9824 = vmatpush2.bf16.msra.mxu1 %v14168_v26  ;;  %v14235_v26 = vld [vmem:[#allocation9 + $0x238] sm:$0xff]  }
 0x582   :  { %12158 = vmatpush3.bf16.msra.mxu0 %v14172_v40  ;;  %9825 = vmatprep.subr.bf16.mxu1 %v14175_v28  ;;  %v14236_v40 = vld [vmem:[#allocation9 + $0x270] sm:$0xff]   ;;  %v14219_v28 = vld [vmem:[#allocation9 + $0x1b8] sm:$0xff]  }
 0x583   :  { %12159 = vmatprep.subr.bf16.mxu0 %v14176_v49  ;;  %v9860_v49 = vpack.c.bf16 %v9850_v9, %v9850_v9 }
 0x585   :  { %9826 = vmatpush2.bf16.msra.mxu1 %v14173_v34  ;;  %v14237_v34 = vld [vmem:[#allocation9 + $0x230] sm:$0xff]  }
 0x586   :  { %12160 = vmatpush3.bf16.msra.mxu0 %v14177_v14  ;;  %9827 = vmatprep.subr.bf16.mxu1 %v14180_v45  ;;  %v14238_v45 = vld [vmem:[#allocation9 + $0x268] sm:$0xff]  }
 0x587   :  { %12161 = vmatprep.subr.bf16.mxu0 %v14181_v46  ;;  %v14222_v46 = vld [vmem:[#allocation9 + $0x1e8] sm:$0xff]  }
 0x589   :  { %9828 = vmatpush2.bf16.msra.mxu1 %v14178_v36  ;;  %v14239_v36 = vld [vmem:[#allocation9 + $0x228] sm:$0xff]  }
 0x58a   :  { %12162 = vmatpush3.bf16.msra.mxu0 %v14182_v6  ;;  %9829 = vmatprep.subr.bf16.mxu1 %v14185_v50  ;;  %v14223_v6 = vld [vmem:[#allocation9 + $0x1a8] sm:$0xff]   ;;  %v14224_v50 = vld [vmem:[#allocation9 + $0x1e0] sm:$0xff]  }
 0x58b   :  { %12163 = vmatprep.subr.bf16.mxu0 %v14186_v51  ;;  %v14225_v51 = vld [vmem:[#allocation9 + $0x1a0] sm:$0xff]  }
 0x58d   :  { %9830 = vmatpush2.bf16.msra.mxu1 %v14183_v55  ;;  %v14226_v55 = vld [vmem:[#allocation9 + $0x1d8] sm:$0xff]  }
 0x58e   :  { %12164 = vmatpush3.bf16.msra.mxu0 %v14187_v18  ;;  %9831 = vmatprep.subr.bf16.mxu1 %v14190_v27  ;;  %v14227_v18 = vld [vmem:[#allocation9 + $0x198] sm:$0xff]   ;;  %v14228_v27 = vld [vmem:[#allocation9 + $0x1d0] sm:$0xff]  }
 0x58f   :  { %12165 = vmatprep.subr.bf16.mxu0 %v14191_v57  ;;  %v14229_v57 = vld [vmem:[#allocation9 + $0x190] sm:$0xff]  }
 0x591   :  { %9832 = vmatpush2.bf16.msra.mxu1 %v14188_v63  ;;  %v14230_v63 = vld [vmem:[#allocation9 + $0x1c8] sm:$0xff]  }
 0x592   :  { %12166 = vmatpush3.bf16.msra.mxu0 %v14192_v19  ;;  %9833 = vmatprep.subr.bf16.mxu1 %v14195_v59  ;;  %v14231_v59 = vld [vmem:[#allocation9 + $0x188] sm:$0xff]  }
 0x593   :  { %12195 = vmatprep.subr.bf16.mxu0 %v14234_v11 }
 0x595   :  { %v9636_v37 = vpop.f32.mrf.mxu0  ;;  %9834 = vmatpush2.bf16.msra.mxu1 %v14193_v25  ;;  %10628 = vmatmul.mubr.bf16.vlgmr.msra.gmra.mxu0 %v9862_v16  ;;  %v14232_v25 = vld [vmem:[#allocation9 + $0x1c0] sm:$0xff]  }
 0x596   :  { %9835 = vmatprep.subr.bf16.mxu1 %v14198_v39  ;;  %12196 = vmatpush3.bf16.msra.mxu0 %v14235_v26  ;;  %v14241_v39 = vld [vmem:[#allocation9 + $0x220] sm:$0xff]  }
 0x597   :  { %v9638_v4 = vpop.f32.mrf.mxu0  ;;  %12197 = vmatprep.subr.bf16.mxu0 %v14236_v40 }
 0x599   :  { %v9640_v29 = vpop.f32.mrf.mxu0  ;;  %9836 = vmatpush2.bf16.msra.mxu1 %v14196_v5  ;;  %v14233_v5 = vld [vmem:[#allocation9 + $0x180] sm:$0xff]  }
 0x59a   :  { %9837 = vmatprep.subr.bf16.mxu1 %v14201_v41  ;;  %12198 = vmatpush3.bf16.msra.mxu0 %v14237_v34  ;;  %v14242_v41 = vld [vmem:[#allocation9 + $0x258] sm:$0xff]  }
 0x59b   :  { %v9641_v42 = vpop.f32.mrf.mxu0  ;;  %12199 = vmatprep.subr.bf16.mxu0 %v14238_v45  ;;  %v4770_v29 = vld [vmem:[#allocation7 + $0x8] sm:$0x3] }
 0x59c   :  { %v14245_v42 = vld [vmem:[#allocation9 + $0x210] sm:$0xff]  }
 0x59d   :  { %9838 = vmatpush2.bf16.msra.mxu1 %v14199_v44  ;;  %v14243_v44 = vld [vmem:[#allocation9 + $0x218] sm:$0xff]  }
 0x59e   :  { %12129 = vmatprep.subr.bf16.mxu1 %v14202_v60  ;;  %12200 = vmatpush3.bf16.msra.mxu0 %v14239_v36 }
 0x59f   :  { %12201 = vmatprep.subr.bf16.mxu0 %v14240_v1 }
 0x5a0   :  { %v9595_v7 = vpop.f32.mrf.mxu1  ;;  %9840 = vmatmul.mubr.bf16.vlgmr.msra.gmra.mxu1 %v14680_v17  ;;  %v14210_v17 = vld [vmem:[#allocation9 + $0xd8] sm:$0xff]  }
 0x5a1   :  { %v9596_v53 = vadd.f32 %v9595_v7, %v14807_v61  ;;  %12130 = vmatpush3.bf16.msra.mxu1 %v14203_v0  ;;  %10587 = vmatprep.mubr.bf16.mxu1 %v9861_v12  ;;  %v14211_v61 = vld [vmem:[#allocation9 + $0x98] sm:$0xff]   ;;  %v4808_v0 = vrot.slane %v4770_v29, %v14507_v32  ;;  %v4812_v12 = vrot.slane %v4770_v29, %v14510_v35  ;;  %v14249_v32 = vld [vmem:[#allocation9 + $0x200] sm:$0xff]  }
 0x5a2   :  { %v9597_v43 = vpop.f32.mrf.mxu1  ;;  %12131 = vmatprep.subr.bf16.mxu1 %v14204_v8  ;;  %12202 = vmatpush3.bf16.msra.mxu0 %v14241_v39 }
 0x5a3   :  { %v14817_v15 = vadd.f32 %v9636_v37, %v9596_v53  ;;  %v9598_v52 = vadd.f32 %v9597_v43, %v14809_v62  ;;  %v14220_v62 = vld [vmem:[#allocation9 + $0x1f0] sm:$0xff]   ;;  %12203 = vmatprep.subr.bf16.mxu0 %v14242_v41 }
 0x5a4   :  { %v9599_v22 = vpop.f32.mrf.mxu1 }
 0x5a5   :  { %12132 = vmatpush3.bf16.msra.mxu1 %v14205_v48  ;;  %v9639_v33 = vadd.f32 %v9638_v4, %v9598_v52  ;;  %v9854_v4 = vmax.f32 %v14817_v15, 0.0  ;;  %v14246_v48 = vld [vmem:[#allocation9 + $0x248] sm:$0xff]  }
 0x5a6   :  { %v9600_v47 = vpop.f32.mrf.mxu1  ;;  %12133 = vmatprep.subr.bf16.mxu1 %v14206_v10  ;;  %12204 = vmatpush3.bf16.msra.mxu0 %v14243_v44  ;;  %v14247_v10 = vld [vmem:[#allocation9 + $0x208] sm:$0xff]  }
 0x5a7   :  { %v9855_v30 = vmax.f32 %v9639_v33, 0.0  ;;  %12205 = vmatprep.subr.bf16.mxu0 %v14244_v21  ;;  %v9864_v8 = vpack.c.bf16 %v9854_v4, %v9854_v4 }
 0x5a9   :  { %12134 = vmatpush3.bf16.msra.mxu1 %v14207_v2  ;;  %v9865_v14 = vpack.c.bf16 %v9855_v30, %v9855_v30 }
 0x5aa   :  { %12135 = vmatprep.subr.bf16.mxu1 %v14208_v23  ;;  %12206 = vmatpush3.bf16.msra.mxu0 %v14245_v42  ;;  %v14248_v23 = vld [vmem:[#allocation9 + $0x240] sm:$0xff]  }
 0x5ab   :  { %12207 = vmatprep.subr.bf16.mxu0 %v14246_v48 }
 0x5ad   :  { %12136 = vmatpush3.bf16.msra.mxu1 %v14209_v58 }
 0x5ae   :  { %12137 = vmatprep.subr.bf16.mxu1 %v14210_v17  ;;  %12208 = vmatpush3.bf16.msra.mxu0 %v14247_v10 }
 0x5af   :  { %12209 = vmatprep.subr.bf16.mxu0 %v14248_v23 }
 0x5b1   :  { %12138 = vmatpush3.bf16.msra.mxu1 %v14211_v61 }
 0x5b2   :  { %12139 = vmatprep.subr.bf16.mxu1 %v14212_v13  ;;  %12210 = vmatpush3.bf16.msra.mxu0 %v14249_v32 }
 0x5b5   :  { %12140 = vmatpush3.bf16.msra.mxu1 %v14213_v24 }
 0x5b6   :  { %12141 = vmatprep.subr.bf16.mxu1 %v14214_v38 }
 0x5b9   :  { %12142 = vmatpush3.bf16.msra.mxu1 %v14215_v54 }
 0x5ba   :  { %12143 = vmatprep.subr.bf16.mxu1 %v14216_v3 }
 0x5bd   :  { %12144 = vmatpush3.bf16.msra.mxu1 %v14217_v31 }
 0x5be   :  { %12173 = vmatprep.subr.bf16.mxu1 %v14218_v20 }
 0x5c0   :  { %10588 = vmatmul.mubr.bf16.vlgmr.msra.gmra.mxu1 %v9860_v49 }
 0x5c1   :  { %12174 = vmatpush3.bf16.msra.mxu1 %v14219_v28  ;;  %10667 = vmatprep.mubr.bf16.mxu1 %v9865_v14 }
 0x5c2   :  { %12175 = vmatprep.subr.bf16.mxu1 %v14220_v62 }
 0x5c5   :  { %12176 = vmatpush3.bf16.msra.mxu1 %v14221_v56 }
 0x5c6   :  { %12177 = vmatprep.subr.bf16.mxu1 %v14222_v46 }
 0x5c9   :  { %12178 = vmatpush3.bf16.msra.mxu1 %v14223_v6 }
 0x5ca   :  { %12179 = vmatprep.subr.bf16.mxu1 %v14224_v50 }
 0x5cd   :  { %12180 = vmatpush3.bf16.msra.mxu1 %v14225_v51 }
 0x5ce   :  { %12181 = vmatprep.subr.bf16.mxu1 %v14226_v55 }
 0x5d1   :  { %12182 = vmatpush3.bf16.msra.mxu1 %v14227_v18 }
 0x5d2   :  { %12183 = vmatprep.subr.bf16.mxu1 %v14228_v27 }
 0x5d5   :  { %v9718_v19 = vpop.f32.mrf.mxu0  ;;  %12184 = vmatpush3.bf16.msra.mxu1 %v14229_v57  ;;  %v12026_v57 = vld [vmem:[#allocation10] ss:$0 sm:$0xff] }
 0x5d6   :  { %12185 = vmatprep.subr.bf16.mxu1 %v14230_v63 }
 0x5d7   :  { %v9720_v16 = vpop.f32.mrf.mxu0 }
 0x5d9   :  { %v9722_v37 = vpop.f32.mrf.mxu0  ;;  %12186 = vmatpush3.bf16.msra.mxu1 %v14231_v59 }
 0x5da   :  { %12187 = vmatprep.subr.bf16.mxu1 %v14232_v25 }
 0x5db   :  { %v9723_v60 = vpop.f32.mrf.mxu0 }
 0x5dd   :  { %12188 = vmatpush3.bf16.msra.mxu1 %v14233_v5 }
 0x5e0   :  { %v9677_v7 = vpop.f32.mrf.mxu1  ;;  %10668 = vmatmul.mubr.bf16.vlgmr.msra.gmra.mxu1 %v9864_v8 }
 0x5e1   :  { %v9678_v53 = vadd.f32 %v9677_v7, %v4808_v0 }
 0x5e2   :  { %v9679_v43 = vpop.f32.mrf.mxu1 }
 0x5e3   :  { %v9680_v15 = vadd.f32 %v9679_v43, %v4812_v12  ;;  %v9719_v22 = vadd.f32 %v9718_v19, %v9678_v53 }
 0x5e4   :  { %v9681_v2 = vpop.f32.mrf.mxu1 }
 0x5e5   :  { %v9721_v47 = vadd.f32 %v9720_v16, %v9680_v15 }
 0x5e6   :  { %v9682_v58 = vpop.f32.mrf.mxu1 }
 0x615   :  { %v9800_v17 = vpop.f32.mrf.mxu0 }
 0x617   :  { %v9802_v35 = vpop.f32.mrf.mxu0 }
 0x619   :  { %v9804_v61 = vpop.f32.mrf.mxu0 }
 0x61b   :  { %v9805_v13 = vpop.f32.mrf.mxu0 }
 0x620   :  { %v9759_v24 = vpop.f32.mrf.mxu1 }
 0x621   :  { %v9760_v38 = vadd.f32 %v9759_v24, %v9719_v22 }
 0x622   :  { %v9761_v52 = vpop.f32.mrf.mxu1 }
 0x623   :  { %v9762_v54 = vadd.f32 %v9761_v52, %v9721_v47  ;;  %v9801_v3 = vadd.f32 %v9800_v17, %v9760_v38 }
 0x624   :  { %v9763_v33 = vpop.f32.mrf.mxu1 }
 0x625   :  { %v9803_v31 = vadd.f32 %v9802_v35, %v9762_v54 }
 0x626   :  { %v9764_v9 = vpop.f32.mrf.mxu1 }
 0x635   :  { %v12123_v20 = vpop.f32.mrf.mxu0 }
 0x637   :  { %v12124_v30 = vpop.f32.mrf.mxu0 }
 0x638   :  { %v12125_v11 = vadd.f32 %v12124_v30, %v12123_v20 }
 0x639   :  { %v12126_v26 = vpop.f32.mrf.mxu0 }
 0x63a   :  { %v10550_v59 = vadd.f32 %v12125_v11, %v12026_v57 }
 0x63b   :  { %v12127_v40 = vpop.f32.mrf.mxu0 }
 0x655   :  { %v12167_v28 = vpop.f32.mrf.mxu0 }
 0x657   :  { %v12168_v49 = vpop.f32.mrf.mxu0 }
 0x658   :  { %v12169_v62 = vadd.f32 %v12168_v49, %v12167_v28 }
 0x659   :  { %v12170_v34 = vpop.f32.mrf.mxu0 }
 0x65b   :  { %v12171_v14 = vpop.f32.mrf.mxu0 }
 0x660   :  { %v9841_v45 = vpop.f32.mrf.mxu1 }
 0x661   :  { %v9842_v56 = vadd.f32 %v9841_v45, %v9801_v3 }
 0x662   :  { %v9843_v46 = vpop.f32.mrf.mxu1 }
 0x663   :  { %v9844_v36 = vadd.f32 %v9843_v46, %v9803_v31  ;;  %v9856_v6 = vmax.f32 %v9842_v56, 0.0 }
 0x664   :  { %v9845_v50 = vpop.f32.mrf.mxu1 }
 0x665   :  { %v9857_v51 = vmax.f32 %v9844_v36, 0.0  ;;  %v9866_v27 = vpack.c.bf16 %v9856_v6, %v9856_v6 }
 0x666   :  { %v9846_v55 = vpop.f32.mrf.mxu1 }
 0x667   :  { %v9867_v18 = vpack.c.bf16 %v9857_v51, %v9857_v51 }
 0x669   :  { %10707 = vmatprep.mubr.bf16.mxu0 %v9867_v18 }
 0x66a   :  { %10708 = vmatmul.mubr.bf16.vlgmr.msra.gmra.mxu0 %v9866_v27 }
 0x680   :  { %v12145_v63 = vpop.f32.mrf.mxu1 }
 0x682   :  { %v12146_v19 = vpop.f32.mrf.mxu1 }
 0x683   :  { %v12147_v1 = vadd.f32 %v12146_v19, %v12145_v63 }
 0x684   :  { %v12148_v25 = vpop.f32.mrf.mxu1 }
 0x685   :  { %v10590_v39 = vadd.f32 %v12147_v1, %v10550_v59 }
 0x686   :  { %v12149_v16 = vpop.f32.mrf.mxu1 }
 0x687   :  { %v10630_v37 = vadd.f32 %v12169_v62, %v10590_v39 }
 0x6a0   :  { %v12189_v5 = vpop.f32.mrf.mxu1 }
 0x6a2   :  { %v12190_v41 = vpop.f32.mrf.mxu1 }
 0x6a3   :  { %v12191_v4 = vadd.f32 %v12190_v41, %v12189_v5 }
 0x6a4   :  { %v12192_v29 = vpop.f32.mrf.mxu1 }
 0x6a5   :  { %v10670_v44 = vadd.f32 %v12191_v4, %v10630_v37 }
 0x6a6   :  { %v12193_v60 = vpop.f32.mrf.mxu1 }
 0x72a   :  { %v12211_v21 = vpop.f32.mrf.mxu0 }
 0x72c   :  { %v12212_v42 = vpop.f32.mrf.mxu0 }
 0x72d   :  { %v12213_v0 = vadd.f32 %v12212_v42, %v12211_v21 }
 0x72e   :  { %v12214_v8 = vpop.f32.mrf.mxu0 }
 0x72f   :  { %v10710_v12 = vadd.f32 %v12213_v0, %v10670_v44 }
 0x730   :  { %v12215_v7 = vpop.f32.mrf.mxu0 }
 0x731   :  { %10715 = vst [vmem:[%s14834_s7] sm:$0xff] %v10710_v12 }
 0x732   :  { %10720 = vsyncpa [#allocation3], 1 }
 0x733   :  { %10721 = vsyncpa [#allocation5], 1 }
 0x734   :  { %10722 = vsyncpa [#allocation8], 1 }
 0x735   :  { %10723 = vsyncpa [#allocation11], 1 }

</bundles_post_ra>
